<compile_context>
chip_gen: v5e
topology: v5e:2x2
jax: 0.10.0
libtpu: 0.0.40
codegen_flags: <defaults>
</compile_context>

<pallas_src>
import functools

import jax
import jax.numpy as jnp
from jax import lax
from jax.experimental import pallas as pl
from jax.experimental.pallas import tpu as pltpu


def _ibasic_block_kernel(
    x_ref,      # (1, H, W, C)  input tile (also the residual), f32
    w1_ref,     # (3, 3*C, C)   conv1 weights (bn2 scale folded), compute dtype
    w2_ref,     # (3, 3*C, C)   conv2 weights (bn3 scale folded), compute dtype
    vec_ref,    # (8, C) f32: rows = bn1_scale, bn1_bias, bn2_bias, prelu_a, bn3_bias
    o_ref,      # (1, H, W, C)
    taps1_ref,  # (H+2, W, 3*C) compute dtype: kw-expanded conv1 input
    taps2_ref,  # (H+2, W, 3*C) compute dtype: kw-expanded conv2 input
    *, row_tile,
):
    H, W, C = x_ref.shape[1], x_ref.shape[2], x_ref.shape[3]
    rt = row_tile
    n_strips = pl.cdiv(H, rt)
    cdt = taps1_ref.dtype
    unroll = n_strips <= 4

    # Per-channel vectors, loaded once per grid step (hoisted out of the loops).
    bn1s = vec_ref[0:1, :]
    bn1b = vec_ref[1:2, :]
    bn2b = vec_ref[2:3, :]
    prelu_a = vec_ref[3:4, :]
    bn3b = vec_ref[4:5, :]

    def strip_start(i):
        if H % rt == 0:
            return pl.multiple_of(i * rt, rt)
        # clamp last strip (overlapping recompute is idempotent)
        return jnp.minimum(i * rt, H - rt)

    # ---- per-step halo maintenance: only 2 rows + 2 thin tap-boundary columns
    # per buffer (interior is fully rewritten every step).  Done every step so
    # it stays correct when the "parallel" batch axis is sharded across cores.
    zrow = jnp.zeros((1, W, 3 * C), cdt)
    zcol = jnp.zeros((H, 1, C), cdt)
    for t_ref in (taps1_ref, taps2_ref):
        t_ref[0:1, :, :] = zrow
        t_ref[H + 1:H + 2, :, :] = zrow
        t_ref[1:H + 1, 0:1, 0:C] = zcol                  # left edge, kw=0 tap
        t_ref[1:H + 1, W - 1:W, 2 * C:3 * C] = zcol      # right edge, kw=2 tap

    def write_taps(t_ref, r0, y):
        # y: (rt, W, C) conv-input rows [r0, r0+rt); taps row index = padded row.
        # Lane block kw*C:(kw+1)*C holds padded column j+kw for output column j.
        t_ref[pl.ds(r0 + 1, rt), :, C:2 * C] = y                        # kw = 1
        t_ref[pl.ds(r0 + 1, rt), 1:W, 0:C] = y[:, 0:W - 1, :]           # kw = 0
        t_ref[pl.ds(r0 + 1, rt), 0:W - 1, 2 * C:3 * C] = y[:, 1:W, :]   # kw = 2

    # ---- bn1 (inference scale/bias) -> kw-expanded conv1 input
    def bn1_body(i, carry):
        r0 = strip_start(i)
        xs = x_ref[0, pl.ds(r0, rt), :, :]                  # (rt, W, C) f32
        y = (xs * bn1s + bn1b).astype(cdt)
        write_taps(taps1_ref, r0, y)
        return carry

    lax.fori_loop(0, n_strips, bn1_body, 0, unroll=unroll)

    def conv3x3(t_ref, w_ref, r0):
        # 3 aligned contiguous reads, 3 MXU dots with K = 3*C, f32 accumulation.
        acc = jnp.zeros((rt * W, C), jnp.float32)
        for kh in range(3):
            patch = t_ref[pl.ds(r0 + kh, rt), :, :].reshape(rt * W, 3 * C)
            acc += jnp.dot(patch, w_ref[kh], preferred_element_type=jnp.float32)
        return acc

    # ---- conv1 (bn2 scale pre-folded) + bn2 bias + PReLU -> conv2 taps
    def conv1_body(i, carry):
        r0 = strip_start(i)
        y = conv3x3(taps1_ref, w1_ref, r0) + bn2b
        y = jnp.where(y >= 0, y, prelu_a * y)
        write_taps(taps2_ref, r0, y.astype(cdt).reshape(rt, W, C))
        return carry

    lax.fori_loop(0, n_strips, conv1_body, 0, unroll=unroll)

    # ---- conv2 (bn3 scale pre-folded) + bn3 bias + residual add
    def conv2_body(i, carry):
        r0 = strip_start(i)
        z = conv3x3(taps2_ref, w2_ref, r0) + bn3b
        z = z.reshape(rt, W, C) + x_ref[0, pl.ds(r0, rt), :, :]
        o_ref[0, pl.ds(r0, rt), :, :] = z.astype(o_ref.dtype)
        return carry

    lax.fori_loop(0, n_strips, conv2_body, 0, unroll=unroll)


def ibasic_block_forward(x, params, *, data_format="NHWC",
                         compute_dtype=jnp.bfloat16, row_tile=None,
                         pad_lanes=None):
    """IBasicBlock forward. x: NHWC (preferred) or NCHW float32."""
    if data_format == "NCHW":
        x = jnp.transpose(x, (0, 2, 3, 1))
    elif data_format != "NHWC":
        raise ValueError("data_format must be 'NHWC' or 'NCHW'")

    N, H, W, Cin = x.shape
    Cout = params["w1"].shape[-1]
    assert Cin == Cout, "stride=1 / downsample=None block requires inplanes == planes"
    C = Cin

    # Lane-dense channels: pad C to a multiple of 128 (exact: padded weight
    # rows/cols and biases are zero, so padded output channels are zero and
    # are sliced off after the call).  For best perf across a whole iresnet,
    # keep activations channel-padded between blocks to amortize the pad/slice.
    if pad_lanes is None:
        pad_lanes = (C % 128) != 0
    Cp = ((C + 127) // 128) * 128 if pad_lanes else C
    pad = Cp - C

    # Fold bn2/bn3 per-output-channel scales into the conv weights (exact),
    # pad channels, and merge (kw, Cin) -> K so each MXU call contracts K=3*Cp.
    def prep_w(w, scale):
        w = jnp.asarray(w, jnp.float32) * jnp.asarray(scale, jnp.float32)
        if pad:
            w = jnp.pad(w, ((0, 0), (0, 0), (0, pad), (0, pad)))
        return w.reshape(3, 3 * Cp, Cp).astype(compute_dtype)

    w1 = prep_w(params["w1"], params["bn2_scale"])
    w2 = prep_w(params["w2"], params["bn3_scale"])

    def padvec(v):
        v = jnp.asarray(v, jnp.float32)
        return jnp.pad(v, (0, pad)) if pad else v

    # Pack the five per-channel vectors into one (8, Cp) input (single DMA).
    vec = jnp.zeros((8, Cp), jnp.float32)
    vec = vec.at[0].set(padvec(params["bn1_scale"]))
    vec = vec.at[1].set(padvec(params["bn1_bias"]))
    vec = vec.at[2].set(padvec(params["bn2_bias"]))
    vec = vec.at[3].set(padvec(params["prelu_a"]))
    vec = vec.at[4].set(padvec(params["bn3_bias"]))

    xp = jnp.pad(x, ((0, 0), (0, 0), (0, 0), (0, pad))) if pad else x

    # Adaptive row tile: matmul M = rt * W ~ 256 bounds vreg pressure.
    if row_tile is None:
        row_tile = max(1, 256 // W)
    rt = max(1, min(row_tile, H))

    kernel = functools.partial(_ibasic_block_kernel, row_tile=rt)

    # Generation-aware VMEM budget (~85% of physical capacity as the hard cap).
    wsz = jnp.dtype(compute_dtype).itemsize
    xsz = jnp.dtype(x.dtype).itemsize
    est = (2 * xsz * H * W * Cp                 # x block, double buffered
           + 2 * xsz * H * W * Cp               # out block, double buffered
           + 2 * 2 * 9 * Cp * Cp * wsz          # w1 + w2
           + 2 * (H + 2) * W * 3 * Cp * wsz     # taps scratch
           + (2 << 20))
    try:
        vmem_cap = int(pltpu.get_tpu_info().vmem_capacity_bytes)
    except Exception:
        vmem_cap = 64 * 1024 * 1024             # conservative (v7x floor)
    vmem_limit = int(min(int(0.85 * vmem_cap),
                         max(int(1.25 * est), 32 * 1024 * 1024)))

    out = pl.pallas_call(
        kernel,
        out_shape=jax.ShapeDtypeStruct((N, H, W, Cp), x.dtype),
        grid_spec=pltpu.PrefetchScalarGridSpec(
            num_scalar_prefetch=0,
            grid=(N,),
            in_specs=[
                pl.BlockSpec((1, H, W, Cp), lambda b: (b, 0, 0, 0)),     # x
                pl.BlockSpec((3, 3 * Cp, Cp), lambda b: (0, 0, 0)),      # w1
                pl.BlockSpec((3, 3 * Cp, Cp), lambda b: (0, 0, 0)),      # w2
                pl.BlockSpec((8, Cp), lambda b: (0, 0)),                 # packed vecs
            ],
            out_specs=pl.BlockSpec((1, H, W, Cp), lambda b: (b, 0, 0, 0)),
            scratch_shapes=[
                pltpu.VMEM((H + 2, W, 3 * Cp), compute_dtype),
                pltpu.VMEM((H + 2, W, 3 * Cp), compute_dtype),
            ],
        ),
        compiler_params=pltpu.CompilerParams(
            dimension_semantics=("parallel",),   # batch steps are independent
            vmem_limit_bytes=vmem_limit,
        ),
    )(xp, w1, w2, vec)

    if pad:
        out = out[..., :C]
    if data_format == "NCHW":
        out = jnp.transpose(out, (0, 3, 1, 2))
    return out


# ---------------------------------------------------------------------------
# Pure-JAX reference (NHWC) and deterministic parameter construction
# ---------------------------------------------------------------------------
def _reference_nhwc(x, p):
    dn = ("NHWC", "HWIO", "NHWC")
    out = x * p["bn1_scale"] + p["bn1_bias"]
    out = lax.conv_general_dilated(out, p["w1"], (1, 1), "SAME",
                                   dimension_numbers=dn)
    out = out * p["bn2_scale"] + p["bn2_bias"]
    out = jnp.where(out >= 0, out, p["prelu_a"] * out)
    out = lax.conv_general_dilated(out, p["w2"], (1, 1), "SAME",
                                   dimension_numbers=dn)
    out = out * p["bn3_scale"] + p["bn3_bias"]
    return out + x


def _fold_bn(gamma, beta, mean, var, eps=1e-5):
    scale = gamma / jnp.sqrt(var + eps)
    return scale, beta - mean * scale


def _make_params(key, inplanes, planes):
    ks = jax.random.split(key, 14)
    p = {}
    p["w1"] = 0.1 * jax.random.normal(ks[0], (3, 3, inplanes, planes), jnp.float32)
    p["w2"] = 0.1 * jax.random.normal(ks[1], (3, 3, planes, planes), jnp.float32)

    def bn(k0, k1, k2, k3, c):
        gamma = 1.0 + 0.1 * jax.random.normal(k0, (c,), jnp.float32)
        beta = 0.1 * jax.random.normal(k1, (c,), jnp.float32)
        mean = 0.1 * jax.random.normal(k2, (c,), jnp.float32)
        var = 0.5 + jnp.abs(jax.random.normal(k3, (c,), jnp.float32))
        return _fold_bn(gamma, beta, mean, var)

    p["bn1_scale"], p["bn1_bias"] = bn(ks[2], ks[3], ks[4], ks[5], inplanes)
    p["bn2_scale"], p["bn2_bias"] = bn(ks[6], ks[7], ks[8], ks[9], planes)
    p["bn3_scale"], p["bn3_bias"] = bn(ks[10], ks[11], ks[12], ks[13], planes)
    p["prelu_a"] = jnp.full((planes,), 0.25, jnp.float32)  # nn.PReLU default
    return p


if __name__ == "__main__":
    key = jax.random.PRNGKey(0)
    kx, kp = jax.random.split(key)

    N, H, W, C = 2, 16, 16, 8     # stride=1, downsample=None -> inplanes == planes
    x = jax.random.normal(kx, (N, H, W, C), jnp.float32)
    params = _make_params(kp, C, C)

    ref = jax.block_until_ready(_reference_nhwc(x, params))

    # f32 conv operands: tight check against the reference.
    out_f32 = jax.block_until_ready(
        ibasic_block_forward(x, params, compute_dtype=jnp.float32))
    assert out_f32.shape == (N, H, W, C)
    assert jnp.allclose(out_f32, ref, atol=1e-3, rtol=1e-3), "f32 mismatch vs reference"

    # Default path: bf16 conv operands, f32 accumulation (loose smoke check;
    # the f32 path above is the exact correctness check).
    out_bf16 = jax.block_until_ready(ibasic_block_forward(x, params))
    assert jnp.allclose(out_bf16, ref, atol=1.5e-1, rtol=1e-1), "bf16 mismatch vs reference"

    # PyTorch-style NCHW convenience path.
    x_nchw = jnp.transpose(x, (0, 3, 1, 2))
    out_nchw = jax.block_until_ready(
        ibasic_block_forward(x_nchw, params, data_format="NCHW",
                             compute_dtype=jnp.float32))
    assert jnp.allclose(out_nchw, jnp.transpose(ref, (0, 3, 1, 2)),
                        atol=1e-3, rtol=1e-3), "NCHW path mismatch"

    print("KERNEL_OK")
</pallas_src>

<mosaic_0001>
module attributes {stable_mosaic.version = 11 : i64} {
  func.func @_ibasic_block_kernel(%arg0: i32, %arg1: memref<1x16x16x128xf32, #tpu.memory_space<vmem>>, %arg2: memref<3x384x128xf32, #tpu.memory_space<vmem>>, %arg3: memref<3x384x128xf32, #tpu.memory_space<vmem>>, %arg4: memref<8x128xf32, #tpu.memory_space<vmem>>, %arg5: memref<1x16x16x128xf32, #tpu.memory_space<vmem>>, %arg6: memref<18x16x384xf32, #tpu.memory_space<vmem>>, %arg7: memref<18x16x384xf32, #tpu.memory_space<vmem>>) attributes {dimension_semantics = [#tpu.dimension_semantics<parallel>], iteration_bounds = array<i64: 2>, scalar_prefetch = 0 : i64, scratch_operands = 2 : i64, tpu.core_type = #tpu.core_type<tc>, window_params = [{transform_indices = @transform_0, window_bounds = array<i64: 1, 16, 16, 128>}, {pipeline_mode = #tpu.pipeline_mode<synchronous>, transform_indices = @transform_1, window_bounds = array<i64: 3, 384, 128>}, {pipeline_mode = #tpu.pipeline_mode<synchronous>, transform_indices = @transform_2, window_bounds = array<i64: 3, 384, 128>}, {pipeline_mode = #tpu.pipeline_mode<synchronous>, transform_indices = @transform_3, window_bounds = array<i64: 8, 128>}, {transform_indices = @transform_4, window_bounds = array<i64: 1, 16, 16, 128>}]} {
    %c0 = arith.constant 0 : index
    %c0_0 = arith.constant 0 : index
    %0 = vector.load %arg4[%c0, %c0_0] : memref<8x128xf32, #tpu.memory_space<vmem>>, vector<1x128xf32>
    %c1 = arith.constant 1 : index
    %c0_1 = arith.constant 0 : index
    %1 = vector.load %arg4[%c1, %c0_1] : memref<8x128xf32, #tpu.memory_space<vmem>>, vector<1x128xf32>
    %c2 = arith.constant 2 : index
    %c0_2 = arith.constant 0 : index
    %2 = vector.load %arg4[%c2, %c0_2] : memref<8x128xf32, #tpu.memory_space<vmem>>, vector<1x128xf32>
    %c3 = arith.constant 3 : index
    %c0_3 = arith.constant 0 : index
    %3 = vector.load %arg4[%c3, %c0_3] : memref<8x128xf32, #tpu.memory_space<vmem>>, vector<1x128xf32>
    %c4 = arith.constant 4 : index
    %c0_4 = arith.constant 0 : index
    %4 = vector.load %arg4[%c4, %c0_4] : memref<8x128xf32, #tpu.memory_space<vmem>>, vector<1x128xf32>
    %cst = arith.constant 0.000000e+00 : f32
    %5 = vector.broadcast %cst : f32 to vector<1x16x384xf32>
    %cst_5 = arith.constant 0.000000e+00 : f32
    %6 = vector.broadcast %cst_5 : f32 to vector<16x1x128xf32>
    %c0_6 = arith.constant 0 : index
    %c0_7 = arith.constant 0 : index
    %c0_8 = arith.constant 0 : index
    %7 = vector.load %arg6[%c0_6, %c0_7, %c0_8] : memref<18x16x384xf32, #tpu.memory_space<vmem>>, vector<1x16x384xf32>
    tpu.vector_store %arg6[%c0_6, %c0_7, %c0_8], %5 {strides = array<i32>} : memref<18x16x384xf32, #tpu.memory_space<vmem>>, vector<1x16x384xf32>,
    %c17 = arith.constant 17 : index
    %c0_9 = arith.constant 0 : index
    %c0_10 = arith.constant 0 : index
    %8 = vector.load %arg6[%c17, %c0_9, %c0_10] : memref<18x16x384xf32, #tpu.memory_space<vmem>>, vector<1x16x384xf32>
    tpu.vector_store %arg6[%c17, %c0_9, %c0_10], %5 {strides = array<i32>} : memref<18x16x384xf32, #tpu.memory_space<vmem>>, vector<1x16x384xf32>,
    %c1_11 = arith.constant 1 : index
    %c0_12 = arith.constant 0 : index
    %c0_13 = arith.constant 0 : index
    %9 = vector.load %arg6[%c1_11, %c0_12, %c0_13] : memref<18x16x384xf32, #tpu.memory_space<vmem>>, vector<16x1x128xf32>
    tpu.vector_store %arg6[%c1_11, %c0_12, %c0_13], %6 {strides = array<i32>} : memref<18x16x384xf32, #tpu.memory_space<vmem>>, vector<16x1x128xf32>,
    %c1_14 = arith.constant 1 : index
    %c15 = arith.constant 15 : index
    %c256 = arith.constant 256 : index
    %10 = vector.load %arg6[%c1_14, %c15, %c256] : memref<18x16x384xf32, #tpu.memory_space<vmem>>, vector<16x1x128xf32>
    tpu.vector_store %arg6[%c1_14, %c15, %c256], %6 {strides = array<i32>} : memref<18x16x384xf32, #tpu.memory_space<vmem>>, vector<16x1x128xf32>,
    %c0_15 = arith.constant 0 : index
    %c0_16 = arith.constant 0 : index
    %c0_17 = arith.constant 0 : index
    %11 = vector.load %arg7[%c0_15, %c0_16, %c0_17] : memref<18x16x384xf32, #tpu.memory_space<vmem>>, vector<1x16x384xf32>
    tpu.vector_store %arg7[%c0_15, %c0_16, %c0_17], %5 {strides = array<i32>} : memref<18x16x384xf32, #tpu.memory_space<vmem>>, vector<1x16x384xf32>,
    %c17_18 = arith.constant 17 : index
    %c0_19 = arith.constant 0 : index
    %c0_20 = arith.constant 0 : index
    %12 = vector.load %arg7[%c17_18, %c0_19, %c0_20] : memref<18x16x384xf32, #tpu.memory_space<vmem>>, vector<1x16x384xf32>
    tpu.vector_store %arg7[%c17_18, %c0_19, %c0_20], %5 {strides = array<i32>} : memref<18x16x384xf32, #tpu.memory_space<vmem>>, vector<1x16x384xf32>,
    %c1_21 = arith.constant 1 : index
    %c0_22 = arith.constant 0 : index
    %c0_23 = arith.constant 0 : index
    %13 = vector.load %arg7[%c1_21, %c0_22, %c0_23] : memref<18x16x384xf32, #tpu.memory_space<vmem>>, vector<16x1x128xf32>
    tpu.vector_store %arg7[%c1_21, %c0_22, %c0_23], %6 {strides = array<i32>} : memref<18x16x384xf32, #tpu.memory_space<vmem>>, vector<16x1x128xf32>,
    %c1_24 = arith.constant 1 : index
    %c15_25 = arith.constant 15 : index
    %c256_26 = arith.constant 256 : index
    %14 = vector.load %arg7[%c1_24, %c15_25, %c256_26] : memref<18x16x384xf32, #tpu.memory_space<vmem>>, vector<16x1x128xf32>
    tpu.vector_store %arg7[%c1_24, %c15_25, %c256_26], %6 {strides = array<i32>} : memref<18x16x384xf32, #tpu.memory_space<vmem>>, vector<16x1x128xf32>,
    %c0_i32 = arith.constant 0 : i32
    %c16_i32 = arith.constant 16 : i32
    %15 = arith.muli %c0_i32, %c16_i32 : i32
    %16 = tpu.assume_multiple %15, 16 : i32
    %c0_27 = arith.constant 0 : index
    %17 = arith.index_cast %16 : i32 to index
    %c0_28 = arith.constant 0 : index
    %c0_29 = arith.constant 0 : index
    %18 = vector.load %arg1[%c0_27, %17, %c0_28, %c0_29] : memref<1x16x16x128xf32, #tpu.memory_space<vmem>>, vector<1x16x16x128xf32>
    %19 = vector.shape_cast %18 : vector<1x16x16x128xf32> to vector<16x16x128xf32>
    %20 = vector.shape_cast %0 : vector<1x128xf32> to vector<1x1x128xf32>
    %21 = vector.broadcast %20 : vector<1x1x128xf32> to vector<16x16x128xf32>
    %22 = arith.mulf %19, %21 : vector<16x16x128xf32>
    %23 = vector.shape_cast %1 : vector<1x128xf32> to vector<1x1x128xf32>
    %24 = vector.broadcast %23 : vector<1x1x128xf32> to vector<16x16x128xf32>
    %25 = arith.addf %22, %24 : vector<16x16x128xf32>
    %c1_i32 = arith.constant 1 : i32
    %26 = arith.addi %16, %c1_i32 : i32
    %27 = arith.index_cast %26 : i32 to index
    %c0_30 = arith.constant 0 : index
    %c128 = arith.constant 128 : index
    %28 = vector.load %arg6[%27, %c0_30, %c128] : memref<18x16x384xf32, #tpu.memory_space<vmem>>, vector<16x16x128xf32>
    tpu.vector_store %arg6[%27, %c0_30, %c128], %25 {strides = array<i32>} : memref<18x16x384xf32, #tpu.memory_space<vmem>>, vector<16x16x128xf32>,
    %29 = vector.extract_strided_slice %25 {offsets = [0, 0, 0], sizes = [16, 15, 128], strides = [1, 1, 1]} : vector<16x16x128xf32> to vector<16x15x128xf32>
    %c1_i32_31 = arith.constant 1 : i32
    %30 = arith.addi %16, %c1_i32_31 : i32
    %31 = arith.index_cast %30 : i32 to index
    %c1_32 = arith.constant 1 : index
    %c0_33 = arith.constant 0 : index
    %32 = vector.load %arg6[%31, %c1_32, %c0_33] : memref<18x16x384xf32, #tpu.memory_space<vmem>>, vector<16x15x128xf32>
    tpu.vector_store %arg6[%31, %c1_32, %c0_33], %29 {strides = array<i32>} : memref<18x16x384xf32, #tpu.memory_space<vmem>>, vector<16x15x128xf32>,
    %33 = vector.extract_strided_slice %25 {offsets = [0, 1, 0], sizes = [16, 15, 128], strides = [1, 1, 1]} : vector<16x16x128xf32> to vector<16x15x128xf32>
    %c1_i32_34 = arith.constant 1 : i32
    %34 = arith.addi %16, %c1_i32_34 : i32
    %35 = arith.index_cast %34 : i32 to index
    %c0_35 = arith.constant 0 : index
    %c256_36 = arith.constant 256 : index
    %36 = vector.load %arg6[%35, %c0_35, %c256_36] : memref<18x16x384xf32, #tpu.memory_space<vmem>>, vector<16x15x128xf32>
    tpu.vector_store %arg6[%35, %c0_35, %c256_36], %33 {strides = array<i32>} : memref<18x16x384xf32, #tpu.memory_space<vmem>>, vector<16x15x128xf32>,
    %c1_i32_37 = arith.constant 1 : i32
    %c0_i32_38 = arith.constant 0 : i32
    %c16_i32_39 = arith.constant 16 : i32
    %37 = arith.muli %c0_i32_38, %c16_i32_39 : i32
    %38 = tpu.assume_multiple %37, 16 : i32
    %cst_40 = arith.constant 0.000000e+00 : f32
    %39 = vector.broadcast %cst_40 : f32 to vector<256x128xf32>
    %c0_i32_41 = arith.constant 0 : i32
    %40 = arith.addi %38, %c0_i32_41 : i32
    %41 = arith.index_cast %40 : i32 to index
    %c0_42 = arith.constant 0 : index
    %c0_43 = arith.constant 0 : index
    %42 = vector.load %arg6[%41, %c0_42, %c0_43] : memref<18x16x384xf32, #tpu.memory_space<vmem>>, vector<16x16x384xf32>
    %43 = vector.shape_cast %42 : vector<16x16x384xf32> to vector<256x384xf32>
    %c0_44 = arith.constant 0 : index
    %c0_45 = arith.constant 0 : index
    %c0_46 = arith.constant 0 : index
    %44 = vector.load %arg2[%c0_44, %c0_45, %c0_46] : memref<3x384x128xf32, #tpu.memory_space<vmem>>, vector<1x384x128xf32>
    %45 = vector.shape_cast %44 : vector<1x384x128xf32> to vector<384x128xf32>
    %cst_47 = arith.constant dense<0.000000e+00> : vector<256x128xf32>
    %46 = tpu.matmul %43, %45, %cst_47 {dimension_numbers = #tpu.dot_dimension_numbers<[1], [0], [0], [1], [0, 0, 1, 1], [], []>} : vector<256x384xf32>, vector<384x128xf32>, vector<256x128xf32> -> vector<256x128xf32>
    %47 = arith.addf %39, %46 : vector<256x128xf32>
    %c1_i32_48 = arith.constant 1 : i32
    %48 = arith.addi %38, %c1_i32_48 : i32
    %49 = arith.index_cast %48 : i32 to index
    %c0_49 = arith.constant 0 : index
    %c0_50 = arith.constant 0 : index
    %50 = vector.load %arg6[%49, %c0_49, %c0_50] : memref<18x16x384xf32, #tpu.memory_space<vmem>>, vector<16x16x384xf32>
    %51 = vector.shape_cast %50 : vector<16x16x384xf32> to vector<256x384xf32>
    %c1_51 = arith.constant 1 : index
    %c0_52 = arith.constant 0 : index
    %c0_53 = arith.constant 0 : index
    %52 = vector.load %arg2[%c1_51, %c0_52, %c0_53] : memref<3x384x128xf32, #tpu.memory_space<vmem>>, vector<1x384x128xf32>
    %53 = vector.shape_cast %52 : vector<1x384x128xf32> to vector<384x128xf32>
    %cst_54 = arith.constant dense<0.000000e+00> : vector<256x128xf32>
    %54 = tpu.matmul %51, %53, %cst_54 {dimension_numbers = #tpu.dot_dimension_numbers<[1], [0], [0], [1], [0, 0, 1, 1], [], []>} : vector<256x384xf32>, vector<384x128xf32>, vector<256x128xf32> -> vector<256x128xf32>
    %55 = arith.addf %47, %54 : vector<256x128xf32>
    %c2_i32 = arith.constant 2 : i32
    %56 = arith.addi %38, %c2_i32 : i32
    %57 = arith.index_cast %56 : i32 to index
    %c0_55 = arith.constant 0 : index
    %c0_56 = arith.constant 0 : index
    %58 = vector.load %arg6[%57, %c0_55, %c0_56] : memref<18x16x384xf32, #tpu.memory_space<vmem>>, vector<16x16x384xf32>
    %59 = vector.shape_cast %58 : vector<16x16x384xf32> to vector<256x384xf32>
    %c2_57 = arith.constant 2 : index
    %c0_58 = arith.constant 0 : index
    %c0_59 = arith.constant 0 : index
    %60 = vector.load %arg2[%c2_57, %c0_58, %c0_59] : memref<3x384x128xf32, #tpu.memory_space<vmem>>, vector<1x384x128xf32>
    %61 = vector.shape_cast %60 : vector<1x384x128xf32> to vector<384x128xf32>
    %cst_60 = arith.constant dense<0.000000e+00> : vector<256x128xf32>
    %62 = tpu.matmul %59, %61, %cst_60 {dimension_numbers = #tpu.dot_dimension_numbers<[1], [0], [0], [1], [0, 0, 1, 1], [], []>} : vector<256x384xf32>, vector<384x128xf32>, vector<256x128xf32> -> vector<256x128xf32>
    %63 = arith.addf %55, %62 : vector<256x128xf32>
    %64 = vector.broadcast %2 : vector<1x128xf32> to vector<256x128xf32>
    %65 = arith.addf %63, %64 : vector<256x128xf32>
    %cst_61 = arith.constant 0.000000e+00 : f32
    %66 = vector.broadcast %cst_61 : f32 to vector<256x128xf32>
    %67 = arith.cmpf oge, %65, %66 : vector<256x128xf32>
    %68 = vector.broadcast %3 : vector<1x128xf32> to vector<256x128xf32>
    %69 = arith.mulf %68, %65 : vector<256x128xf32>
    %70 = arith.select %67, %65, %69 : vector<256x128xi1>, vector<256x128xf32>
    %71 = vector.shape_cast %70 : vector<256x128xf32> to vector<16x16x128xf32>
    %c1_i32_62 = arith.constant 1 : i32
    %72 = arith.addi %38, %c1_i32_62 : i32
    %73 = arith.index_cast %72 : i32 to index
    %c0_63 = arith.constant 0 : index
    %c128_64 = arith.constant 128 : index
    %74 = vector.load %arg7[%73, %c0_63, %c128_64] : memref<18x16x384xf32, #tpu.memory_space<vmem>>, vector<16x16x128xf32>
    tpu.vector_store %arg7[%73, %c0_63, %c128_64], %71 {strides = array<i32>} : memref<18x16x384xf32, #tpu.memory_space<vmem>>, vector<16x16x128xf32>,
    %75 = vector.extract_strided_slice %71 {offsets = [0, 0, 0], sizes = [16, 15, 128], strides = [1, 1, 1]} : vector<16x16x128xf32> to vector<16x15x128xf32>
    %c1_i32_65 = arith.constant 1 : i32
    %76 = arith.addi %38, %c1_i32_65 : i32
    %77 = arith.index_cast %76 : i32 to index
    %c1_66 = arith.constant 1 : index
    %c0_67 = arith.constant 0 : index
    %78 = vector.load %arg7[%77, %c1_66, %c0_67] : memref<18x16x384xf32, #tpu.memory_space<vmem>>, vector<16x15x128xf32>
    tpu.vector_store %arg7[%77, %c1_66, %c0_67], %75 {strides = array<i32>} : memref<18x16x384xf32, #tpu.memory_space<vmem>>, vector<16x15x128xf32>,
    %79 = vector.extract_strided_slice %71 {offsets = [0, 1, 0], sizes = [16, 15, 128], strides = [1, 1, 1]} : vector<16x16x128xf32> to vector<16x15x128xf32>
    %c1_i32_68 = arith.constant 1 : i32
    %80 = arith.addi %38, %c1_i32_68 : i32
    %81 = arith.index_cast %80 : i32 to index
    %c0_69 = arith.constant 0 : index
    %c256_70 = arith.constant 256 : index
    %82 = vector.load %arg7[%81, %c0_69, %c256_70] : memref<18x16x384xf32, #tpu.memory_space<vmem>>, vector<16x15x128xf32>
    tpu.vector_store %arg7[%81, %c0_69, %c256_70], %79 {strides = array<i32>} : memref<18x16x384xf32, #tpu.memory_space<vmem>>, vector<16x15x128xf32>,
    %c1_i32_71 = arith.constant 1 : i32
    %c0_i32_72 = arith.constant 0 : i32
    %c16_i32_73 = arith.constant 16 : i32
    %83 = arith.muli %c0_i32_72, %c16_i32_73 : i32
    %84 = tpu.assume_multiple %83, 16 : i32
    %cst_74 = arith.constant 0.000000e+00 : f32
    %85 = vector.broadcast %cst_74 : f32 to vector<256x128xf32>
    %c0_i32_75 = arith.constant 0 : i32
    %86 = arith.addi %84, %c0_i32_75 : i32
    %87 = arith.index_cast %86 : i32 to index
    %c0_76 = arith.constant 0 : index
    %c0_77 = arith.constant 0 : index
    %88 = vector.load %arg7[%87, %c0_76, %c0_77] : memref<18x16x384xf32, #tpu.memory_space<vmem>>, vector<16x16x384xf32>
    %89 = vector.shape_cast %88 : vector<16x16x384xf32> to vector<256x384xf32>
    %c0_78 = arith.constant 0 : index
    %c0_79 = arith.constant 0 : index
    %c0_80 = arith.constant 0 : index
    %90 = vector.load %arg3[%c0_78, %c0_79, %c0_80] : memref<3x384x128xf32, #tpu.memory_space<vmem>>, vector<1x384x128xf32>
    %91 = vector.shape_cast %90 : vector<1x384x128xf32> to vector<384x128xf32>
    %cst_81 = arith.constant dense<0.000000e+00> : vector<256x128xf32>
    %92 = tpu.matmul %89, %91, %cst_81 {dimension_numbers = #tpu.dot_dimension_numbers<[1], [0], [0], [1], [0, 0, 1, 1], [], []>} : vector<256x384xf32>, vector<384x128xf32>, vector<256x128xf32> -> vector<256x128xf32>
    %93 = arith.addf %85, %92 : vector<256x128xf32>
    %c1_i32_82 = arith.constant 1 : i32
    %94 = arith.addi %84, %c1_i32_82 : i32
    %95 = arith.index_cast %94 : i32 to index
    %c0_83 = arith.constant 0 : index
    %c0_84 = arith.constant 0 : index
    %96 = vector.load %arg7[%95, %c0_83, %c0_84] : memref<18x16x384xf32, #tpu.memory_space<vmem>>, vector<16x16x384xf32>
    %97 = vector.shape_cast %96 : vector<16x16x384xf32> to vector<256x384xf32>
    %c1_85 = arith.constant 1 : index
    %c0_86 = arith.constant 0 : index
    %c0_87 = arith.constant 0 : index
    %98 = vector.load %arg3[%c1_85, %c0_86, %c0_87] : memref<3x384x128xf32, #tpu.memory_space<vmem>>, vector<1x384x128xf32>
    %99 = vector.shape_cast %98 : vector<1x384x128xf32> to vector<384x128xf32>
    %cst_88 = arith.constant dense<0.000000e+00> : vector<256x128xf32>
    %100 = tpu.matmul %97, %99, %cst_88 {dimension_numbers = #tpu.dot_dimension_numbers<[1], [0], [0], [1], [0, 0, 1, 1], [], []>} : vector<256x384xf32>, vector<384x128xf32>, vector<256x128xf32> -> vector<256x128xf32>
    %101 = arith.addf %93, %100 : vector<256x128xf32>
    %c2_i32_89 = arith.constant 2 : i32
    %102 = arith.addi %84, %c2_i32_89 : i32
    %103 = arith.index_cast %102 : i32 to index
    %c0_90 = arith.constant 0 : index
    %c0_91 = arith.constant 0 : index
    %104 = vector.load %arg7[%103, %c0_90, %c0_91] : memref<18x16x384xf32, #tpu.memory_space<vmem>>, vector<16x16x384xf32>
    %105 = vector.shape_cast %104 : vector<16x16x384xf32> to vector<256x384xf32>
    %c2_92 = arith.constant 2 : index
    %c0_93 = arith.constant 0 : index
    %c0_94 = arith.constant 0 : index
    %106 = vector.load %arg3[%c2_92, %c0_93, %c0_94] : memref<3x384x128xf32, #tpu.memory_space<vmem>>, vector<1x384x128xf32>
    %107 = vector.shape_cast %106 : vector<1x384x128xf32> to vector<384x128xf32>
    %cst_95 = arith.constant dense<0.000000e+00> : vector<256x128xf32>
    %108 = tpu.matmul %105, %107, %cst_95 {dimension_numbers = #tpu.dot_dimension_numbers<[1], [0], [0], [1], [0, 0, 1, 1], [], []>} : vector<256x384xf32>, vector<384x128xf32>, vector<256x128xf32> -> vector<256x128xf32>
    %109 = arith.addf %101, %108 : vector<256x128xf32>
    %110 = vector.broadcast %4 : vector<1x128xf32> to vector<256x128xf32>
    %111 = arith.addf %109, %110 : vector<256x128xf32>
    %112 = vector.shape_cast %111 : vector<256x128xf32> to vector<16x16x128xf32>
    %c0_96 = arith.constant 0 : index
    %113 = arith.index_cast %84 : i32 to index
    %c0_97 = arith.constant 0 : index
    %c0_98 = arith.constant 0 : index
    %114 = vector.load %arg1[%c0_96, %113, %c0_97, %c0_98] : memref<1x16x16x128xf32, #tpu.memory_space<vmem>>, vector<1x16x16x128xf32>
    %115 = vector.shape_cast %114 : vector<1x16x16x128xf32> to vector<16x16x128xf32>
    %116 = arith.addf %112, %115 : vector<16x16x128xf32>
    %c0_99 = arith.constant 0 : index
    %117 = arith.index_cast %84 : i32 to index
    %c0_100 = arith.constant 0 : index
    %c0_101 = arith.constant 0 : index
    %118 = vector.load %arg5[%c0_99, %117, %c0_100, %c0_101] : memref<1x16x16x128xf32, #tpu.memory_space<vmem>>, vector<1x16x16x128xf32>
    %119 = vector.shape_cast %118 : vector<1x16x16x128xf32> to vector<16x16x128xf32>
    %120 = vector.shape_cast %116 : vector<16x16x128xf32> to vector<1x16x16x128xf32>
    tpu.vector_store %arg5[%c0_99, %117, %c0_100, %c0_101], %120 {strides = array<i32>} : memref<1x16x16x128xf32, #tpu.memory_space<vmem>>, vector<1x16x16x128xf32>,
    %c1_i32_102 = arith.constant 1 : i32
    return
  }
  func.func @transform_0(%arg0: i32) -> (i32, i32, i32, i32) {
    %c0_i32 = arith.constant 0 : i32
    %c0_i32_0 = arith.constant 0 : i32
    %c0_i32_1 = arith.constant 0 : i32
    %c0_i32_2 = arith.constant 0 : i32
    return %arg0, %c0_i32, %c0_i32_0, %c0_i32_1 : i32, i32, i32, i32
  }
  func.func @transform_1(%arg0: i32) -> (i32, i32, i32) {
    %c0_i32 = arith.constant 0 : i32
    %c0_i32_0 = arith.constant 0 : i32
    %c0_i32_1 = arith.constant 0 : i32
    %c0_i32_2 = arith.constant 0 : i32
    return %c0_i32, %c0_i32_0, %c0_i32_1 : i32, i32, i32
  }
  func.func @transform_2(%arg0: i32) -> (i32, i32, i32) {
    %c0_i32 = arith.constant 0 : i32
    %c0_i32_0 = arith.constant 0 : i32
    %c0_i32_1 = arith.constant 0 : i32
    %c0_i32_2 = arith.constant 0 : i32
    return %c0_i32, %c0_i32_0, %c0_i32_1 : i32, i32, i32
  }
  func.func @transform_3(%arg0: i32) -> (i32, i32) {
    %c0_i32 = arith.constant 0 : i32
    %c0_i32_0 = arith.constant 0 : i32
    %c0_i32_1 = arith.constant 0 : i32
    return %c0_i32, %c0_i32_0 : i32, i32
  }
  func.func @transform_4(%arg0: i32) -> (i32, i32, i32, i32) {
    %c0_i32 = arith.constant 0 : i32
    %c0_i32_0 = arith.constant 0 : i32
    %c0_i32_1 = arith.constant 0 : i32
    %c0_i32_2 = arith.constant 0 : i32
    return %arg0, %c0_i32, %c0_i32_0, %c0_i32_1 : i32, i32, i32, i32
  }
}

</mosaic_0001>

<bundles_post_ra>
// kernel: tpu_custom_call.1
= control target key start
LH: loop header
LB: loop body
LE: loop exit
PB: predicated region body
PF: predicated region fallthrough
CT: control target
= control target key end

     0   :  { %9 = vsyncpa [#allocation5], 0  ;;  %s7246_s0 = inlined_call_operand.hbm [shape: f32[2,16,16,128], index: 0, kind: input, shape index: {}]   ;;  %s7247_s1 = inlined_call_operand.hbm [shape: f32[3,384,128], index: 1, kind: input, shape index: {}]   ;;  %s7248_s2 = inlined_call_operand.hbm [shape: f32[3,384,128], index: 2, kind: input, shape index: {}]   ;;  %s7249_s3 = inlined_call_operand.hbm [shape: f32[8,128], index: 3, kind: input, shape index: {}]   ;;  %s7250_s4 = inlined_call_operand.hbm [shape: f32[2,16,16,128], index: 4, kind: output, shape index: {}]  }
   0x1   :  { %11 = vsyncpa [#allocation5 + $0x1], 0 }
   0x2   :  { %12 = vsyncpa [#allocation8], 0 }
   0x3   :  { %13 = vsyncpa [#allocation11], 0 }
   0x4   :  { %14 = vsyncpa [#allocation6], 0 }
   0x5   :  { %16 = vsyncpa [#allocation6 + $0x1], 0  ;;  %s4800_s15 = smov 0   ;;  %s4802_s16 = smov 0  }
   0x6   :  { %s4804_s17 = smov 0   ;;  %s4806_s18 = smov 0  }
   0x7 LB: > { %s4821_s19 = sadd.s32 4294967295, %s4765_s18   ;;  %s4406_s20 = sadd.s32 4294967294, %s4765_s18   ;;  %s4765_s18 = sphi %s4806_s18, %s7406_s18   ;;  %s4761_s17 = sphi %s4804_s17, %s7405_s17   ;;  %s4757_s16 = sphi %s4802_s16, %s7404_s16   ;;  %s4753_s15 = sphi %s4800_s15, %s7403_s15  }
   0x8   : > { %p42_p0 = scmp.ne.s32.totalorder %s4757_s16, %s4753_s15  ;;  %p43_p1 = scmp.eq.s32.totalorder %s4821_s19, 0 }
   0x9   : > { %p129_p2 = scmp.eq.s32.totalorder %s4821_s19, 1  ;;  %p135_p3 = scmp.eq.s32.totalorder %s4406_s20, 1 }
   0xa   : > { %p4830_p4 = por %p43_p1, %p42_p0  ;;  %p4407_p5 = scmp.ge.s32.totalorder %s4765_s18, 1 }
   0xb   : > { %p4835_p6 = por %p135_p3, %p42_p0  ;;  %p142_p7 = scmp.lt.s32.totalorder %s4765_s18, 3 }
   0xc   : > { %s153_s25 = sshll.u32 %s7247_s1, 4  ;;  %s4767_s27 = smov [#allocation7]   ;;  %s154_s25 = int_to_ptr.hbm [resolvable:$true] %s153_s25 }
   0xd   : > { %p4843_p8 = pnand %p4407_p5, %p142_p7  ;;  %s155_s28 = sshll.u32 %s4767_s27, 4  ;;  %s156_s28 = int_to_ptr.vmem [resolvable:$true] %s155_s28 }
   0xe   : > { %s167_s6 = sshll.u32 %s7248_s2, 4  ;;  %s4768_s7 = smov 128   ;;  %s168_s6 = int_to_ptr.hbm [resolvable:$true] %s167_s6 }
   0xf   : > { %p4476_p9 = pneg %p4843_p8  ;;  %s4769_s8 = smov 8  }
  0x10   : > { %s4770_s9 = smov [#allocation9]   ;;  %s182_s13 = sshll.u32 %s7249_s3, 4  ;;  %s183_s13 = int_to_ptr.hbm [resolvable:$true] %s182_s13 }
  0x11   : > { %p4851_p10 = pnand %p4476_p9, %p43_p1  ;;  %s169_s10 = sshll.u32 %s4770_s9, 4  ;;  %s170_s10 = int_to_ptr.vmem [resolvable:$true] %s169_s10 }
  0x12   : > { %s4771_s14 = smov [#allocation10]   ;;  %s4873_s23 = sadd.s32 1, %s4765_s18  }
  0x13   : > { %4479 = dma.hbm_to_vmem [thread:$0]  (!%p4851_p10), %s154_s25, 18432, %s156_s28, [#allocation8], %s4768_s7, %s4768_s7, %s4769_s8  }
  0x14   : > { %4482 = dma.hbm_to_vmem [thread:$0]  (!%p4851_p10), %s168_s6, 18432, %s170_s10, [#allocation8], %s4768_s7, %s4768_s7, %s4769_s8  }
  0x15   : > { %s184_s20 = sshll.u32 %s4771_s14, 4  ;;  %s26_s24 = ssub.s32 %s4765_s18, %s4873_s23  ;;  %s185_s20 = int_to_ptr.vmem [resolvable:$true] %s184_s20 }
  0x16   : > { %4485 = dma.hbm_to_vmem [thread:$0]  (!%p4851_p10), %s183_s13, 128, %s185_s20, [#allocation11]  }
  0x17   : > { %s29_s25 = sadd.s32 1, %s4761_s17  ;;  %p27_p12 = scmp.eq.s32.totalorder %s26_s24, 0 }
  0x18   : > { %p36_p13 = scmp.ne.s32.totalorder %s4761_s17, %s4757_s16  ;;  %p37_p0 = scmp.eq.s32.totalorder %s4765_s18, 0 }
  0x19   : > { %s4884_s27 = scalar_select %p27_p12, %s4761_s17, %s29_s25  }
  0x1a   : > { %p4888_p3 = por %p129_p2, %p36_p13  ;;  %p4497_p5 = scmp.lt.s32.totalorder %s4765_s18, 2 }
  0x1b   : > { %s195_s30 = sand.u32 1, %s4761_s17   ;;  %s4426_s5 = sshll.u32 %s4765_s18, 8 }
  0x1c   : > { %p38_p7 = por %p37_p0, %p36_p13  ;;  %s4412_s6 = sshll.u32 %s195_s30, 8 }
  0x1d   : > { %s204_s10 = scalar_lea.hbm %s7246_s0, %s4426_s5  ;;  %s199_s12 = scalar_lea.vmem [#allocation4], %s4412_s6 }
  0x1e   : > { %s205_s11 = sshll.u32 %s204_s10, 4  ;;  %s207_s13 = sshll.u32 %s199_s12, 4  ;;  %s206_s11 = int_to_ptr.hbm [resolvable:$true] %s205_s11  ;;  %s208_s13 = int_to_ptr.vmem [resolvable:$true] %s207_s13 }
  0x1f   : > { %p4898_p9 = pnand %p4497_p5, %p38_p7  ;;  %s196_s20 = scalar_lea.sflag [#allocation5], %s195_s30 }
  0x20   : > { %s4661_s24 = sshra.s32 %s206_s11, 4  ;;  %s4668_s6 = scalar_lea.hbm %s7246_s0, 512  ;;  %s4662_s24 = int_to_ptr.hbm [resolvable:$true] %s4661_s24 }
  0x21   : > { %s4663_s25 = scalar_lea.hbm %s4662_s24, 256  ;;  %p4665_p10 = pneg %p4898_p9 }
  0x22   : > { %p4664_p2 = scmp.ne.s32.totalorder %s4662_s24, %s4663_s25  ;;  %p4669_p0 = scmp.lt.s32.totalorder %s4662_s24, %s7246_s0 }
  0x23   : > { %p4670_p5 = scmp.lt.s32.totalorder %s4668_s6, %s4663_s25 }
  0x24   : > { %p4666_p12 = pnand %p4665_p10, %p4664_p2 }
  0x25   : > { %p4671_p7 = por %p4670_p5, %p4669_p0 }
  0x26   : > { %p4667_p13 = pneg %p4666_p12 }
  0x28   : > { %p4672_p11 = pnand %p4671_p7, %p4667_p13 }
  0x2a   : > { %4675 = shalt.err (!%p4672_p11)
}
  0x2b   : > { %4489 = dma.hbm_to_vmem [thread:$0]  (!%p4898_p9), %s206_s11, 4096, %s208_s13, %s196_s20, %s4768_s7, %s4768_s7, %s4769_s8  }
  0x2c   : > { %219 = sbr.rel (%p4843_p8) target bundleno = 1567 (0x61f), region = 36 }
  0x31   : > { %s4918_s30 = sand.u32 1, %s4757_s16  }
  0x32   : > { %s4416_s12 = sshll.u32 %s4918_s30, 8  ;;  %s222_s24 = scalar_lea.sflag [#allocation5], %s4918_s30 }
  0x33   : > { %s4924_s25 = scalar_lea.vmem [#allocation4], %s4416_s12 }
  0x34   : > { %4736 = dma.done.wait (%p4830_p4), %s222_s24, 4096  }
  0x35   : > { %4738 = vsyncadd (%p4830_p4), %s222_s24, 4294963200 }
  0x36   : > { %4740 = dma.done.wait (%p43_p1), [#allocation8], 36864  }
  0x37   : > { %4742 = vsyncadd (%p43_p1), [#allocation8], 4294930432 }
  0x38   : > { %4744 = dma.done.wait (%p43_p1), [#allocation11], 128  }
  0x39   : > { %4746 = vsyncadd (%p43_p1), [#allocation11], 4294967168  ;;  %v4772_v0 = vmov 0.0   ;;  %v1016_v1 = vld [vmem:[#allocation7 + $0x1f8] sm:$0xff]  ;;  %v1015_v3 = vld [vmem:[#allocation7 + $0x1f0] sm:$0xff]  ;;  %vm531_vm0 = vcmask 1040384  }
  0x3a   : > { %285 = vst [vmem:[#allocation2 + $0x30] sm:$0x1] %v4772_v0  ;;  %v1032_v2 = vld [vmem:[#allocation7 + $0x278] sm:$0xff]  ;;  %1049 = vmatpush.msra.mxu0 %v1016_v1  ;;  %4428 = vmatpush.msra.mxu2 %v1016_v1  ;;  %v1031_v4 = vld [vmem:[#allocation7 + $0x270] sm:$0xff]  ;;  %v1014_v5 = vld [vmem:[#allocation7 + $0x1e8] sm:$0xff]  ;;  %vm644_vm1 = vcmask 1046528  }
  0x3b   : > { %271 = vst [vmem:[#allocation2] sm:$0xff] %v4772_v0  ;;  %4444 = vmatpush.msra.mxu3 %v1032_v2  ;;  %1162 = vmatpush.msra.mxu1 %v1032_v2  ;;  %v1030_v6 = vld [vmem:[#allocation7 + $0x268] sm:$0xff]  ;;  %v1013_v7 = vld [vmem:[#allocation7 + $0x1e0] sm:$0xff]  ;;  %v1012_v9 = vld [vmem:[#allocation7 + $0x1d8] sm:$0xff]  ;;  %s6976_s21 = scalar_lea.vmem [#allocation12], %s4416_s12  ;;  %s4427_s26 = sshll.u32 %s4821_s19, 8 }
  0x3c   : > { %1050 = vmatpush.msra.mxu0 %v1015_v3  ;;  %4429 = vmatpush.msra.mxu2 %v1015_v3  ;;  %v1029_v8 = vld [vmem:[#allocation7 + $0x260] sm:$0xff]  ;;  %v1028_v10 = vld [vmem:[#allocation7 + $0x258] sm:$0xff]  ;;  %286 = vst [vmem:[#allocation2 + $0x60] sm:$0x1] %v4772_v0  ;;  %v1011_v11 = vld [vmem:[#allocation7 + $0x1d0] sm:$0xff]  ;;  %s4296_s11 = scalar_lea.hbm %s7250_s4, %s4427_s26  ;;  %s4297_s13 = sshll.u32 %s6976_s21, 4  ;;  %s4298_s13 = int_to_ptr.vmem [resolvable:$true] %s4297_s13 }
  0x3d   : > { %4445 = vmatpush.msra.mxu3 %v1031_v4  ;;  %1163 = vmatpush.msra.mxu1 %v1031_v4  ;;  %287 = vst [vmem:[#allocation2 + $0x90] sm:$0x1] %v4772_v0  ;;  %v1027_v12 = vld [vmem:[#allocation7 + $0x250] sm:$0xff]  ;;  %v1010_v13 = vld [vmem:[#allocation7 + $0x1c8] sm:$0xff]  ;;  %v365_v15 = vld [vmem:[%s4924_s25] sm:$0xff]  ;;  %s4299_s14 = sshll.u32 %s4296_s11, 4  ;;  %s4300_s14 = int_to_ptr.hbm [resolvable:$true] %s4299_s14 }
  0x3e   : > { %1051 = vmatpush.msra.mxu0 %v1014_v5  ;;  %4430 = vmatpush.msra.mxu2 %v1014_v5  ;;  %288 = vst [vmem:[#allocation2 + $0xc0] sm:$0x1] %v4772_v0  ;;  %v1026_v14 = vld [vmem:[#allocation7 + $0x248] sm:$0xff]  ;;  %v4945_v16 = vld [vmem:[#allocation10] ss:$0 sm:$0xff]  ;;  %v1008_v21 = vld [vmem:[#allocation7 + $0x1b8] sm:$0xff] }
  0x3f   : > { %4446 = vmatpush.msra.mxu3 %v1030_v6  ;;  %1164 = vmatpush.msra.mxu1 %v1030_v6  ;;  %289 = vst [vmem:[#allocation2 + $0xf0] sm:$0x1] %v4772_v0  ;;  %v1009_v17 = vld [vmem:[#allocation7 + $0x1c0] sm:$0xff]  ;;  %v398_v20 = vmul.f32 %v4945_v16, %v365_v15  ;;  %v1024_v22 = vld [vmem:[#allocation7 + $0x238] sm:$0xff]  ;;  %v1007_v24 = vld [vmem:[#allocation7 + $0x1b0] sm:$0xff]  ;;  %s4285_s19 = scalar_lea.sflag [#allocation6], %s4918_s30 }
  0x40   : > { %1052 = vmatpush.msra.mxu0 %v1013_v7  ;;  %4431 = vmatpush.msra.mxu2 %v1013_v7  ;;  %v1025_v18 = vld [vmem:[#allocation7 + $0x240] sm:$0xff]  ;;  %290 = vst [vmem:[#allocation2 + $0x120] sm:$0x1] %v4772_v0  ;;  %v1023_v25 = vld [vmem:[#allocation7 + $0x230] sm:$0xff]  ;;  %v1006_v27 = vld [vmem:[#allocation7 + $0x1a8] sm:$0xff]  ;;  %s4705_s20 = sshra.s32 %s4300_s14, 4  ;;  %s4706_s20 = int_to_ptr.hbm [resolvable:$true] %s4705_s20 }
  0x41   : > { %4447 = vmatpush.msra.mxu3 %v1029_v8  ;;  %1165 = vmatpush.msra.mxu1 %v1029_v8  ;;  %v4947_v19 = vld [vmem:[#allocation10 + $0x1] ss:$0 sm:$0xff]  ;;  %291 = vst [vmem:[#allocation2 + $0x150] sm:$0x1] %v4772_v0  ;;  %v1022_v28 = vld [vmem:[#allocation7 + $0x228] sm:$0xff]  ;;  %v1004_v31 = vld [vmem:[#allocation7 + $0x198] sm:$0xff]  ;;  %p4712_p11 = scmp.lt.s32.totalorder %s4706_s20, %s7250_s4 }
  0x42   : > { %1053 = vmatpush.msra.mxu0 %v1012_v9  ;;  %4432 = vmatpush.msra.mxu2 %v1012_v9  ;;  %292 = vst [vmem:[#allocation2 + $0x180] sm:$0x1] %v4772_v0  ;;  %v4954_v23 = vadd.f32 %v4947_v19, %v398_v20  ;;  %v1005_v29 = vld [vmem:[#allocation7 + $0x1a0] sm:$0xff]  ;;  %v1020_v32 = vld [vmem:[#allocation7 + $0x218] sm:$0xff]  ;;  %v1003_v33 = vld [vmem:[#allocation7 + $0x190] sm:$0xff]  ;;  %s4707_s5 = scalar_lea.hbm %s4706_s20, 256 }
  0x43   : > { %4448 = vmatpush.msra.mxu3 %v1028_v10  ;;  %1166 = vmatpush.msra.mxu1 %v1028_v10  ;;  %293 = vst [vmem:[#allocation2 + $0x1b0] sm:$0x1] %v4772_v0  ;;  %v1021_v30 = vld [vmem:[#allocation7 + $0x220] sm:$0xff]  ;;  %v1019_v35 = vld [vmem:[#allocation7 + $0x210] sm:$0xff]  ;;  %v1002_v36 = vld [vmem:[#allocation7 + $0x188] sm:$0xff]  ;;  %p4708_p1 = scmp.ne.s32.totalorder %s4706_s20, %s4707_s5  ;;  %s4711_s9 = scalar_lea.hbm %s7250_s4, 512 }
  0x44   : > { %1054 = vmatpush.msra.mxu0 %v1011_v11  ;;  %4433 = vmatpush.msra.mxu2 %v1011_v11  ;;  %294 = vst [vmem:[#allocation2 + $0x1e0] sm:$0x1] %v4772_v0  ;;  %v532_v26 = vrot.slane %v4954_v23, 7  ;;  %v381_v34 = vld [vmem:[%s4924_s25 + $0x80] sm:$0xff]  ;;  %v1018_v37 = vld [vmem:[#allocation7 + $0x208] sm:$0xff]  ;;  %v1048_v43 = vld [vmem:[#allocation7 + $0x2f8] sm:$0xff]  ;;  %p4713_p9 = scmp.lt.s32.totalorder %s4711_s9, %s4707_s5 }
  0x45   : > { %4449 = vmatpush.msra.mxu3 %v1027_v12  ;;  %1167 = vmatpush.msra.mxu1 %v1027_v12  ;;  %295 = vst [vmem:[#allocation2 + $0x210] sm:$0x1] %v4772_v0  ;;  %v414_v38 = vmul.f32 %v4945_v16, %v381_v34  ;;  %v1001_v39 = vld [vmem:[#allocation7 + $0x180] sm:$0xff]  ;;  %v871_v44 = vld [vmem:[#allocation7 + $0x78] sm:$0xff]  ;;  %v366_v45 = vld [vmem:[%s4924_s25 + $0x8] sm:$0xff]  ;;  %p4709_p4 = pnand %p4708_p1, %p4888_p3 }
  0x46   : > { %1055 = vmatpush.msra.mxu0 %v1010_v13  ;;  %4434 = vmatpush.msra.mxu2 %v1010_v13  ;;  %296 = vst [vmem:[#allocation2 + $0x240] sm:$0x1] %v4772_v0  ;;  %v1017_v40 = vld [vmem:[#allocation7 + $0x200] sm:$0xff]  ;;  %v399_v46 = vmul.f32 %v4945_v16, %v366_v45  ;;  %v382_v47 = vld [vmem:[%s4924_s25 + $0x88] sm:$0xff]  ;;  %v367_v51 = vld [vmem:[%s4924_s25 + $0x10] sm:$0xff]  ;;  %p4714_p2 = por %p4713_p9, %p4712_p11 }
  0x47   : > { %4450 = vmatpush.msra.mxu3 %v1026_v14  ;;  %1168 = vmatpush.msra.mxu1 %v1026_v14  ;;  %612 = vst [vmem:[#allocation2 + $0x30] sm:$0xfe] %v532_v26  ;;  %v4978_v42 = vadd.f32 %v4947_v19, %v414_v38  ;;  %v415_v48 = vmul.f32 %v4945_v16, %v382_v47  ;;  %v383_v53 = vld [vmem:[%s4924_s25 + $0x90] sm:$0xff]  ;;  %v887_v58 = vld [vmem:[#allocation7 + $0xf8] sm:$0xff]  ;;  %v1046_v62 = vld [vmem:[#allocation7 + $0x2e8] sm:$0xff]  ;;  %p4710_p8 = pneg %p4709_p4 }
  0x48   : > { %1056 = vmatpush.msra.mxu0 %v1009_v17  ;;  %4435 = vmatpush.msra.mxu2 %v1009_v17  ;;  %297 = vst [vmem:[#allocation2 + $0x270] sm:$0x1] %v4772_v0  ;;  %v5008_v49 = vadd.f32 %v4947_v19, %v399_v46  ;;  %v400_v55 = vmul.f32 %v4945_v16, %v367_v51  ;;  %v1047_v56 = vld [vmem:[#allocation7 + $0x2f0] sm:$0xff]  ;;  %v869_v63 = vld [vmem:[#allocation7 + $0x68] sm:$0xff]  ;;  %v368_v2 = vld [vmem:[%s4924_s25 + $0x18] sm:$0xff] }
  0x49   : > { %4451 = vmatpush.msra.mxu3 %v1025_v18  ;;  %1169 = vmatpush.msra.mxu1 %v1025_v18  ;;  %298 = vst [vmem:[#allocation2 + $0x2a0] sm:$0x1] %v4772_v0  ;;  %v5012_v50 = vadd.f32 %v4947_v19, %v415_v48  ;;  %v870_v57 = vld [vmem:[#allocation7 + $0x70] sm:$0xff]  ;;  %v416_v59 = vmul.f32 %v4945_v16, %v383_v53  ;;  %v384_v3 = vld [vmem:[%s4924_s25 + $0x98] sm:$0xff]  ;;  %v556_v6 = vrot.slane %v4978_v42, 7  ;;  %v369_v9 = vld [vmem:[%s4924_s25 + $0x20] sm:$0xff]  ;;  %p4715_p10 = pnand %p4714_p2, %p4710_p8 }
  0x4a   : > { %1057 = vmatpush.msra.mxu0 %v1008_v21  ;;  %4436 = vmatpush.msra.mxu2 %v1008_v21  ;;  %299 = vst [vmem:[#allocation2 + $0x2d0] sm:$0x1] %v4772_v0  ;;  %v533_v52 = vrot.slane %v5008_v49, 7  ;;  %v5035_v60 = vadd.f32 %v4947_v19, %v400_v55  ;;  %v886_v1 = vld [vmem:[#allocation7 + $0xf0] sm:$0xff]  ;;  %v401_v4 = vmul.f32 %v4945_v16, %v368_v2  ;;  %v385_v10 = vld [vmem:[%s4924_s25 + $0xa0] sm:$0xff]  ;;  %v885_v14 = vld [vmem:[#allocation7 + $0xe8] sm:$0xff] }
  0x4b   : > { %4452 = vmatpush.msra.mxu3 %v1024_v22  ;;  %1170 = vmatpush.msra.mxu1 %v1024_v22  ;;  %300 = vst [vmem:[#allocation2 + $0x300] sm:$0x1] %v4772_v0  ;;  %v5039_v61 = vadd.f32 %v4947_v19, %v416_v59  ;;  %v417_v5 = vmul.f32 %v4945_v16, %v384_v3  ;;  %v557_v11 = vrot.slane %v5012_v50, 7  ;;  %v1045_v12 = vld [vmem:[#allocation7 + $0x2e0] sm:$0xff]  ;;  %v387_v38 = vld [vmem:[%s4924_s25 + $0xb0] sm:$0xff]  ;;  %v883_v51 = vld [vmem:[#allocation7 + $0xd8] sm:$0xff] }
  0x4c   : > { %1058 = vmatpush.msra.mxu0 %v1007_v24  ;;  %4437 = vmatpush.msra.mxu2 %v1007_v24  ;;  %301 = vst [vmem:[#allocation2 + $0x5f] sm:$0x1] %v4772_v0  ;;  %v5025_v54 = vsel %vm531_vm0, %v532_v26, %v533_v52  ;;  %v5057_v7 = vadd.f32 %v4947_v19, %v401_v4  ;;  %v868_v13 = vld [vmem:[#allocation7 + $0x60] sm:$0xff]  ;;  %v535_v18 = vrot.slane %v5035_v60, 7  ;;  %v1043_v48 = vld [vmem:[#allocation7 + $0x2d0] sm:$0xff]  ;;  %v1042_v59 = vld [vmem:[#allocation7 + $0x2c8] sm:$0xff] }
  0x4d   : > { %4453 = vmatpush.msra.mxu3 %v1023_v25  ;;  %1171 = vmatpush.msra.mxu1 %v1023_v25  ;;  %302 = vst [vmem:[#allocation2 + $0x8f] sm:$0x1] %v4772_v0  ;;  %v450_v8 = vadd.f32 %v4947_v19, %v417_v5  ;;  %v402_v15 = vmul.f32 %v4945_v16, %v369_v9  ;;  %v559_v20 = vrot.slane %v5039_v61, 7  ;;  %v373_v2 = vld [vmem:[%s4924_s25 + $0x40] sm:$0xff] }
  0x4e   : > { %1059 = vmatpush.msra.mxu0 %v1006_v27  ;;  %4438 = vmatpush.msra.mxu2 %v1006_v27  ;;  %303 = vst [vmem:[#allocation2 + $0xbf] sm:$0x1] %v4772_v0  ;;  %v904_v41 = vld [vmem:[#allocation2 + $0x30] sm:$0xff]  ;;  %v418_v17 = vmul.f32 %v4945_v16, %v385_v10  ;;  %v536_v24 = vrot.slane %v5057_v7, 7  ;;  %v1044_v27 = vld [vmem:[#allocation7 + $0x2d8] sm:$0xff]  ;;  %v406_v5 = vmul.f32 %v4945_v16, %v373_v2 }
  0x4f   : > { %4454 = vmatpush.msra.mxu3 %v1022_v28  ;;  %1172 = vmatpush.msra.mxu1 %v1022_v28  ;;  %304 = vst [vmem:[#allocation2 + $0xef] sm:$0x1] %v4772_v0  ;;  %v5073_v21 = vadd.f32 %v4947_v19, %v402_v15  ;;  %v560_v26 = vrot.slane %v450_v8, 7  ;;  %v867_v28 = vld [vmem:[#allocation7 + $0x58] sm:$0xff] }
  0x50   : > { %1060 = vmatpush.msra.mxu0 %v1005_v29  ;;  %4439 = vmatpush.msra.mxu2 %v1005_v29  ;;  %305 = vst [vmem:[#allocation2 + $0x11f] sm:$0x1] %v4772_v0  ;;  %v451_v22 = vadd.f32 %v4947_v19, %v418_v17  ;;  %v884_v29 = vld [vmem:[#allocation7 + $0xe0] sm:$0xff]  ;;  %v392_v2 = vld [vmem:[%s4924_s25 + $0xd8] sm:$0xff] }
  0x51   : > { %4455 = vmatpush.msra.mxu3 %v1021_v30  ;;  %1173 = vmatpush.msra.mxu1 %v1021_v30  ;;  %306 = vst [vmem:[#allocation2 + $0x14f] sm:$0x1] %v4772_v0  ;;  %v5082_v30 = vsel %vm531_vm0, %v535_v18, %v536_v24  ;;  %v538_v34 = vrot.slane %v5073_v21, 7 }
  0x52   : > { %1061 = vmatpush.msra.mxu0 %v1004_v31  ;;  %4440 = vmatpush.msra.mxu2 %v1004_v31  ;;  %307 = vst [vmem:[#allocation2 + $0x17f] sm:$0x1] %v4772_v0  ;;  %v370_v31 = vld [vmem:[%s4924_s25 + $0x28] sm:$0xff] }
  0x53   : > { %4456 = vmatpush.msra.mxu3 %v1020_v32  ;;  %1174 = vmatpush.msra.mxu1 %v1020_v32  ;;  %308 = vst [vmem:[#allocation2 + $0x1af] sm:$0x1] %v4772_v0  ;;  %v386_v32 = vld [vmem:[%s4924_s25 + $0xa8] sm:$0xff] }
  0x54   : > { %1062 = vmatpush.msra.mxu0 %v1003_v33  ;;  %4441 = vmatpush.msra.mxu2 %v1003_v33  ;;  %309 = vst [vmem:[#allocation2 + $0x1df] sm:$0x1] %v4772_v0  ;;  %v371_v33 = vld [vmem:[%s4924_s25 + $0x30] sm:$0xff] }
  0x55   : > { %4457 = vmatpush.msra.mxu3 %v1019_v35  ;;  %1175 = vmatpush.msra.mxu1 %v1019_v35  ;;  %310 = vst [vmem:[#allocation2 + $0x20f] sm:$0x1] %v4772_v0  ;;  %v403_v35 = vmul.f32 %v4945_v16, %v370_v31  ;;  %v374_v31 = vld [vmem:[%s4924_s25 + $0x48] sm:$0xff] }
  0x56   : > { %1063 = vmatpush.msra.mxu0 %v1002_v36  ;;  %4442 = vmatpush.msra.mxu2 %v1002_v36  ;;  %311 = vst [vmem:[#allocation2 + $0x23f] sm:$0x1] %v4772_v0  ;;  %v419_v36 = vmul.f32 %v4945_v16, %v386_v32  ;;  %v390_v32 = vld [vmem:[%s4924_s25 + $0xc8] sm:$0xff] }
  0x57   : > { %4458 = vmatpush.msra.mxu3 %v1018_v37  ;;  %1176 = vmatpush.msra.mxu1 %v1018_v37  ;;  %312 = vst [vmem:[#allocation2 + $0x26f] sm:$0x1] %v4772_v0  ;;  %v404_v37 = vmul.f32 %v4945_v16, %v371_v33  ;;  %v375_v33 = vld [vmem:[%s4924_s25 + $0x50] sm:$0xff] }
  0x58   : > { %1064 = vmatpush.msra.mxu0 %v1001_v39  ;;  %4443 = vmatpush.msra.mxu2 %v1001_v39  ;;  %313 = vst [vmem:[#allocation2 + $0x29f] sm:$0x1] %v4772_v0  ;;  %v5095_v39 = vsel %vm531_vm0, %v559_v20, %v560_v26 }
  0x59   : > { %4459 = vmatpush.msra.mxu3 %v1017_v40  ;;  %1065 = vmatmul.f32.vlgmr.msra.gmra.mxu0 %v904_v41  ;;  %314 = vst [vmem:[#allocation2 + $0x2cf] sm:$0x1] %v4772_v0  ;;  %v5099_v41 = vadd.f32 %v4947_v19, %v403_v35  ;;  %v5108_v46 = vadd.f32 %v4947_v19, %v404_v37  ;;  %v391_v37 = vld [vmem:[%s4924_s25 + $0xd0] sm:$0xff] }
  0x5a   : > { %1226 = vmatmul.f32.vlgmr.msra.gmra.mxu3 %v4978_v42  ;;  %1177 = vmatpush.msra.mxu1 %v1017_v40  ;;  %315 = vst [vmem:[#allocation2 + $0x2ff] sm:$0x1] %v4772_v0  ;;  %v562_v40 = vrot.slane %v451_v22, 7  ;;  %v423_v35 = vmul.f32 %v4945_v16, %v390_v32 }
  0x5b   : > { %1178 = vmatmul.f32.vlgmr.msra.gmra.mxu1 %v4954_v23  ;;  %316 = vst [vmem:[#allocation2 + $0x32f] sm:$0x1] %v4772_v0  ;;  %1275 = vmatpush.msrb.mxu2 %v1048_v43  ;;  %v420_v43 = vmul.f32 %v4945_v16, %v387_v38  ;;  %v539_v45 = vrot.slane %v5099_v41, 7  ;;  %v541_v55 = vrot.slane %v5108_v46, 7 }
  0x5c   : > { %331 = vst [vmem:[#allocation3 + $0x30] sm:$0x1] %v4772_v0  ;;  %1388 = vmatpush.msrb.mxu3 %v871_v44  ;;  %1501 = vmatpush.msrb.mxu0 %v887_v58 }
  0x5d   : > { %332 = vst [vmem:[#allocation3 + $0x60] sm:$0x1] %v4772_v0  ;;  %1276 = vmatpush.msrb.mxu2 %v1047_v56  ;;  %v453_v52 = vadd.f32 %v4947_v19, %v420_v43  ;;  %v5114_v53 = vsel %vm531_vm0, %v538_v34, %v539_v45 }
  0x5e   : > { %333 = vst [vmem:[#allocation3 + $0x90] sm:$0x1] %v4772_v0  ;;  %1389 = vmatpush.msrb.mxu3 %v870_v57  ;;  %1502 = vmatpush.msrb.mxu0 %v886_v1  ;;  %v388_v1 = vld [vmem:[%s4924_s25 + $0xb8] sm:$0xff] }
  0x5f   : > { %334 = vst [vmem:[#allocation3 + $0xc0] sm:$0x1] %v4772_v0  ;;  %1277 = vmatpush.msrb.mxu2 %v1046_v62  ;;  %v565_v57 = vrot.slane %v453_v52, 7  ;;  %v882_v62 = vld [vmem:[#allocation7 + $0xd0] sm:$0xff]  ;;  %v421_v4 = vmul.f32 %v4945_v16, %v388_v1  ;;  %v376_v1 = vld [vmem:[%s4924_s25 + $0x58] sm:$0xff] }
  0x60   : > { %335 = vst [vmem:[#allocation3 + $0xf0] sm:$0x1] %v4772_v0  ;;  %1390 = vmatpush.msrb.mxu3 %v869_v63  ;;  %1503 = vmatpush.msrb.mxu0 %v885_v14  ;;  %v372_v63 = vld [vmem:[%s4924_s25 + $0x38] sm:$0xff] }
  0x61   : > { %336 = vst [vmem:[#allocation3 + $0x120] sm:$0x1] %v4772_v0  ;;  %1068 = vmatmul.f32.gmra.mxu0 %v5025_v54  ;;  %1278 = vmatpush.msrb.mxu2 %v1045_v12  ;;  %v405_v3 = vmul.f32 %v4945_v16, %v372_v63  ;;  %v5141_v12 = vadd.f32 %v4947_v19, %v406_v5  ;;  %v878_v63 = vld [vmem:[#allocation7 + $0xb0] sm:$0xff] }
  0x62   : > { %337 = vst [vmem:[#allocation3 + $0x150] sm:$0x1] %v4772_v0  ;;  %1229 = vmatmul.f32.gmra.mxu3 %v5012_v50  ;;  %1504 = vmatpush.msrb.mxu0 %v884_v29  ;;  %v880_v29 = vld [vmem:[#allocation7 + $0xc0] sm:$0xff]  ;;  %v425_v5 = vmul.f32 %v4945_v16, %v392_v2  ;;  %v1035_v2 = vld [vmem:[#allocation7 + $0x290] sm:$0xff] }
  0x63   : > { %338 = vst [vmem:[#allocation3 + $0x180] sm:$0x1] %v4772_v0  ;;  %1181 = vmatmul.f32.gmra.mxu1 %v5008_v49  ;;  %1391 = vmatpush.msrb.mxu3 %v868_v13  ;;  %v5137_v10 = vadd.f32 %v4947_v19, %v405_v3  ;;  %v544_v17 = vrot.slane %v5141_v12, 7  ;;  %v377_v3 = vld [vmem:[%s4924_s25 + $0x60] sm:$0xff] }
  0x64   : > { %339 = vst [vmem:[#allocation3 + $0x1b0] sm:$0x1] %v4772_v0  ;;  %1279 = vmatpush.msrb.mxu2 %v1044_v27  ;;  %1505 = vmatpush.msrb.mxu0 %v883_v51  ;;  %v1040_v27 = vld [vmem:[#allocation7 + $0x2b8] sm:$0xff] }
  0x65   : > { %340 = vst [vmem:[#allocation3 + $0x1e0] sm:$0x1] %v4772_v0  ;;  %1392 = vmatpush.msrb.mxu3 %v867_v28  ;;  %v542_v14 = vrot.slane %v5137_v10, 7  ;;  %v863_v28 = vld [vmem:[#allocation7 + $0x38] sm:$0xff] }
  0x66   : > { %341 = vst [vmem:[#allocation3 + $0x210] sm:$0x1] %v4772_v0  ;;  %1280 = vmatpush.msrb.mxu2 %v1043_v48  ;;  %1506 = vmatpush.msrb.mxu0 %v882_v62  ;;  %v861_v62 = vld [vmem:[#allocation7 + $0x28] sm:$0xff] }
  0x67   : > { %342 = vst [vmem:[#allocation3 + $0x240] sm:$0x1] %v4772_v0 }
  0x68   : > { %343 = vst [vmem:[#allocation3 + $0x270] sm:$0x1] %v4772_v0  ;;  %1281 = vmatpush.msrb.mxu2 %v1042_v59 }
  0x69   : > { %344 = vst [vmem:[#allocation3 + $0x2a0] sm:$0x1] %v4772_v0 }
  0x6a   : > { %345 = vst [vmem:[#allocation3 + $0x2d0] sm:$0x1] %v4772_v0  ;;  %1232 = vmatmul.f32.gmra.mxu3 %v5039_v61 }
  0x6b   : > { %346 = vst [vmem:[#allocation3 + $0x300] sm:$0x1] %v4772_v0  ;;  %1184 = vmatmul.f32.gmra.mxu1 %v5035_v60 }
  0x6c   : > { %347 = vst [vmem:[#allocation3 + $0x5f] sm:$0x1] %v4772_v0 }
  0x6d   : > { %348 = vst [vmem:[#allocation3 + $0x8f] sm:$0x1] %v4772_v0 }
  0x6e   : > { %349 = vst [vmem:[#allocation3 + $0xbf] sm:$0x1] %v4772_v0 }
  0x6f   : > { %350 = vst [vmem:[#allocation3 + $0xef] sm:$0x1] %v4772_v0 }
  0x70   : > { %351 = vst [vmem:[#allocation3 + $0x11f] sm:$0x1] %v4772_v0 }
  0x71   : > { %352 = vst [vmem:[#allocation3 + $0x14f] sm:$0x1] %v4772_v0 }
  0x72   : > { %353 = vst [vmem:[#allocation3 + $0x17f] sm:$0x1] %v4772_v0  ;;  %1235 = vmatmul.f32.gmra.mxu3 %v450_v8 }
  0x73   : > { %354 = vst [vmem:[#allocation3 + $0x1af] sm:$0x1] %v4772_v0  ;;  %1187 = vmatmul.f32.gmra.mxu1 %v5057_v7 }
  0x74   : > { %355 = vst [vmem:[#allocation3 + $0x1df] sm:$0x1] %v4772_v0 }
  0x75   : > { %356 = vst [vmem:[#allocation3 + $0x20f] sm:$0x1] %v4772_v0 }
  0x76   : > { %357 = vst [vmem:[#allocation3 + $0x23f] sm:$0x1] %v4772_v0 }
  0x77   : > { %358 = vst [vmem:[#allocation3 + $0x26f] sm:$0x1] %v4772_v0 }
  0x78   : > { %359 = vst [vmem:[#allocation3 + $0x29f] sm:$0x1] %v4772_v0 }
  0x79   : > { %360 = vst [vmem:[#allocation3 + $0x2cf] sm:$0x1] %v4772_v0 }
  0x7a   : > { %361 = vst [vmem:[#allocation3 + $0x2ff] sm:$0x1] %v4772_v0  ;;  %1238 = vmatmul.f32.gmra.mxu3 %v451_v22 }
  0x7b   : > { %362 = vst [vmem:[#allocation3 + $0x32f] sm:$0x1] %v4772_v0  ;;  %v558_v0 = vsel %vm531_vm0, %v556_v6, %v557_v11  ;;  %1190 = vmatmul.f32.gmra.mxu1 %v5073_v21  ;;  %v454_v11 = vadd.f32 %v4947_v19, %v421_v4  ;;  %v409_v4 = vmul.f32 %v4945_v16, %v376_v1 }
  0x7c   : > { %628 = vst [vmem:[#allocation2 + $0x1b0] sm:$0xfe] %v556_v6  ;;  %v389_v6 = vld [vmem:[%s4924_s25 + $0xc0] sm:$0xff] }
  0x7d   : > { %483 = vst [vmem:[#allocation2 + $0x1b8] sm:$0xff] %v4978_v42  ;;  %v452_v42 = vadd.f32 %v4947_v19, %v419_v36  ;;  %v422_v9 = vmul.f32 %v4945_v16, %v389_v6  ;;  %v566_v15 = vrot.slane %v454_v11, 7  ;;  %v408_v36 = vmul.f32 %v4945_v16, %v375_v33  ;;  %v1036_v33 = vld [vmem:[#allocation7 + $0x298] sm:$0xff] }
  0x7e   : > { %629 = vst [vmem:[#allocation2 + $0x1c8] sm:$0xff] %v558_v0  ;;  %v410_v6 = vmul.f32 %v4945_v16, %v377_v3  ;;  %v858_v3 = vld [vmem:[#allocation7 + $0x10] sm:$0xff] }
  0x7f   : > { %484 = vst [vmem:[#allocation2 + $0x1d0] sm:$0xff] %v5012_v50  ;;  %v563_v47 = vrot.slane %v452_v42, 7  ;;  %v866_v50 = vld [vmem:[#allocation7 + $0x50] sm:$0xff]  ;;  %v5144_v13 = vadd.f32 %v4947_v19, %v422_v9  ;;  %v5181_v43 = vadd.f32 %v4947_v19, %v408_v36  ;;  %v393_v9 = vld [vmem:[%s4924_s25 + $0xe0] sm:$0xff]  ;;  %v378_v36 = vld [vmem:[%s4924_s25 + $0x68] sm:$0xff] }
  0x80   : > { %614 = vst [vmem:[#allocation2 + $0x60] sm:$0xfe] %v535_v18  ;;  %1393 = vmatpush.msrb.mxu3 %v866_v50  ;;  %v5153_v18 = vsel %vm531_vm0, %v541_v55, %v542_v14  ;;  %v5217_v14 = vadd.f32 %v4947_v19, %v409_v4  ;;  %v875_v4 = vld [vmem:[#allocation7 + $0x98] sm:$0xff] }
  0x81   : > { %469 = vst [vmem:[#allocation2 + $0x68] sm:$0xff] %v5035_v60  ;;  %v5120_v56 = vsel %vm531_vm0, %v562_v40, %v563_v47  ;;  %v568_v24 = vrot.slane %v5144_v13, 7  ;;  %v547_v50 = vrot.slane %v5181_v43, 7 }
  0x82   : > { %630 = vst [vmem:[#allocation2 + $0x1e0] sm:$0xfe] %v559_v20  ;;  %1241 = vmatmul.f32.gmra.mxu3 %v452_v42  ;;  %v864_v20 = vld [vmem:[#allocation7 + $0x40] sm:$0xff] }
  0x83   : > { %v952_v25 = vld [vmem:[#allocation2 + $0x1b0] sm:$0xff]  ;;  %485 = vst [vmem:[#allocation2 + $0x1e8] sm:$0xff] %v5039_v61  ;;  %1193 = vmatmul.f32.gmra.mxu1 %v5099_v41  ;;  %v865_v61 = vld [vmem:[#allocation7 + $0x48] sm:$0xff] }
  0x84   : > { %1113 = vmatmul.f32.vlgmr.msra.gmra.mxu2 %v952_v25  ;;  %615 = vst [vmem:[#allocation2 + $0x78] sm:$0xff] %v5082_v30  ;;  %1394 = vmatpush.msrb.mxu3 %v865_v61  ;;  %v5158_v25 = vsel %vm531_vm0, %v565_v57, %v566_v15  ;;  %v1038_v61 = vld [vmem:[#allocation7 + $0x2a8] sm:$0xff]  ;;  %v458_v15 = vadd.f32 %v4947_v19, %v425_v5 }
  0x85   : > { %470 = vst [vmem:[#allocation2 + $0x80] sm:$0xff] %v5057_v7 }
  0x86   : > { %631 = vst [vmem:[#allocation2 + $0x1f8] sm:$0xff] %v5095_v39  ;;  %1395 = vmatpush.msrb.mxu3 %v864_v20  ;;  %v548_v20 = vrot.slane %v5217_v14, 7 }
  0x87   : > { %v5103_v44 = vld [vmem:[#allocation2 + $0x60] sm:$0xff]  ;;  %486 = vst [vmem:[#allocation2 + $0x200] sm:$0xff] %v450_v8 }
  0x88   : > { %1071 = vmatmul.f32.gmra.mxu0 %v5103_v44  ;;  %616 = vst [vmem:[#allocation2 + $0x90] sm:$0xfe] %v538_v34  ;;  %1396 = vmatpush.msrb.mxu3 %v863_v28  ;;  %v407_v34 = vmul.f32 %v4945_v16, %v374_v31  ;;  %v860_v28 = vld [vmem:[#allocation7 + $0x20] sm:$0xff] }
  0x89   : > { %471 = vst [vmem:[#allocation2 + $0x98] sm:$0xff] %v5073_v21  ;;  %v958_v58 = vld [vmem:[#allocation2 + $0x1e0] sm:$0xff] }
  0x8a   : > { %632 = vst [vmem:[#allocation2 + $0x210] sm:$0xfe] %v562_v40  ;;  %1244 = vmatmul.f32.gmra.mxu3 %v453_v52  ;;  %v5177_v40 = vadd.f32 %v4947_v19, %v407_v34  ;;  %v859_v34 = vld [vmem:[#allocation7 + $0x18] sm:$0xff] }
  0x8b   : > { %487 = vst [vmem:[#allocation2 + $0x218] sm:$0xff] %v451_v22  ;;  %1196 = vmatmul.f32.gmra.mxu1 %v5108_v46  ;;  %v881_v22 = vld [vmem:[#allocation7 + $0xc8] sm:$0xff] }
  0x8c   : > { %1116 = vmatmul.f32.gmra.mxu2 %v558_v0  ;;  %617 = vst [vmem:[#allocation2 + $0xa8] sm:$0xff] %v5114_v53  ;;  %v1041_v0 = vld [vmem:[#allocation7 + $0x2c0] sm:$0xff]  ;;  %1507 = vmatpush.msrb.mxu0 %v881_v22  ;;  %v545_v47 = vrot.slane %v5177_v40, 7  ;;  %v572_v22 = vrot.slane %v458_v15, 7 }
  0x8d   : > { %472 = vst [vmem:[#allocation2 + $0xb0] sm:$0xff] %v5099_v41  ;;  %1282 = vmatpush.msrb.mxu2 %v1041_v0 }
  0x8e   : > { %633 = vst [vmem:[#allocation2 + $0x228] sm:$0xff] %v5120_v56  ;;  %1508 = vmatpush.msrb.mxu0 %v880_v29  ;;  %v5193_v51 = vsel %vm531_vm0, %v544_v17, %v545_v47  ;;  %v877_v29 = vld [vmem:[#allocation7 + $0xa8] sm:$0xff] }
  0x8f   : > { %488 = vst [vmem:[#allocation2 + $0x230] sm:$0xff] %v452_v42  ;;  %v5133_v8 = vld [vmem:[#allocation2 + $0x90] sm:$0xff]  ;;  %1283 = vmatpush.msrb.mxu2 %v1040_v27  ;;  %v456_v42 = vadd.f32 %v4947_v19, %v423_v35  ;;  %v1037_v27 = vld [vmem:[#allocation7 + $0x2a0] sm:$0xff] }
  0x90   : > { %1074 = vmatmul.f32.gmra.mxu0 %v5082_v30  ;;  %618 = vst [vmem:[#allocation2 + $0xc0] sm:$0xfe] %v541_v55  ;;  %v862_v55 = vld [vmem:[#allocation7 + $0x30] sm:$0xff]  ;;  %v876_v35 = vld [vmem:[#allocation7 + $0xa0] sm:$0xff] }
  0x91   : > { %473 = vst [vmem:[#allocation2 + $0xc8] sm:$0xff] %v5108_v46  ;;  %v964_v26 = vld [vmem:[#allocation2 + $0x210] sm:$0xff]  ;;  %v569_v48 = vrot.slane %v456_v42, 7  ;;  %1397 = vmatpush.msrb.mxu3 %v862_v55 }
  0x92   : > { %634 = vst [vmem:[#allocation2 + $0x240] sm:$0xfe] %v565_v57  ;;  %1247 = vmatmul.f32.gmra.mxu3 %v454_v11  ;;  %v879_v57 = vld [vmem:[#allocation7 + $0xb8] sm:$0xff] }
  0x93   : > { %489 = vst [vmem:[#allocation2 + $0x248] sm:$0xff] %v453_v52  ;;  %1199 = vmatmul.f32.gmra.mxu1 %v5137_v10  ;;  %v1039_v52 = vld [vmem:[#allocation7 + $0x2b0] sm:$0xff]  ;;  %v5198_v59 = vsel %vm531_vm0, %v568_v24, %v569_v48  ;;  %1509 = vmatpush.msrb.mxu0 %v879_v57 }
  0x94   : > { %1119 = vmatmul.f32.gmra.mxu2 %v958_v58  ;;  %474 = vst [vmem:[#allocation2 + $0xe0] sm:$0xff] %v5137_v10  ;;  %1398 = vmatpush.msrb.mxu3 %v861_v62  ;;  %v395_v48 = vld [vmem:[%s4924_s25 + $0xf0] sm:$0xff] }
  0x95   : > { %490 = vst [vmem:[#allocation2 + $0x260] sm:$0xff] %v454_v11  ;;  %1284 = vmatpush.msrb.mxu2 %v1039_v52  ;;  %1510 = vmatpush.msrb.mxu0 %v878_v63  ;;  %v428_v52 = vmul.f32 %v4945_v16, %v395_v48  ;;  %v897_v48 = vld [vmem:[#allocation7 + $0x148] sm:$0xff] }
  0x96   : > { %620 = vst [vmem:[#allocation2 + $0xf0] sm:$0xfe] %v544_v17  ;;  %v5221_v17 = vadd.f32 %v4947_v19, %v410_v6  ;;  %1399 = vmatpush.msrb.mxu3 %v860_v28  ;;  %v396_v28 = vld [vmem:[%s4924_s25 + $0xf8] sm:$0xff] }
  0x97   : > { %619 = vst [vmem:[#allocation2 + $0xd8] sm:$0xff] %v5153_v18  ;;  %v5173_v38 = vld [vmem:[#allocation2 + $0xc0] sm:$0xff]  ;;  %1285 = vmatpush.msrb.mxu2 %v1038_v61  ;;  %1511 = vmatpush.msrb.mxu0 %v877_v29 }
  0x98   : > { %1077 = vmatmul.f32.gmra.mxu0 %v5133_v8  ;;  %635 = vst [vmem:[#allocation2 + $0x258] sm:$0xff] %v5158_v25  ;;  %1400 = vmatpush.msrb.mxu3 %v859_v34  ;;  %v898_v34 = vld [vmem:[#allocation7 + $0x150] sm:$0xff] }
  0x99   : > { %475 = vst [vmem:[#allocation2 + $0xf8] sm:$0xff] %v5141_v12  ;;  %1286 = vmatpush.msrb.mxu2 %v1037_v27  ;;  %1512 = vmatpush.msrb.mxu0 %v876_v35  ;;  %v380_v27 = vld [vmem:[%s4924_s25 + $0x78] sm:$0xff] }
  0x9a   : > { %636 = vst [vmem:[#allocation2 + $0x270] sm:$0xfe] %v568_v24  ;;  %1250 = vmatmul.f32.gmra.mxu3 %v5144_v13  ;;  %v550_v24 = vrot.slane %v5221_v17, 7 }
  0x9b   : > { %491 = vst [vmem:[#allocation2 + $0x278] sm:$0xff] %v5144_v13  ;;  %1202 = vmatmul.f32.gmra.mxu1 %v5141_v12  ;;  %v426_v13 = vmul.f32 %v4945_v16, %v393_v9  ;;  %1287 = vmatpush.msrb.mxu2 %v1036_v33  ;;  %v903_v9 = vld [vmem:[#allocation7 + $0x178] sm:$0xff]  ;;  %v429_v33 = vmul.f32 %v4945_v16, %v396_v28  ;;  %v888_v28 = vld [vmem:[#allocation7 + $0x100] sm:$0xff] }
  0x9c   : > { %1122 = vmatmul.f32.gmra.mxu2 %v5095_v39  ;;  %v424_v39 = vmul.f32 %v4945_v16, %v391_v37  ;;  %476 = vst [vmem:[#allocation2 + $0x110] sm:$0xff] %v5177_v40  ;;  %v394_v37 = vld [vmem:[%s4924_s25 + $0xe8] sm:$0xff]  ;;  %1401 = vmatpush.msrb.mxu3 %v858_v3  ;;  %v4547_v3 = vld [vmem:[#allocation2] sm:$0xff] }
  0x9d   : > { %492 = vst [vmem:[#allocation2 + $0x290] sm:$0xff] %v456_v42  ;;  %v5213_v11 = vld [vmem:[#allocation2 + $0xf0] sm:$0xff]  ;;  %v5224_v0 = vadd.f32 %v4947_v19, %v426_v13  ;;  %1288 = vmatpush.msrb.mxu2 %v1035_v2  ;;  %1513 = vmatpush.msrb.mxu0 %v875_v4  ;;  %v1843_v4 = vld [vmem:[#allocation7 + $0x378] sm:$0xff] }
  0x9e   : > { %v5184_v45 = vadd.f32 %v4947_v19, %v424_v39  ;;  %622 = vst [vmem:[#allocation2 + $0x120] sm:$0xfe] %v547_v50  ;;  %v379_v39 = vld [vmem:[%s4924_s25 + $0x70] sm:$0xff]  ;;  %1614 = vmatpush.msrb.mxu1 %v903_v9  ;;  %v893_v9 = vld [vmem:[#allocation7 + $0x128] sm:$0xff] }
  0x9f   : > { %621 = vst [vmem:[#allocation2 + $0x108] sm:$0xff] %v5193_v51  ;;  %v574_v31 = vrot.slane %v5224_v0, 7  ;;  %v412_v47 = vmul.f32 %v4945_v16, %v379_v39  ;;  %v894_v2 = vld [vmem:[#allocation7 + $0x130] sm:$0xff] }
  0xa0   : > { %1080 = vmatmul.f32.gmra.mxu0 %v5114_v53  ;;  %v571_v58 = vrot.slane %v5184_v45, 7  ;;  %637 = vst [vmem:[#allocation2 + $0x288] sm:$0xff] %v5198_v59 }
  0xa1   : > { %477 = vst [vmem:[#allocation2 + $0x128] sm:$0xff] %v5181_v43 }
  0xa2   : > { %1253 = vmatmul.f32.gmra.mxu3 %v456_v42  ;;  %638 = vst [vmem:[#allocation2 + $0x2a0] sm:$0xfe] %v571_v58  ;;  %v5238_v32 = vsel %vm531_vm0, %v571_v58, %v572_v22  ;;  %v411_v42 = vmul.f32 %v4945_v16, %v378_v36  ;;  %v5261_v58 = vadd.f32 %v4947_v19, %v412_v47  ;;  %v901_v22 = vld [vmem:[#allocation7 + $0x168] sm:$0xff] }
  0xa3   : > { %1205 = vmatmul.f32.gmra.mxu1 %v5177_v40  ;;  %493 = vst [vmem:[#allocation2 + $0x2a8] sm:$0xff] %v5184_v45  ;;  %v462_v36 = vadd.f32 %v4947_v19, %v429_v33  ;;  %v648_v33 = vrot.slane %v5035_v60, 1 }
  0xa4   : > { %1125 = vmatmul.f32.gmra.mxu2 %v964_v26  ;;  %478 = vst [vmem:[#allocation2 + $0x140] sm:$0xff] %v5217_v14  ;;  %v5233_v26 = vsel %vm531_vm0, %v547_v50, %v548_v20  ;;  %v5257_v55 = vadd.f32 %v4947_v19, %v411_v42  ;;  %v553_v63 = vrot.slane %v5261_v58, 7  ;;  %v874_v20 = vld [vmem:[#allocation7 + $0x90] sm:$0xff]  ;;  %v856_v42 = vld [vmem:[#allocation7] sm:$0xff] }
  0xa5   : > { %494 = vst [vmem:[#allocation2 + $0x2c0] sm:$0xff] %v458_v15  ;;  %v5253_v50 = vld [vmem:[#allocation2 + $0x120] sm:$0xff]  ;;  %1514 = vmatpush.msrb.mxu0 %v874_v20  ;;  %v578_v39 = vrot.slane %v462_v36, 7  ;;  %v891_v20 = vld [vmem:[#allocation7 + $0x118] sm:$0xff] }
  0xa6   : > { %624 = vst [vmem:[#allocation2 + $0x150] sm:$0xfe] %v550_v24  ;;  %v551_v61 = vrot.slane %v5257_v55, 7 }
  0xa7   : > { %623 = vst [vmem:[#allocation2 + $0x138] sm:$0xff] %v5233_v26 }
  0xa8   : > { %1083 = vmatmul.f32.gmra.mxu0 %v5173_v38  ;;  %639 = vst [vmem:[#allocation2 + $0x2b8] sm:$0xff] %v5238_v32  ;;  %v5273_v1 = vsel %vm531_vm0, %v550_v24, %v551_v61  ;;  %v900_v24 = vld [vmem:[#allocation7 + $0x160] sm:$0xff]  ;;  %v895_v61 = vld [vmem:[#allocation7 + $0x138] sm:$0xff] }
  0xa9   : > { %479 = vst [vmem:[#allocation2 + $0x158] sm:$0xff] %v5221_v17  ;;  %v982_v13 = vld [vmem:[#allocation2 + $0x2a0] sm:$0xff] }
  0xaa   : > { %1256 = vmatmul.f32.gmra.mxu3 %v5184_v45  ;;  %640 = vst [vmem:[#allocation2 + $0x2d0] sm:$0xfe] %v574_v31  ;;  %v427_v45 = vmul.f32 %v4945_v16, %v394_v37 }
  0xab   : > { %1208 = vmatmul.f32.gmra.mxu1 %v5181_v43  ;;  %495 = vst [vmem:[#allocation2 + $0x2d8] sm:$0xff] %v5224_v0 }
  0xac   : > { %1128 = vmatmul.f32.gmra.mxu2 %v5120_v56  ;;  %v970_v56 = vld [vmem:[#allocation2 + $0x240] sm:$0xff]  ;;  %v460_v57 = vadd.f32 %v4947_v19, %v427_v45  ;;  %480 = vst [vmem:[#allocation2 + $0x170] sm:$0xff] %v5257_v55  ;;  %v873_v45 = vld [vmem:[#allocation7 + $0x88] sm:$0xff] }
  0xad   : > { %626 = vst [vmem:[#allocation2 + $0x180] sm:$0xfe] %v553_v63  ;;  %v5290_v29 = vld [vmem:[#allocation2 + $0x150] sm:$0xff]  ;;  %1515 = vmatpush.msrb.mxu0 %v873_v45 }
  0xae   : > { %v575_v62 = vrot.slane %v460_v57, 7  ;;  %496 = vst [vmem:[#allocation2 + $0x2f0] sm:$0xff] %v460_v57 }
  0xaf   : > { %625 = vst [vmem:[#allocation2 + $0x168] sm:$0xff] %v5273_v1 }
  0xb0   : > { %1086 = vmatmul.f32.gmra.mxu0 %v5153_v18  ;;  %v5280_v6 = vsel %vm531_vm0, %v574_v31, %v575_v62  ;;  %481 = vst [vmem:[#allocation2 + $0x188] sm:$0xff] %v5261_v58  ;;  %v899_v31 = vld [vmem:[#allocation7 + $0x158] sm:$0xff] }
  0xb1   : > { %641 = vst [vmem:[#allocation2 + $0x2e8] sm:$0xff] %v5280_v6 }
  0xb2   : > { %1259 = vmatmul.f32.gmra.mxu3 %v458_v15  ;;  %v1034_v15 = vld [vmem:[#allocation7 + $0x288] sm:$0xff]  ;;  %498 = vst [vmem:[#allocation2 + $0x320] sm:$0xff] %v462_v36 }
  0xb3   : > { %1211 = vmatmul.f32.gmra.mxu1 %v5217_v14  ;;  %1289 = vmatpush.msrb.mxu2 %v1034_v15 }
  0xb4   : > { %1131 = vmatmul.f32.gmra.mxu2 %v970_v56  ;;  %v5264_v56 = vadd.f32 %v4947_v19, %v428_v52  ;;  %v896_v52 = vld [vmem:[#allocation7 + $0x140] sm:$0xff] }
  0xb6   : > { %v577_v5 = vrot.slane %v5264_v56, 7  ;;  %497 = vst [vmem:[#allocation2 + $0x308] sm:$0xff] %v5264_v56 }
  0xb8   : > { %1089 = vmatmul.f32.gmra.mxu0 %v5213_v11  ;;  %642 = vst [vmem:[#allocation2 + $0x300] sm:$0xfe] %v577_v5 }
  0xba   : > { %1262 = vmatmul.f32.gmra.mxu3 %v5224_v0  ;;  %v857_v0 = vld [vmem:[#allocation7 + $0x8] sm:$0xff] }
  0xbb   : > { %1214 = vmatmul.f32.gmra.mxu1 %v5221_v17  ;;  %1402 = vmatpush.msrb.mxu3 %v857_v0 }
  0xbc   : > { %1134 = vmatmul.f32.gmra.mxu2 %v5158_v25  ;;  %v976_v25 = vld [vmem:[#allocation2 + $0x270] sm:$0xff] }
  0xbd   : > { %1403 = vmatpush.msrb.mxu3 %v856_v42  ;;  %v1858_v42 = vld [vmem:[#allocation7 + $0x3f0] sm:$0xff] }
  0xc0   : > { %1092 = vmatmul.f32.gmra.mxu0 %v5193_v51 }
  0xc2   : > { %1265 = vmatmul.f32.gmra.mxu3 %v460_v57  ;;  %v646_v57 = vrot.slane %v5008_v49, 1 }
  0xc3   : > { %1217 = vmatmul.f32.gmra.mxu1 %v5257_v55 }
  0xc4   : > { %1137 = vmatmul.f32.gmra.mxu2 %v976_v25  ;;  %v413_v25 = vmul.f32 %v4945_v16, %v380_v27  ;;  %v1033_v16 = vld [vmem:[#allocation7 + $0x280] sm:$0xff]  ;;  %726 = vst [vmem:[#allocation2 + $0x58] sm:$0x7f] %v646_v57  ;;  %v889_v27 = vld [vmem:[#allocation7 + $0x108] sm:$0xff] }
  0xc5   : > { %1290 = vmatpush.msrb.mxu2 %v1033_v16  ;;  %v1842_v16 = vld [vmem:[#allocation7 + $0x370] sm:$0xff] }
  0xc6   : > { %v5295_v35 = vadd.f32 %v4947_v19, %v413_v25  ;;  %v645_v19 = vrot.slane %v4954_v23, 1 }
  0xc7   : > { %1876 = vmatpush.msra.mxu2 %v1843_v4 }
  0xc8   : > { %1095 = vmatmul.f32.gmra.mxu0 %v5253_v50  ;;  %v554_v37 = vrot.slane %v5295_v35, 7  ;;  %482 = vst [vmem:[#allocation2 + $0x1a0] sm:$0xff] %v5295_v35  ;;  %v5316_v62 = vsel %vm644_vm1, %v645_v19, %v646_v57 }
  0xc9   : > { %1877 = vmatpush.msra.mxu2 %v1842_v16 }
  0xca   : > { %1268 = vmatmul.f32.gmra.mxu3 %v5264_v56  ;;  %v5307_v47 = vsel %vm531_vm0, %v553_v63, %v554_v37  ;;  %v872_v56 = vld [vmem:[#allocation7 + $0x80] sm:$0xff]  ;;  %v988_v63 = vld [vmem:[#allocation2 + $0x2d0] sm:$0xff] }
  0xcb   : > { %1220 = vmatmul.f32.gmra.mxu1 %v5261_v58  ;;  %627 = vst [vmem:[#allocation2 + $0x198] sm:$0xff] %v5307_v47  ;;  %1516 = vmatpush.msrb.mxu0 %v872_v56 }
  0xcc   : > { %1140 = vmatmul.f32.gmra.mxu2 %v5198_v59  ;;  %v902_v59 = vld [vmem:[#allocation7 + $0x170] sm:$0xff] }
  0xcd   : > { %1615 = vmatpush.msrb.mxu1 %v902_v59  ;;  %v892_v59 = vld [vmem:[#allocation7 + $0x120] sm:$0xff] }
  0xcf   : > { %1616 = vmatpush.msrb.mxu1 %v901_v22  ;;  %v890_v22 = vld [vmem:[#allocation7 + $0x110] sm:$0xff] }
  0xd0   : > { %1098 = vmatmul.f32.gmra.mxu0 %v5233_v26 }
  0xd1   : > { %1617 = vmatpush.msrb.mxu1 %v900_v24  ;;  %v1875_v24 = vld [vmem:[#allocation7 + $0x478] sm:$0xff] }
  0xd2   : > { %1271 = vmatmul.f32.gmra.mxu3 %v462_v36  ;;  %2102 = vmatpush.msra.mxu0 %v1875_v24  ;;  %v994_v36 = vld [vmem:[#allocation2 + $0x300] sm:$0xff] }
  0xd3   : > { %1618 = vmatpush.msrb.mxu1 %v899_v31 }
  0xd4   : > { %1143 = vmatmul.f32.gmra.mxu2 %v982_v13  ;;  %1223 = vmatmul.f32.gmra.mxu1 %v5295_v35  ;;  %v5319_v13 = vld [vmem:[#allocation2 + $0x180] sm:$0xff] }
  0xd5   : > { %1619 = vmatpush.msrb.mxu1 %v898_v34  ;;  %v649_v34 = vrot.slane %v5057_v7, 1 }
  0xd6   : > { %v5331_v37 = vpop.f32.mrf.mxu0 }
  0xd7   : > { %1620 = vmatpush.msrb.mxu1 %v897_v48  ;;  %728 = vst [vmem:[#allocation2 + $0x88] sm:$0x7f] %v649_v34  ;;  %v1874_v48 = vld [vmem:[#allocation7 + $0x470] sm:$0xff] }
  0xd8   : > { %1101 = vmatmul.f32.gmra.mxu0 %v5290_v29  ;;  %v5321_v0 = vpop.f32.mrf.mxu1 }
  0xd9   : > { %1621 = vmatpush.msrb.mxu1 %v896_v52  ;;  %2103 = vmatpush.msra.mxu0 %v1874_v48 }
  0xda   : > { %1404 = vmatmul.f32.vlgmr.msrb.gmra.mxu3 %v4547_v3 }
  0xdb   : > { %1622 = vmatpush.msrb.mxu1 %v895_v61  ;;  %v651_v61 = vrot.slane %v5073_v21, 1 }
  0xdc   : > { %1146 = vmatmul.f32.gmra.mxu2 %v5238_v32  ;;  %v5312_v32 = vsel %vm531_vm0, %v577_v5, %v578_v39  ;;  %v1859_v5 = vld [vmem:[#allocation7 + $0x3f8] sm:$0xff]  ;;  %v766_v39 = vld [vmem:[#allocation2 + $0x30] sm:$0xff] }
  0xdd   : > { %643 = vst [vmem:[#allocation2 + $0x318] sm:$0xff] %v5312_v32  ;;  %1623 = vmatpush.msrb.mxu1 %v894_v2  ;;  %1989 = vmatpush.msra.mxu3 %v1859_v5  ;;  %v1227_v15 = vpop.f32.mrf.mxu3 }
  0xde   : > { %v5337_v52 = vpop.f32.mrf.mxu0  ;;  %v915_v16 = vld [vmem:[#allocation2 + $0x88] sm:$0xff] }
  0xdf   : > { %1624 = vmatpush.msrb.mxu1 %v893_v9  ;;  %1990 = vmatpush.msra.mxu3 %v1858_v42 }
  0xe0   : > { %1104 = vmatmul.f32.gmra.mxu0 %v5273_v1  ;;  %v5325_v25 = vpop.f32.mrf.mxu1 }
  0xe1   : > { %1625 = vmatpush.msrb.mxu1 %v892_v59  ;;  %v909_v59 = vld [vmem:[#allocation2 + $0x58] sm:$0xff] }
  0xe2   : > { %1407 = vmatmul.f32.gmra.mxu3 %v4547_v3 }
  0xe3   : > { %1626 = vmatpush.msrb.mxu1 %v891_v20 }
  0xe4   : > { %1149 = vmatmul.f32.gmra.mxu2 %v988_v63  ;;  %v652_v63 = vrot.slane %v5099_v41, 1 }
  0xe5   : > { %1627 = vmatpush.msrb.mxu1 %v890_v22  ;;  %v1230_v31 = vpop.f32.mrf.mxu3 }
  0xe6   : > { %v653_v2 = vsel %vm644_vm1, %v651_v61, %v652_v63  ;;  %730 = vst [vmem:[#allocation2 + $0xb8] sm:$0x7f] %v652_v63 }
  0xe7   : > { %1628 = vmatpush.msrb.mxu1 %v889_v27  ;;  %729 = vst [vmem:[#allocation2 + $0xa0] sm:$0xff] %v653_v2 }
  0xe8   : > { %1107 = vmatmul.f32.gmra.mxu0 %v5319_v13  ;;  %v5333_v19 = vpop.f32.mrf.mxu1 }
  0xe9   : > { %1629 = vmatpush.msrb.mxu1 %v888_v28  ;;  %v654_v28 = vrot.slane %v5108_v46, 1 }
  0xea   : > { %1630 = vmatmul.f32.vlgmr.msrb.gmra.mxu1 %v4547_v3  ;;  %1410 = vmatmul.f32.gmra.mxu3 %v766_v39 }
  0xec   : > { %1152 = vmatmul.f32.gmra.mxu2 %v5280_v6  ;;  %v650_v6 = vsel %vm644_vm1, %v648_v33, %v649_v34  ;;  %v655_v33 = vrot.slane %v5137_v10, 1 }
  0xed   : > { %727 = vst [vmem:[#allocation2 + $0x70] sm:$0xff] %v650_v6  ;;  %v1233_v45 = vpop.f32.mrf.mxu3 }
  0xee   : > { %732 = vst [vmem:[#allocation2 + $0xe8] sm:$0x7f] %v655_v33 }
  0xf0   : > { %1110 = vmatmul.f32.gmra.mxu0 %v5307_v47  ;;  %v5339_v56 = vpop.f32.mrf.mxu1 }
  0xf2   : > { %1633 = vmatmul.f32.gmra.mxu1 %v4547_v3  ;;  %1413 = vmatmul.f32.gmra.mxu3 %v5025_v54  ;;  %v1841_v54 = vld [vmem:[#allocation7 + $0x368] sm:$0xff] }
  0xf3   : > { %1878 = vmatpush.msra.mxu2 %v1841_v54  ;;  %v658_v54 = vrot.slane %v5177_v40, 1 }
  0xf4   : > { %1155 = vmatmul.f32.gmra.mxu2 %v994_v36 }
  0xf5   : > { %v1236_v57 = vpop.f32.mrf.mxu3  ;;  %734 = vst [vmem:[#allocation2 + $0x118] sm:$0x7f] %v658_v54 }
  0xf8   : > { %1517 = vmatmul.f32.vlgmr.msrb.gmra.mxu0 %v4547_v3 }
  0xfa   : > { %1636 = vmatmul.f32.gmra.mxu1 %v5316_v62  ;;  %1416 = vmatmul.f32.gmra.mxu3 %v5103_v44  ;;  %v1873_v44 = vld [vmem:[#allocation7 + $0x468] sm:$0xff] }
  0xfb   : > { %2104 = vmatpush.msra.mxu0 %v1873_v44 }
  0xfc   : > { %1158 = vmatmul.f32.gmra.mxu2 %v5312_v32  ;;  %v1857_v32 = vld [vmem:[#allocation7 + $0x3e8] sm:$0xff] }
  0xfd   : > { %1991 = vmatpush.msra.mxu3 %v1857_v32  ;;  %v1239_v20 = vpop.f32.mrf.mxu3  ;;  %v1839_v32 = vld [vmem:[#allocation7 + $0x358] sm:$0xff] }
 0x100   : > { %1520 = vmatmul.f32.gmra.mxu0 %v4547_v3  ;;  %v5351_v3 = vpop.f32.mrf.mxu1 }
 0x102   : > { %1639 = vmatmul.f32.gmra.mxu1 %v909_v59  ;;  %1419 = vmatmul.f32.gmra.mxu3 %v5082_v30  ;;  %v1840_v30 = vld [vmem:[#allocation7 + $0x360] sm:$0xff] }
 0x103   : > { %1879 = vmatpush.msra.mxu2 %v1840_v30 }
 0x104   : > { %1291 = vmatmul.f32.vlgmr.msrb.gmra.mxu2 %v5316_v62 }
 0x105   : > { %v5347_v5 = vpop.f32.mrf.mxu0  ;;  %v1242_v27 = vpop.f32.mrf.mxu3  ;;  %1880 = vmatpush.msra.mxu2 %v1839_v32 }
 0x107   : > { %v1114_v4 = vpop.f32.mrf.mxu2 }
 0x108   : > { %v5349_v9 = vadd.f32 %v1227_v15, %v1114_v4  ;;  %1523 = vmatmul.f32.gmra.mxu0 %v4954_v23  ;;  %v5359_v15 = vpop.f32.mrf.mxu1  ;;  %v656_v23 = vsel %vm644_vm1, %v654_v28, %v655_v33 }
 0x109   : > { %731 = vst [vmem:[#allocation2 + $0xd0] sm:$0xff] %v656_v23 }
 0x10a   : > { %1642 = vmatmul.f32.gmra.mxu1 %v650_v6  ;;  %1422 = vmatmul.f32.gmra.mxu3 %v5133_v8  ;;  %v1872_v8 = vld [vmem:[#allocation7 + $0x460] sm:$0xff] }
 0x10b   : > { %2105 = vmatpush.msra.mxu0 %v1872_v8 }
 0x10c   : > { %1294 = vmatmul.f32.gmra.mxu2 %v909_v59 }
 0x10d   : > { %v5355_v22 = vpop.f32.mrf.mxu0  ;;  %v1245_v42 = vpop.f32.mrf.mxu3 }
 0x10f   : > { %v1117_v62 = vpop.f32.mrf.mxu2 }
 0x110   : > { %v5357_v24 = vadd.f32 %v1230_v31, %v1117_v62  ;;  %1526 = vmatmul.f32.gmra.mxu0 %v5008_v49  ;;  %v1856_v31 = vld [vmem:[#allocation7 + $0x3e0] sm:$0xff]  ;;  %v5371_v49 = vpop.f32.mrf.mxu1  ;;  %v921_v62 = vld [vmem:[#allocation2 + $0xb8] sm:$0xff] }
 0x111   : > { %1992 = vmatpush.msra.mxu3 %v1856_v31 }
 0x112   : > { %1645 = vmatmul.f32.gmra.mxu1 %v915_v16  ;;  %1425 = vmatmul.f32.gmra.mxu3 %v5114_v53 }
 0x114   : > { %1297 = vmatmul.f32.gmra.mxu2 %v650_v6 }
 0x115   : > { %v5366_v36 = vpop.f32.mrf.mxu0  ;;  %v1248_v63 = vpop.f32.mrf.mxu3 }
 0x117   : > { %v1120_v34 = vpop.f32.mrf.mxu2 }
 0x118   : > { %v5368_v39 = vadd.f32 %v1233_v45, %v1120_v34  ;;  %1529 = vmatmul.f32.gmra.mxu0 %v5035_v60  ;;  %v657_v45 = vrot.slane %v5141_v12, 1  ;;  %v5382_v53 = vpop.f32.mrf.mxu1  ;;  %v661_v34 = vrot.slane %v5217_v14, 1 }
 0x11a   : > { %1648 = vmatmul.f32.gmra.mxu1 %v653_v2  ;;  %v659_v60 = vsel %vm644_vm1, %v657_v45, %v658_v54  ;;  %1428 = vmatmul.f32.gmra.mxu3 %v5173_v38  ;;  %736 = vst [vmem:[#allocation2 + $0x148] sm:$0x7f] %v661_v34  ;;  %v927_v45 = vld [vmem:[#allocation2 + $0xe8] sm:$0xff] }
 0x11b   : > { %733 = vst [vmem:[#allocation2 + $0x100] sm:$0xff] %v659_v60 }
 0x11c   : > { %1300 = vmatmul.f32.gmra.mxu2 %v915_v16  ;;  %v1854_v16 = vld [vmem:[#allocation7 + $0x3d0] sm:$0xff] }
 0x11d   : > { %v5374_v48 = vpop.f32.mrf.mxu0 }
 0x11f   : > { %v1123_v6 = vpop.f32.mrf.mxu2 }
 0x120   : > { %v5376_v61 = vadd.f32 %v1236_v57, %v1123_v6  ;;  %1532 = vmatmul.f32.gmra.mxu0 %v5057_v7  ;;  %v1855_v57 = vld [vmem:[#allocation7 + $0x3d8] sm:$0xff]  ;;  %v1251_v7 = vpop.f32.mrf.mxu3  ;;  %v5391_v38 = vpop.f32.mrf.mxu1 }
 0x121   : > { %1993 = vmatpush.msra.mxu3 %v1855_v57 }
 0x122   : > { %1651 = vmatmul.f32.gmra.mxu1 %v921_v62  ;;  %1431 = vmatmul.f32.gmra.mxu3 %v5153_v18  ;;  %v1838_v18 = vld [vmem:[#allocation7 + $0x350] sm:$0xff] }
 0x123   : > { %1881 = vmatpush.msra.mxu2 %v1838_v18  ;;  %1994 = vmatpush.msra.mxu3 %v1854_v16 }
 0x124   : > { %1303 = vmatmul.f32.gmra.mxu2 %v653_v2  ;;  %v1871_v2 = vld [vmem:[#allocation7 + $0x458] sm:$0xff] }
 0x125   : > { %v5385_v59 = vpop.f32.mrf.mxu0  ;;  %2106 = vmatpush.msra.mxu0 %v1871_v2 }
 0x127   : > { %v1126_v4 = vpop.f32.mrf.mxu2 }
 0x128   : > { %v5387_v44 = vadd.f32 %v1239_v20, %v1126_v4  ;;  %1535 = vmatmul.f32.gmra.mxu0 %v5073_v21  ;;  %v1254_v31 = vpop.f32.mrf.mxu3  ;;  %v660_v20 = vrot.slane %v5181_v43, 1  ;;  %v5406_v54 = vpop.f32.mrf.mxu1 }
 0x12a   : > { %1654 = vmatmul.f32.gmra.mxu1 %v656_v23  ;;  %v662_v21 = vsel %vm644_vm1, %v660_v20, %v661_v34  ;;  %1434 = vmatmul.f32.gmra.mxu3 %v5213_v11  ;;  %v1870_v11 = vld [vmem:[#allocation7 + $0x450] sm:$0xff] }
 0x12b   : > { %735 = vst [vmem:[#allocation2 + $0x130] sm:$0xff] %v662_v21  ;;  %2107 = vmatpush.msra.mxu0 %v1870_v11 }
 0x12c   : > { %1306 = vmatmul.f32.gmra.mxu2 %v921_v62  ;;  %v664_v62 = vrot.slane %v5257_v55, 1 }
 0x12d   : > { %v5393_v33 = vpop.f32.mrf.mxu0 }
 0x12e   : > { %738 = vst [vmem:[#allocation2 + $0x178] sm:$0x7f] %v664_v62 }
 0x12f   : > { %v1129_v28 = vpop.f32.mrf.mxu2 }
 0x130   : > { %v5395_v30 = vadd.f32 %v1242_v27, %v1129_v28  ;;  %1538 = vmatmul.f32.gmra.mxu0 %v5099_v41  ;;  %v1257_v41 = vpop.f32.mrf.mxu3  ;;  %v5417_v2 = vpop.f32.mrf.mxu1 }
 0x132   : > { %1657 = vmatmul.f32.gmra.mxu1 %v927_v45  ;;  %1437 = vmatmul.f32.gmra.mxu3 %v5193_v51  ;;  %v1837_v51 = vld [vmem:[#allocation7 + $0x348] sm:$0xff] }
 0x133   : > { %1882 = vmatpush.msra.mxu2 %v1837_v51 }
 0x134   : > { %1309 = vmatmul.f32.gmra.mxu2 %v656_v23 }
 0x135   : > { %v5402_v8 = vpop.f32.mrf.mxu0 }
 0x137   : > { %v1132_v27 = vpop.f32.mrf.mxu2 }
 0x138   : > { %v5404_v6 = vadd.f32 %v1245_v42, %v1132_v27  ;;  %1541 = vmatmul.f32.gmra.mxu0 %v5108_v46  ;;  %v1260_v4 = vpop.f32.mrf.mxu3  ;;  %v663_v42 = vrot.slane %v5221_v17, 1  ;;  %v5429_v16 = vpop.f32.mrf.mxu1 }
 0x13a   : > { %1660 = vmatmul.f32.gmra.mxu1 %v659_v60  ;;  %v5420_v46 = vsel %vm644_vm1, %v663_v42, %v664_v62  ;;  %1440 = vmatmul.f32.gmra.mxu3 %v5253_v50  ;;  %v1869_v50 = vld [vmem:[#allocation7 + $0x448] sm:$0xff] }
 0x13b   : > { %737 = vst [vmem:[#allocation2 + $0x160] sm:$0xff] %v5420_v46  ;;  %2108 = vmatpush.msra.mxu0 %v1869_v50 }
 0x13c   : > { %1312 = vmatmul.f32.gmra.mxu2 %v927_v45 }
 0x13d   : > { %v5410_v32 = vpop.f32.mrf.mxu0 }
 0x13f   : > { %v1135_v23 = vpop.f32.mrf.mxu2 }
 0x140   : > { %v5412_v57 = vadd.f32 %v1248_v63, %v1135_v23  ;;  %1544 = vmatmul.f32.gmra.mxu0 %v5137_v10  ;;  %v1853_v63 = vld [vmem:[#allocation7 + $0x3c8] sm:$0xff]  ;;  %v933_v10 = vld [vmem:[#allocation2 + $0x118] sm:$0xff]  ;;  %v1263_v18 = vpop.f32.mrf.mxu3  ;;  %v667_v23 = vrot.slane %v5295_v35, 1  ;;  %v5444_v42 = vpop.f32.mrf.mxu1 }
 0x141   : > { %1995 = vmatpush.msra.mxu3 %v1853_v63 }
 0x142   : > { %7266 = vst [vmem:[#allocation17_spill] sm:$0xff] %v5412_v57  ;;  %1663 = vmatmul.f32.gmra.mxu1 %v933_v10  ;;  %1443 = vmatmul.f32.gmra.mxu3 %v5233_v26  ;;  %v1836_v26 = vld [vmem:[#allocation7 + $0x340] sm:$0xff] }
 0x143   : > { %740 = vst [vmem:[#allocation2 + $0x1a8] sm:$0x7f] %v667_v23  ;;  %1883 = vmatpush.msra.mxu2 %v1836_v26  ;;  %v4549_v26 = vld [vmem:[#allocation2 + $0x1d0] sm:$0xff] }
 0x144   : > { %1315 = vmatmul.f32.gmra.mxu2 %v659_v60 }
 0x145   : > { %v5424_v20 = vpop.f32.mrf.mxu0 }
 0x147   : > { %v1138_v28 = vpop.f32.mrf.mxu2 }
 0x148   : > { %v5426_v34 = vadd.f32 %v1251_v7, %v1138_v28  ;;  %1547 = vmatmul.f32.gmra.mxu0 %v5141_v12  ;;  %v1266_v11 = vpop.f32.mrf.mxu3  ;;  %v666_v7 = vrot.slane %v5261_v58, 1 }
 0x14a   : > { %7267 = vst [vmem:[#allocation18_spill] sm:$0xff] %v5426_v34  ;;  %1666 = vmatmul.f32.gmra.mxu1 %v662_v21  ;;  %v5440_v12 = vsel %vm644_vm1, %v666_v7, %v667_v23  ;;  %1446 = vmatmul.f32.gmra.mxu3 %v5290_v29  ;;  %v1868_v29 = vld [vmem:[#allocation7 + $0x440] sm:$0xff] }
 0x14b   : > { %739 = vst [vmem:[#allocation2 + $0x190] sm:$0xff] %v5440_v12  ;;  %2109 = vmatpush.msra.mxu0 %v1868_v29 }
 0x14c   : > { %1318 = vmatmul.f32.gmra.mxu2 %v933_v10 }
 0x14d   : > { %v5432_v27 = vpop.f32.mrf.mxu0 }
 0x14f   : > { %v1141_v60 = vpop.f32.mrf.mxu2 }
 0x150   : > { %v5434_v45 = vadd.f32 %v1254_v31, %v1141_v60  ;;  %1550 = vmatmul.f32.gmra.mxu0 %v5177_v40  ;;  %v1852_v31 = vld [vmem:[#allocation7 + $0x3c0] sm:$0xff]  ;;  %v939_v40 = vld [vmem:[#allocation2 + $0x148] sm:$0xff]  ;;  %v1269_v28 = vpop.f32.mrf.mxu3  ;;  %v5456_v60 = vpop.f32.mrf.mxu1 }
 0x151   : > { %1996 = vmatpush.msra.mxu3 %v1852_v31  ;;  %v670_v31 = vrot.slane %v4549_v26, 1 }
 0x152   : > { %7268 = vst [vmem:[#allocation19_spill] sm:$0xff] %v5434_v45  ;;  %1669 = vmatmul.f32.gmra.mxu1 %v939_v40  ;;  %1449 = vmatmul.f32.gmra.mxu3 %v5273_v1  ;;  %v1835_v1 = vld [vmem:[#allocation7 + $0x338] sm:$0xff]  ;;  %v818_v45 = vld [vmem:[#allocation2 + $0x1d0] sm:$0xff] }
 0x153   : > { %742 = vst [vmem:[#allocation2 + $0x1d8] sm:$0x7f] %v670_v31  ;;  %1884 = vmatpush.msra.mxu2 %v1835_v1 }
 0x154   : > { %1321 = vmatmul.f32.gmra.mxu2 %v662_v21 }
 0x155   : > { %v5446_v51 = vpop.f32.mrf.mxu0 }
 0x157   : > { %v1144_v62 = vpop.f32.mrf.mxu2 }
 0x158   : > { %v5448_v63 = vadd.f32 %v1257_v41, %v1144_v62  ;;  %1553 = vmatmul.f32.gmra.mxu0 %v5181_v43  ;;  %v5458_v7 = vpop.f32.mrf.mxu3  ;;  %v4548_v41 = vld [vmem:[#allocation2 + $0x1b8] sm:$0xff] }
 0x159   : > { %v669_v23 = vrot.slane %v4548_v41, 1  ;;  %v5475_v41 = vpop.f32.mrf.mxu1 }
 0x15a   : > { %7269 = vst [vmem:[#allocation20_spill] sm:$0xff] %v5448_v63  ;;  %1672 = vmatmul.f32.gmra.mxu1 %v5420_v46  ;;  %1452 = vmatmul.f32.gmra.mxu3 %v5319_v13  ;;  %v1867_v13 = vld [vmem:[#allocation7 + $0x438] sm:$0xff] }
 0x15b   : > { %v5463_v43 = vsel %vm644_vm1, %v669_v23, %v670_v31  ;;  %2110 = vmatpush.msra.mxu0 %v1867_v13  ;;  %v4550_v31 = vld [vmem:[#allocation2 + $0x1e8] sm:$0xff]  ;;  %v1850_v13 = vld [vmem:[#allocation7 + $0x3b0] sm:$0xff] }
 0x15c   : > { %1324 = vmatmul.f32.gmra.mxu2 %v939_v40  ;;  %741 = vst [vmem:[#allocation2 + $0x1c0] sm:$0xff] %v5463_v43  ;;  %v672_v1 = vrot.slane %v4550_v31, 1 }
 0x15d   : > { %v5452_v10 = vpop.f32.mrf.mxu0 }
 0x15f   : > { %v1147_v21 = vpop.f32.mrf.mxu2 }
 0x160   : > { %v5454_v50 = vadd.f32 %v1260_v4, %v1147_v21  ;;  %1556 = vmatmul.f32.gmra.mxu0 %v5217_v14  ;;  %v1851_v4 = vld [vmem:[#allocation7 + $0x3b8] sm:$0xff]  ;;  %v5472_v21 = vpop.f32.mrf.mxu3 }
 0x161   : > { %1997 = vmatpush.msra.mxu3 %v1851_v4  ;;  %v945_v14 = vld [vmem:[#allocation2 + $0x178] sm:$0xff]  ;;  %v4551_v4 = vld [vmem:[#allocation2 + $0x200] sm:$0xff] }
 0x162   : > { %7270 = vst [vmem:[#allocation21_spill] sm:$0xff] %v5454_v50  ;;  %1675 = vmatmul.f32.gmra.mxu1 %v945_v14  ;;  %1455 = vmatmul.f32.gmra.mxu3 %v5307_v47  ;;  %v814_v47 = vld [vmem:[#allocation2 + $0x1b0] sm:$0xff] }
 0x163   : > { %1998 = vmatpush.msra.mxu3 %v1850_v13 }
 0x164   : > { %1327 = vmatmul.f32.gmra.mxu2 %v5420_v46 }
 0x165   : > { %v5468_v40 = vpop.f32.mrf.mxu0 }
 0x167   : > { %v1150_v62 = vpop.f32.mrf.mxu2 }
 0x168   : > { %v5470_v29 = vadd.f32 %v1263_v18, %v1150_v62  ;;  %1559 = vmatmul.f32.gmra.mxu0 %v5221_v17  ;;  %v5482_v18 = vpop.f32.mrf.mxu3  ;;  %v673_v17 = vrot.slane %v4551_v4, 1 }
 0x16a   : > { %7271 = vst [vmem:[#allocation22_spill] sm:$0xff] %v5470_v29  ;;  %1678 = vmatmul.f32.gmra.mxu1 %v5440_v12  ;;  %v5487_v62 = vsel %vm644_vm1, %v672_v1, %v673_v17  ;;  %1458 = vmatmul.f32.gmra.mxu3 %v814_v47  ;;  %v2925_v47 = vld [vmem:[#allocation9 + $0x1f8] sm:$0xff] }
 0x16b   : > { %744 = vst [vmem:[#allocation2 + $0x208] sm:$0x7f] %v673_v17  ;;  %2958 = vmatpush.msra.mxu1 %v2925_v47 }
 0x16c   : > { %1330 = vmatmul.f32.gmra.mxu2 %v945_v14  ;;  %v5490_v14 = vpop.f32.mrf.mxu1  ;;  %743 = vst [vmem:[#allocation2 + $0x1f0] sm:$0xff] %v5487_v62 }
 0x16d   : > { %v5478_v23 = vpop.f32.mrf.mxu0 }
 0x16f   : > { %v1153_v46 = vpop.f32.mrf.mxu2 }
 0x170   : > { %v5480_v26 = vadd.f32 %v1266_v11, %v1153_v46  ;;  %1562 = vmatmul.f32.gmra.mxu0 %v5257_v55  ;;  %v1834_v11 = vld [vmem:[#allocation7 + $0x330] sm:$0xff]  ;;  %v951_v55 = vld [vmem:[#allocation2 + $0x1a8] sm:$0xff]  ;;  %v5495_v1 = vpop.f32.mrf.mxu3 }
 0x171   : > { %1885 = vmatpush.msra.mxu2 %v1834_v11 }
 0x172   : > { %7272 = vst [vmem:[#allocation23_spill] sm:$0xff] %v5480_v26  ;;  %1681 = vmatmul.f32.gmra.mxu1 %v951_v55  ;;  %v1866_v26 = vld [vmem:[#allocation7 + $0x430] sm:$0xff] }
 0x173   : > { %2111 = vmatpush.msra.mxu0 %v1866_v26  ;;  %v820_v26 = vld [vmem:[#allocation2 + $0x1e0] sm:$0xff] }
 0x174   : > { %1333 = vmatmul.f32.gmra.mxu2 %v5440_v12  ;;  %v817_v12 = vld [vmem:[#allocation2 + $0x1c8] sm:$0xff]  ;;  %v1631_v17 = vpop.f32.mrf.mxu1 }
 0x175   : > { %v1518_v31 = vpop.f32.mrf.mxu0  ;;  %1461 = vmatmul.f32.gmra.mxu3 %v817_v12  ;;  %v1180_v12 = vadd.f32 %v5321_v0, %v5331_v37  ;;  %v1183_v0 = vadd.f32 %v5325_v25, %v5337_v52  ;;  %v826_v52 = vld [vmem:[#allocation2 + $0x210] sm:$0xff] }
 0x177   : > { %v1156_v46 = vpop.f32.mrf.mxu2 }
 0x178   : > { %v5493_v4 = vadd.f32 %v1269_v28, %v1156_v46  ;;  %1565 = vmatmul.f32.gmra.mxu0 %v5261_v58  ;;  %v5501_v28 = vpop.f32.mrf.mxu3  ;;  %v4552_v46 = vld [vmem:[#allocation2 + $0x218] sm:$0xff]  ;;  %v4553_v58 = vld [vmem:[#allocation2 + $0x230] sm:$0xff] }
 0x179   : > { %v676_v50 = vrot.slane %v4553_v58, 1  ;;  %v815_v58 = vld [vmem:[#allocation2 + $0x1b8] sm:$0xff] }
 0x17a   : > { %7273 = vst [vmem:[#allocation24_spill] sm:$0xff] %v5493_v4  ;;  %1684 = vmatmul.f32.gmra.mxu1 %v5463_v43  ;;  %v675_v4 = vrot.slane %v4552_v46, 1 }
 0x17b   : > { %746 = vst [vmem:[#allocation2 + $0x238] sm:$0x7f] %v676_v50 }
 0x17c   : > { %1336 = vmatmul.f32.gmra.mxu2 %v951_v55  ;;  %v5506_v55 = vsel %vm644_vm1, %v675_v4, %v676_v50  ;;  %v1634_v47 = vpop.f32.mrf.mxu1 }
 0x17d   : > { %v1521_v11 = vpop.f32.mrf.mxu0  ;;  %745 = vst [vmem:[#allocation2 + $0x220] sm:$0xff] %v5506_v55  ;;  %1464 = vmatmul.f32.gmra.mxu3 %v820_v26  ;;  %v823_v26 = vld [vmem:[#allocation2 + $0x1f8] sm:$0xff] }
 0x17f   : > { %v1159_v29 = vpop.f32.mrf.mxu2 }
 0x180   : > { %v5499_v13 = vadd.f32 %v5458_v7, %v1159_v29  ;;  %1568 = vmatmul.f32.gmra.mxu0 %v5295_v35  ;;  %v1833_v7 = vld [vmem:[#allocation7 + $0x328] sm:$0xff]  ;;  %v5512_v50 = vpop.f32.mrf.mxu3 }
 0x181   : > { %v1849_v29 = vld [vmem:[#allocation7 + $0x3a8] sm:$0xff]  ;;  %1886 = vmatpush.msra.mxu2 %v1833_v7 }
 0x182   : > { %7274 = vst [vmem:[#allocation25_spill] sm:$0xff] %v5499_v13  ;;  %1999 = vmatpush.msra.mxu3 %v1849_v29  ;;  %v957_v13 = vld [vmem:[#allocation2 + $0x1d8] sm:$0xff]  ;;  %v1865_v7 = vld [vmem:[#allocation7 + $0x428] sm:$0xff]  ;;  %v2924_v29 = vld [vmem:[#allocation9 + $0x1f0] sm:$0xff] }
 0x183   : > { %1687 = vmatmul.f32.gmra.mxu1 %v957_v13  ;;  %2112 = vmatpush.msra.mxu0 %v1865_v7  ;;  %v1186_v7 = vadd.f32 %v5333_v19, %v5347_v5  ;;  %v1864_v19 = vld [vmem:[#allocation7 + $0x420] sm:$0xff]  ;;  %v1189_v5 = vadd.f32 %v5339_v56, %v5355_v22 }
 0x184   : > { %1339 = vmatmul.f32.gmra.mxu2 %v5463_v43  ;;  %2959 = vmatpush.msra.mxu1 %v2924_v29  ;;  %v1637_v57 = vpop.f32.mrf.mxu1  ;;  %v832_v22 = vld [vmem:[#allocation2 + $0x240] sm:$0xff] }
 0x185   : > { %v1524_v35 = vpop.f32.mrf.mxu0  ;;  %1467 = vmatmul.f32.gmra.mxu3 %v823_v26  ;;  %v1848_v26 = vld [vmem:[#allocation7 + $0x3a0] sm:$0xff]  ;;  %2113 = vmatpush.msra.mxu0 %v1864_v19 }
 0x186   : > { %2000 = vmatpush.msra.mxu3 %v1848_v26 }
 0x187   : > { %v1292_v46 = vpop.f32.mrf.mxu2 }
 0x188   : > { %v1293_v4 = vadd.f32 %v1292_v46, %v1180_v12  ;;  %1571 = vmatmul.f32.gmra.mxu0 %v815_v58  ;;  %v4555_v58 = vld [vmem:[#allocation2 + $0x260] sm:$0xff] }
 0x18a   : > { %v1406_v43 = vadd.f32 %v5472_v21, %v1293_v4  ;;  %v5519_v21 = vpop.f32.mrf.mxu3  ;;  %v679_v4 = vrot.slane %v4555_v58, 1 }
 0x18b   : > { %1690 = vmatmul.f32.gmra.mxu1 %v5487_v62 }
 0x18c   : > { %1342 = vmatmul.f32.gmra.mxu2 %v957_v13  ;;  %v1519_v63 = vadd.f32 %v1518_v31, %v1406_v43  ;;  %v4554_v31 = vld [vmem:[#allocation2 + $0x248] sm:$0xff]  ;;  %748 = vst [vmem:[#allocation2 + $0x268] sm:$0x7f] %v679_v4 }
 0x18d   : > { %v1527_v46 = vpop.f32.mrf.mxu0  ;;  %v678_v13 = vrot.slane %v4554_v31, 1  ;;  %1470 = vmatmul.f32.gmra.mxu3 %v826_v52  ;;  %v1640_v31 = vpop.f32.mrf.mxu1 }
 0x18e   : > { %v5517_v37 = vadd.f32 %v1631_v17, %v1519_v63  ;;  %v1832_v17 = vld [vmem:[#allocation7 + $0x320] sm:$0xff] }
 0x18f   : > { %v1295_v12 = vpop.f32.mrf.mxu2  ;;  %v5524_v25 = vsel %vm644_vm1, %v678_v13, %v679_v4  ;;  %1887 = vmatpush.msra.mxu2 %v1832_v17  ;;  %v829_v13 = vld [vmem:[#allocation2 + $0x228] sm:$0xff] }
 0x190   : > { %v1296_v34 = vadd.f32 %v1295_v12, %v1183_v0  ;;  %1574 = vmatmul.f32.gmra.mxu0 %v818_v45  ;;  %747 = vst [vmem:[#allocation2 + $0x250] sm:$0xff] %v5524_v25  ;;  %v5532_v0 = vld [vmem:[#allocation2 + $0x1e8] sm:$0xff] }
 0x191   : > { %v963_v12 = vld [vmem:[#allocation2 + $0x208] sm:$0xff] }
 0x192   : > { %v1409_v43 = vadd.f32 %v5482_v18, %v1296_v34  ;;  %v2923_v4 = vld [vmem:[#allocation9 + $0x1e8] sm:$0xff] }
 0x193   : > { %1693 = vmatmul.f32.gmra.mxu1 %v963_v12 }
 0x194   : > { %1345 = vmatmul.f32.gmra.mxu2 %v5487_v62  ;;  %v1522_v63 = vadd.f32 %v1521_v11, %v1409_v43  ;;  %v5534_v62 = vpop.f32.mrf.mxu3  ;;  %2960 = vmatpush.msra.mxu1 %v2923_v4  ;;  %v827_v4 = vld [vmem:[#allocation2 + $0x218] sm:$0xff] }
 0x195   : > { %v1530_v18 = vpop.f32.mrf.mxu0  ;;  %1473 = vmatmul.f32.gmra.mxu3 %v829_v13  ;;  %v1847_v13 = vld [vmem:[#allocation7 + $0x398] sm:$0xff] }
 0x196   : > { %v5530_v34 = vadd.f32 %v1634_v47, %v1522_v63  ;;  %v5542_v63 = vld [vmem:[#allocation2 + $0x200] sm:$0xff]  ;;  %2001 = vmatpush.msra.mxu3 %v1847_v13 }
 0x197   : > { %v1298_v45 = vpop.f32.mrf.mxu2 }
 0x198   : > { %v1299_v29 = vadd.f32 %v1298_v45, %v1186_v7  ;;  %1577 = vmatmul.f32.gmra.mxu0 %v5532_v0  ;;  %v4557_v7 = vld [vmem:[#allocation2 + $0x290] sm:$0xff] }
 0x199   : > { %v682_v45 = vrot.slane %v4557_v7, 1  ;;  %v1863_v7 = vld [vmem:[#allocation7 + $0x418] sm:$0xff] }
 0x19a   : > { %v1412_v11 = vadd.f32 %v5495_v1, %v1299_v29  ;;  %2114 = vmatpush.msra.mxu0 %v1863_v7  ;;  %v833_v7 = vld [vmem:[#allocation2 + $0x248] sm:$0xff] }
 0x19b   : > { %1696 = vmatmul.f32.gmra.mxu1 %v5506_v55  ;;  %750 = vst [vmem:[#allocation2 + $0x298] sm:$0x7f] %v682_v45 }
 0x19c   : > { %1348 = vmatmul.f32.gmra.mxu2 %v963_v12  ;;  %v1525_v58 = vadd.f32 %v1524_v35, %v1412_v11  ;;  %v5544_v17 = vpop.f32.mrf.mxu3  ;;  %v4556_v35 = vld [vmem:[#allocation2 + $0x278] sm:$0xff]  ;;  %v1643_v12 = vpop.f32.mrf.mxu1 }
 0x19d   : > { %v1533_v52 = vpop.f32.mrf.mxu0  ;;  %v681_v26 = vrot.slane %v4556_v35, 1  ;;  %1476 = vmatmul.f32.gmra.mxu3 %v832_v22  ;;  %v1831_v11 = vld [vmem:[#allocation7 + $0x318] sm:$0xff] }
 0x19e   : > { %v5540_v47 = vadd.f32 %v1637_v57, %v1525_v58  ;;  %1888 = vmatpush.msra.mxu2 %v1831_v11  ;;  %v835_v35 = vld [vmem:[#allocation2 + $0x258] sm:$0xff] }
 0x19f   : > { %v1301_v43 = vpop.f32.mrf.mxu2  ;;  %v5550_v56 = vsel %vm644_vm1, %v681_v26, %v682_v45  ;;  %v2922_v45 = vld [vmem:[#allocation9 + $0x1e0] sm:$0xff] }
 0x1a0   : > { %v1302_v1 = vadd.f32 %v1301_v43, %v1189_v5  ;;  %1580 = vmatmul.f32.gmra.mxu0 %v5542_v63  ;;  %749 = vst [vmem:[#allocation2 + $0x280] sm:$0xff] %v5550_v56  ;;  %2961 = vmatpush.msra.mxu1 %v2922_v45  ;;  %v975_v45 = vld [vmem:[#allocation2 + $0x268] sm:$0xff] }
 0x1a2   : > { %v1415_v29 = vadd.f32 %v5501_v28, %v1302_v1  ;;  %v1192_v28 = vadd.f32 %v5351_v3, %v5366_v36  ;;  %v969_v1 = vld [vmem:[#allocation2 + $0x238] sm:$0xff]  ;;  %v1195_v3 = vadd.f32 %v5359_v15, %v5374_v48  ;;  %v838_v48 = vld [vmem:[#allocation2 + $0x270] sm:$0xff] }
 0x1a3   : > { %1699 = vmatmul.f32.gmra.mxu1 %v969_v1 }
 0x1a4   : > { %1351 = vmatmul.f32.gmra.mxu2 %v5506_v55  ;;  %v1528_v57 = vadd.f32 %v1527_v46, %v1415_v29  ;;  %v5558_v55 = vpop.f32.mrf.mxu3 }
 0x1a5   : > { %v1536_v5 = vpop.f32.mrf.mxu0  ;;  %1479 = vmatmul.f32.gmra.mxu3 %v835_v35 }
 0x1a6   : > { %v5556_v58 = vadd.f32 %v1640_v31, %v1528_v57  ;;  %v1646_v31 = vpop.f32.mrf.mxu1  ;;  %v830_v57 = vld [vmem:[#allocation2 + $0x230] sm:$0xff] }
 0x1a7   : > { %v1304_v19 = vpop.f32.mrf.mxu2 }
 0x1a8   : > { %v1305_v43 = vadd.f32 %v1304_v19, %v1192_v28  ;;  %1583 = vmatmul.f32.gmra.mxu0 %v827_v4  ;;  %v4559_v28 = vld [vmem:[#allocation2 + $0x2c0] sm:$0xff] }
 0x1a9   : > { %v685_v19 = vrot.slane %v4559_v28, 1 }
 0x1aa   : > { %v1418_v46 = vadd.f32 %v5512_v50, %v1305_v43  ;;  %v1830_v43 = vld [vmem:[#allocation7 + $0x310] sm:$0xff] }
 0x1ab   : > { %1702 = vmatmul.f32.gmra.mxu1 %v5524_v25  ;;  %752 = vst [vmem:[#allocation2 + $0x2c8] sm:$0x7f] %v685_v19  ;;  %1889 = vmatpush.msra.mxu2 %v1830_v43 }
 0x1ac   : > { %1354 = vmatmul.f32.gmra.mxu2 %v969_v1  ;;  %v1531_v26 = vadd.f32 %v1530_v18, %v1418_v46  ;;  %v5565_v50 = vpop.f32.mrf.mxu3  ;;  %v4558_v18 = vld [vmem:[#allocation2 + $0x2a8] sm:$0xff]  ;;  %v1846_v1 = vld [vmem:[#allocation7 + $0x390] sm:$0xff]  ;;  %v1198_v46 = vadd.f32 %v5371_v49, %v5385_v59  ;;  %v1201_v49 = vadd.f32 %v5382_v53, %v5393_v33 }
 0x1ad   : > { %v1539_v22 = vpop.f32.mrf.mxu0  ;;  %v684_v13 = vrot.slane %v4558_v18, 1  ;;  %1482 = vmatmul.f32.gmra.mxu3 %v838_v48  ;;  %v1862_v18 = vld [vmem:[#allocation7 + $0x410] sm:$0xff] }
 0x1ae   : > { %v5563_v36 = vadd.f32 %v1643_v12, %v1531_v26  ;;  %2002 = vmatpush.msra.mxu3 %v1846_v1  ;;  %2115 = vmatpush.msra.mxu0 %v1862_v18  ;;  %v981_v18 = vld [vmem:[#allocation2 + $0x298] sm:$0xff] }
 0x1af   : > { %v1307_v29 = vpop.f32.mrf.mxu2  ;;  %v5570_v15 = vsel %vm644_vm1, %v684_v13, %v685_v19  ;;  %v836_v19 = vld [vmem:[#allocation2 + $0x260] sm:$0xff] }
 0x1b0   : > { %v1308_v11 = vadd.f32 %v1307_v29, %v1195_v3  ;;  %1586 = vmatmul.f32.gmra.mxu0 %v830_v57  ;;  %751 = vst [vmem:[#allocation2 + $0x2b0] sm:$0xff] %v5570_v15  ;;  %v841_v57 = vld [vmem:[#allocation2 + $0x288] sm:$0xff] }
 0x1b2   : > { %v1421_v4 = vadd.f32 %v5519_v21, %v1308_v11 }
 0x1b3   : > { %1705 = vmatmul.f32.gmra.mxu1 %v975_v45 }
 0x1b4   : > { %1357 = vmatmul.f32.gmra.mxu2 %v5524_v25  ;;  %v1534_v12 = vadd.f32 %v1533_v52, %v1421_v4  ;;  %v5578_v29 = vpop.f32.mrf.mxu3  ;;  %v1649_v25 = vpop.f32.mrf.mxu1 }
 0x1b5   : > { %v1542_v26 = vpop.f32.mrf.mxu0  ;;  %1485 = vmatmul.f32.gmra.mxu3 %v841_v57  ;;  %v839_v57 = vld [vmem:[#allocation2 + $0x278] sm:$0xff] }
 0x1b6   : > { %v5576_v21 = vadd.f32 %v1646_v31, %v1534_v12  ;;  %v2921_v31 = vld [vmem:[#allocation9 + $0x1d8] sm:$0xff]  ;;  %v4561_v12 = vld [vmem:[#allocation2 + $0x2f0] sm:$0xff] }
 0x1b7   : > { %v1310_v35 = vpop.f32.mrf.mxu2  ;;  %2962 = vmatpush.msra.mxu1 %v2921_v31  ;;  %v688_v43 = vrot.slane %v4561_v12, 1 }
 0x1b8   : > { %v1311_v3 = vadd.f32 %v1310_v35, %v1198_v46  ;;  %1589 = vmatmul.f32.gmra.mxu0 %v833_v7  ;;  %v844_v46 = vld [vmem:[#allocation2 + $0x2a0] sm:$0xff]  ;;  %v1829_v7 = vld [vmem:[#allocation7 + $0x308] sm:$0xff] }
 0x1b9   : > { %754 = vst [vmem:[#allocation2 + $0x2f8] sm:$0x7f] %v688_v43  ;;  %1890 = vmatpush.msra.mxu2 %v1829_v7  ;;  %v1844_v7 = vld [vmem:[#allocation7 + $0x380] sm:$0xff] }
 0x1ba   : > { %v1424_v52 = vadd.f32 %v5534_v62, %v1311_v3  ;;  %v4560_v62 = vld [vmem:[#allocation2 + $0x2d8] sm:$0xff]  ;;  %v1845_v3 = vld [vmem:[#allocation7 + $0x388] sm:$0xff] }
 0x1bb   : > { %1708 = vmatmul.f32.gmra.mxu1 %v5550_v56  ;;  %2003 = vmatpush.msra.mxu3 %v1845_v3 }
 0x1bc   : > { %1360 = vmatmul.f32.gmra.mxu2 %v975_v45  ;;  %v1537_v11 = vadd.f32 %v1536_v5, %v1424_v52  ;;  %v5585_v48 = vpop.f32.mrf.mxu3  ;;  %v687_v5 = vrot.slane %v4560_v62, 1  ;;  %v1652_v53 = vpop.f32.mrf.mxu1  ;;  %v842_v62 = vld [vmem:[#allocation2 + $0x290] sm:$0xff] }
 0x1bd   : > { %v1545_v28 = vpop.f32.mrf.mxu0  ;;  %1488 = vmatmul.f32.gmra.mxu3 %v844_v46 }
 0x1be   : > { %v5583_v59 = vadd.f32 %v1649_v25, %v1537_v11  ;;  %v5590_v33 = vsel %vm644_vm1, %v687_v5, %v688_v43  ;;  %2004 = vmatpush.msra.mxu3 %v1844_v7  ;;  %v854_v7 = vld [vmem:[#allocation2 + $0x2f0] sm:$0xff] }
 0x1bf   : > { %v1313_v13 = vpop.f32.mrf.mxu2  ;;  %753 = vst [vmem:[#allocation2 + $0x2e0] sm:$0xff] %v5590_v33 }
 0x1c0   : > { %v1314_v4 = vadd.f32 %v1313_v13, %v1201_v49  ;;  %1592 = vmatmul.f32.gmra.mxu0 %v836_v19  ;;  %v1861_v13 = vld [vmem:[#allocation7 + $0x408] sm:$0xff] }
 0x1c1   : > { %2116 = vmatpush.msra.mxu0 %v1861_v13 }
 0x1c2   : > { %v1427_v1 = vadd.f32 %v5544_v17, %v1314_v4  ;;  %v1204_v17 = vadd.f32 %v5391_v38, %v5402_v8  ;;  %v1207_v38 = vadd.f32 %v5406_v54, %v5410_v32  ;;  %v2920_v8 = vld [vmem:[#allocation9 + $0x1d0] sm:$0xff] }
 0x1c3   : > { %1711 = vmatmul.f32.gmra.mxu1 %v981_v18  ;;  %v850_v54 = vld [vmem:[#allocation2 + $0x2d0] sm:$0xff] }
 0x1c4   : > { %1363 = vmatmul.f32.gmra.mxu2 %v5550_v56  ;;  %v1540_v35 = vadd.f32 %v1539_v22, %v1427_v1  ;;  %v5598_v49 = vpop.f32.mrf.mxu3  ;;  %v847_v22 = vld [vmem:[#allocation2 + $0x2b8] sm:$0xff]  ;;  %2963 = vmatpush.msra.mxu1 %v2920_v8  ;;  %v848_v8 = vld [vmem:[#allocation2 + $0x2c0] sm:$0xff] }
 0x1c5   : > { %v1548_v52 = vpop.f32.mrf.mxu0  ;;  %1491 = vmatmul.f32.gmra.mxu3 %v847_v22  ;;  %v1860_v22 = vld [vmem:[#allocation7 + $0x400] sm:$0xff] }
 0x1c6   : > { %v5596_v45 = vadd.f32 %v1652_v53, %v1540_v35  ;;  %v1828_v35 = vld [vmem:[#allocation7 + $0x300] sm:$0xff]  ;;  %2117 = vmatpush.msra.mxu0 %v1860_v22 }
 0x1c7   : > { %v1316_v25 = vpop.f32.mrf.mxu2  ;;  %1891 = vmatpush.msra.mxu2 %v1828_v35 }
 0x1c8   : > { %v1317_v11 = vadd.f32 %v1316_v25, %v1204_v17  ;;  %1595 = vmatmul.f32.gmra.mxu0 %v839_v57  ;;  %v845_v25 = vld [vmem:[#allocation2 + $0x2a8] sm:$0xff] }
 0x1ca   : > { %v1430_v56 = vadd.f32 %v5558_v55, %v1317_v11  ;;  %v4562_v55 = vld [vmem:[#allocation2 + $0x308] sm:$0xff] }
 0x1cb   : > { %1714 = vmatmul.f32.gmra.mxu1 %v5570_v15  ;;  %v690_v43 = vrot.slane %v4562_v55, 1  ;;  %v987_v11 = vld [vmem:[#allocation2 + $0x2c8] sm:$0xff] }
 0x1cc   : > { %1366 = vmatmul.f32.gmra.mxu2 %v981_v18  ;;  %v5601_v31 = vadd.f32 %v1542_v26, %v1430_v56  ;;  %v5605_v12 = vpop.f32.mrf.mxu3  ;;  %v4563_v26 = vld [vmem:[#allocation2 + $0x320] sm:$0xff] }
 0x1cd   : > { %v1551_v4 = vpop.f32.mrf.mxu0  ;;  %v691_v1 = vrot.slane %v4563_v26, 1  ;;  %1494 = vmatmul.f32.gmra.mxu3 %v850_v54 }
 0x1cf   : > { %v1319_v19 = vpop.f32.mrf.mxu2  ;;  %v5610_v46 = vsel %vm644_vm1, %v690_v43, %v691_v1  ;;  %756 = vst [vmem:[#allocation2 + $0x328] sm:$0x7f] %v691_v1  ;;  %v851_v43 = vld [vmem:[#allocation2 + $0x2d8] sm:$0xff] }
 0x1d0   : > { %v1320_v5 = vadd.f32 %v1319_v19, %v1207_v38  ;;  %1598 = vmatmul.f32.gmra.mxu0 %v842_v62  ;;  %755 = vst [vmem:[#allocation2 + $0x310] sm:$0xff] %v5610_v46  ;;  %v993_v1 = vld [vmem:[#allocation2 + $0x2f8] sm:$0xff] }
 0x1d2   : > { %v1433_v53 = vadd.f32 %v5565_v50, %v1320_v5  ;;  %v1210_v50 = vadd.f32 %v5417_v2, %v5424_v20  ;;  %v1213_v2 = vadd.f32 %v5429_v16, %v5432_v27  ;;  %v2919_v20 = vld [vmem:[#allocation9 + $0x1c8] sm:$0xff]  ;;  %v1216_v16 = vadd.f32 %v5444_v42, %v5446_v51 }
 0x1d3   : > { %1717 = vmatmul.f32.gmra.mxu1 %v987_v11 }
 0x1d4   : > { %1369 = vmatmul.f32.gmra.mxu2 %v5570_v15  ;;  %v5613_v32 = vadd.f32 %v1545_v28, %v1433_v53  ;;  %v1447_v18 = vpop.f32.mrf.mxu3  ;;  %v853_v28 = vld [vmem:[#allocation2 + $0x2e8] sm:$0xff]  ;;  %2964 = vmatpush.msra.mxu1 %v2919_v20  ;;  %v1741_v20 = vld [vmem:[#allocation2 + $0xb0] sm:$0xff] }
 0x1d5   : > { %v1554_v17 = vpop.f32.mrf.mxu0  ;;  %1497 = vmatmul.f32.gmra.mxu3 %v853_v28 }
 0x1d6   : > { %v999_v22 = vld [vmem:[#allocation2 + $0x328] sm:$0xff] }
 0x1d7   : > { %v1322_v3 = vpop.f32.mrf.mxu2 }
 0x1d8   : > { %v1323_v57 = vadd.f32 %v1322_v3, %v1210_v50  ;;  %1601 = vmatmul.f32.gmra.mxu0 %v845_v25 }
 0x1da   : > { %v1436_v15 = vadd.f32 %v5578_v29, %v1323_v57 }
 0x1db   : > { %1720 = vmatmul.f32.gmra.mxu1 %v5590_v33 }
 0x1dc   : > { %1372 = vmatmul.f32.gmra.mxu2 %v987_v11  ;;  %v5619_v56 = vadd.f32 %v1548_v52, %v1436_v15  ;;  %v1450_v62 = vpop.f32.mrf.mxu3  ;;  %v1732_v52 = vld [vmem:[#allocation2 + $0x68] sm:$0xff]  ;;  %v1733_v11 = vld [vmem:[#allocation2 + $0x70] sm:$0xff] }
 0x1dd   : > { %v1557_v38 = vpop.f32.mrf.mxu0  ;;  %2005 = vmatmul.f32.vlgmr.msra.gmra.mxu3 %v1732_v52 }
 0x1df   : > { %v1325_v13 = vpop.f32.mrf.mxu2 }
 0x1e0   : > { %v1326_v19 = vadd.f32 %v1325_v13, %v1213_v2  ;;  %1604 = vmatmul.f32.gmra.mxu0 %v848_v8  ;;  %v2917_v13 = vld [vmem:[#allocation9 + $0x1b8] sm:$0xff] }
 0x1e2   : > { %v1439_v29 = vadd.f32 %v5585_v48, %v1326_v19  ;;  %v1735_v48 = vld [vmem:[#allocation2 + $0x80] sm:$0xff] }
 0x1e3   : > { %1723 = vmatmul.f32.gmra.mxu1 %v993_v1 }
 0x1e4   : > { %1375 = vmatmul.f32.gmra.mxu2 %v5590_v33  ;;  %v5626_v5 = vadd.f32 %v1551_v4, %v1439_v29  ;;  %v1453_v53 = vpop.f32.mrf.mxu3  ;;  %v1219_v33 = vadd.f32 %v5456_v60, %v5452_v10  ;;  %v2918_v4 = vld [vmem:[#allocation9 + $0x1c0] sm:$0xff] }
 0x1e5   : > { %v1560_v55 = vpop.f32.mrf.mxu0  ;;  %2008 = vmatmul.f32.gmra.mxu3 %v1735_v48  ;;  %2965 = vmatpush.msra.mxu1 %v2918_v4  ;;  %v1731_v29 = vld [vmem:[#allocation2 + $0x60] sm:$0xff] }
 0x1e7   : > { %v1328_v27 = vpop.f32.mrf.mxu2  ;;  %2966 = vmatpush.msra.mxu1 %v2917_v13  ;;  %v1748_v13 = vld [vmem:[#allocation2 + $0xe8] sm:$0xff] }
 0x1e8   : > { %v1329_v26 = vadd.f32 %v1328_v27, %v1216_v16  ;;  %1607 = vmatmul.f32.gmra.mxu0 %v851_v43  ;;  %v1739_v43 = vld [vmem:[#allocation2 + $0xa0] sm:$0xff] }
 0x1ea   : > { %v1442_v54 = vadd.f32 %v5598_v49, %v1329_v26  ;;  %v1738_v49 = vld [vmem:[#allocation2 + $0x98] sm:$0xff] }
 0x1eb   : > { %v1734_v26 = vld [vmem:[#allocation2 + $0x78] sm:$0xff] }
 0x1ec   : > { %1378 = vmatmul.f32.gmra.mxu2 %v993_v1  ;;  %v5631_v35 = vadd.f32 %v1554_v17, %v1442_v54  ;;  %v1456_v3 = vpop.f32.mrf.mxu3  ;;  %v1222_v17 = vadd.f32 %v5475_v41, %v5468_v40  ;;  %v1736_v40 = vld [vmem:[#allocation2 + $0x88] sm:$0xff]  ;;  %v1747_v54 = vld [vmem:[#allocation2 + $0xe0] sm:$0xff] }
 0x1ed   : > { %v1563_v51 = vpop.f32.mrf.mxu0  ;;  %2011 = vmatmul.f32.gmra.mxu3 %v1738_v49 }
 0x1ef   : > { %v1331_v42 = vpop.f32.mrf.mxu2 }
 0x1f0   : > { %v1332_v50 = vadd.f32 %v1331_v42, %v1219_v33  ;;  %1610 = vmatmul.f32.gmra.mxu0 %v854_v7  ;;  %v1742_v42 = vld [vmem:[#allocation2 + $0xb8] sm:$0xff] }
 0x1f2   : > { %v1445_v25 = vadd.f32 %v5605_v12, %v1332_v50  ;;  %v1737_v50 = vld [vmem:[#allocation2 + $0x90] sm:$0xff] }
 0x1f4   : > { %1381 = vmatmul.f32.gmra.mxu2 %v5610_v46  ;;  %v5637_v57 = vadd.f32 %v1557_v38, %v1445_v25  ;;  %v1459_v28 = vpop.f32.mrf.mxu3  ;;  %v1225_v46 = vadd.f32 %v5490_v14, %v5478_v23 }
 0x1f5   : > { %v1566_v60 = vpop.f32.mrf.mxu0  ;;  %2014 = vmatmul.f32.gmra.mxu3 %v1741_v20 }
 0x1f7   : > { %v1334_v10 = vpop.f32.mrf.mxu2 }
 0x1f8   : > { %v1335_v15 = vadd.f32 %v1334_v10, %v1222_v17  ;;  %2118 = vmatmul.f32.vlgmr.msra.gmra.mxu0 %v1733_v11  ;;  %v1745_v10 = vld [vmem:[#allocation2 + $0xd0] sm:$0xff] }
 0x1fa   : > { %v1448_v2 = vadd.f32 %v1447_v18, %v1335_v15  ;;  %v1744_v18 = vld [vmem:[#allocation2 + $0xc8] sm:$0xff] }
 0x1fb   : > { %v1740_v15 = vld [vmem:[#allocation2 + $0xa8] sm:$0xff] }
 0x1fc   : > { %1384 = vmatmul.f32.gmra.mxu2 %v999_v22  ;;  %v5641_v12 = vadd.f32 %v1560_v55, %v1448_v2  ;;  %v1462_v19 = vpop.f32.mrf.mxu3  ;;  %v1753_v2 = vld [vmem:[#allocation2 + $0x110] sm:$0xff] }
 0x1fd   : > { %v1569_v8 = vpop.f32.mrf.mxu0  ;;  %2017 = vmatmul.f32.gmra.mxu3 %v1744_v18  ;;  %v1751_v18 = vld [vmem:[#allocation2 + $0x100] sm:$0xff] }
 0x1ff   : > { %v1337_v38 = vpop.f32.mrf.mxu2 }
 0x200   : > { %v1338_v41 = vadd.f32 %v1337_v38, %v1225_v46  ;;  %2121 = vmatmul.f32.gmra.mxu0 %v1736_v40  ;;  %v1743_v40 = vld [vmem:[#allocation2 + $0xc0] sm:$0xff] }
 0x202   : > { %v1451_v52 = vadd.f32 %v1450_v62, %v1338_v41  ;;  %v2916_v62 = vld [vmem:[#allocation9 + $0x1b0] sm:$0xff] }
 0x203   : > { %2967 = vmatpush.msra.mxu1 %v2916_v62 }
 0x204   : > { %1892 = vmatmul.f32.vlgmr.msra.gmra.mxu2 %v1731_v29  ;;  %v5645_v16 = vadd.f32 %v1563_v51, %v1451_v52  ;;  %v1465_v14 = vpop.f32.mrf.mxu3 }
 0x205   : > { %v1572_v55 = vpop.f32.mrf.mxu0  ;;  %2020 = vmatmul.f32.gmra.mxu3 %v1747_v54 }
 0x207   : > { %v1340_v27 = vpop.f32.mrf.mxu2 }
 0x208   : > { %v1341_v23 = vadd.f32 %v1340_v27, %v5349_v9  ;;  %2124 = vmatmul.f32.gmra.mxu0 %v1739_v43  ;;  %v1750_v9 = vld [vmem:[#allocation2 + $0xf8] sm:$0xff] }
 0x209   : > { %v1746_v43 = vld [vmem:[#allocation2 + $0xd8] sm:$0xff] }
 0x20a   : > { %v1454_v1 = vadd.f32 %v1453_v53, %v1341_v23 }
 0x20c   : > { %1895 = vmatmul.f32.gmra.mxu2 %v1734_v26  ;;  %v5648_v48 = vadd.f32 %v1566_v60, %v1454_v1  ;;  %v1468_v7 = vpop.f32.mrf.mxu3  ;;  %v1759_v26 = vld [vmem:[#allocation2 + $0x140] sm:$0xff] }
 0x20d   : > { %v1575_v4 = vpop.f32.mrf.mxu0  ;;  %2023 = vmatmul.f32.gmra.mxu3 %v1750_v9  ;;  %v2914_v1 = vld [vmem:[#allocation9 + $0x1a0] sm:$0xff] }
 0x20f   : > { %v1343_v33 = vpop.f32.mrf.mxu2 }
 0x210   : > { %v1344_v51 = vadd.f32 %v1343_v33, %v5357_v24  ;;  %2127 = vmatmul.f32.gmra.mxu0 %v1742_v42  ;;  %v1754_v33 = vld [vmem:[#allocation2 + $0x118] sm:$0xff] }
 0x212   : > { %v1457_v25 = vadd.f32 %v1456_v3, %v1344_v51  ;;  %v2915_v3 = vld [vmem:[#allocation9 + $0x1a8] sm:$0xff] }
 0x213   : > { %2968 = vmatpush.msra.mxu1 %v2915_v3 }
 0x214   : > { %1898 = vmatmul.f32.gmra.mxu2 %v1737_v50  ;;  %v5651_v53 = vadd.f32 %v1569_v8, %v1457_v25  ;;  %v1471_v11 = vpop.f32.mrf.mxu3 }
 0x215   : > { %v1578_v17 = vpop.f32.mrf.mxu0  ;;  %2026 = vmatmul.f32.gmra.mxu3 %v1753_v2  ;;  %2969 = vmatpush.msra.mxu1 %v2914_v1  ;;  %v2913_v2 = vld [vmem:[#allocation9 + $0x198] sm:$0xff] }
 0x216   : > { %v1758_v1 = vld [vmem:[#allocation2 + $0x138] sm:$0xff] }
 0x217   : > { %v1346_v49 = vpop.f32.mrf.mxu2  ;;  %2970 = vmatpush.msra.mxu1 %v2913_v2 }
 0x218   : > { %v1347_v60 = vadd.f32 %v1346_v49, %v5368_v39  ;;  %2130 = vmatmul.f32.gmra.mxu0 %v1745_v10  ;;  %v1756_v39 = vld [vmem:[#allocation2 + $0x128] sm:$0xff] }
 0x21a   : > { %v1460_v22 = vadd.f32 %v1459_v28, %v1347_v60 }
 0x21c   : > { %1901 = vmatmul.f32.gmra.mxu2 %v1740_v15  ;;  %v5654_v24 = vadd.f32 %v1572_v55, %v1460_v22  ;;  %v1474_v8 = vpop.f32.mrf.mxu3  ;;  %v1752_v15 = vld [vmem:[#allocation2 + $0x108] sm:$0xff] }
 0x21d   : > { %v1581_v46 = vpop.f32.mrf.mxu0  ;;  %2029 = vmatmul.f32.gmra.mxu3 %v1756_v39 }
 0x21f   : > { %v1349_v20 = vpop.f32.mrf.mxu2 }
 0x220   : > { %v1350_v38 = vadd.f32 %v1349_v20, %v5376_v61  ;;  %2133 = vmatmul.f32.gmra.mxu0 %v1748_v13  ;;  %v5660_v61 = vpop.f32.mrf.mxu1 }
 0x222   : > { %v1463_v41 = vadd.f32 %v1462_v19, %v1350_v38  ;;  %v7277_v38 = vld [vmem:[#allocation17_spill] sm:$0xff] }
 0x224   : > { %1904 = vmatmul.f32.gmra.mxu2 %v1743_v40  ;;  %v5657_v28 = vadd.f32 %v1575_v4, %v1463_v41  ;;  %v1477_v55 = vpop.f32.mrf.mxu3 }
 0x225   : > { %v1584_v52 = vpop.f32.mrf.mxu0  ;;  %2032 = vmatmul.f32.gmra.mxu3 %v1759_v26 }
 0x227   : > { %v1352_v29 = vpop.f32.mrf.mxu2 }
 0x228   : > { %v1353_v27 = vadd.f32 %v1352_v29, %v5387_v44  ;;  %2136 = vmatmul.f32.gmra.mxu0 %v1751_v18  ;;  %v1749_v44 = vld [vmem:[#allocation2 + $0xf0] sm:$0xff]  ;;  %v5667_v25 = vpop.f32.mrf.mxu1 }
 0x22a   : > { %v1466_v23 = vadd.f32 %v1465_v14, %v1353_v27  ;;  %v1762_v14 = vld [vmem:[#allocation2 + $0x158] sm:$0xff]  ;;  %v1763_v27 = vld [vmem:[#allocation2 + $0x160] sm:$0xff] }
 0x22c   : > { %1907 = vmatmul.f32.gmra.mxu2 %v1746_v43  ;;  %v5662_v19 = vadd.f32 %v1578_v17, %v1466_v23  ;;  %v1480_v42 = vpop.f32.mrf.mxu3  ;;  %v1757_v17 = vld [vmem:[#allocation2 + $0x130] sm:$0xff] }
 0x22d   : > { %v1587_v62 = vpop.f32.mrf.mxu0  ;;  %2035 = vmatmul.f32.gmra.mxu3 %v1762_v14  ;;  %v7279_v43 = vld [vmem:[#allocation18_spill] sm:$0xff]  ;;  %v1766_v14 = vld [vmem:[#allocation2 + $0x178] sm:$0xff] }
 0x22f   : > { %v1355_v54 = vpop.f32.mrf.mxu2 }
 0x230   : > { %v1356_v4 = vadd.f32 %v1355_v54, %v5395_v30  ;;  %2139 = vmatmul.f32.gmra.mxu0 %v1754_v33  ;;  %v1765_v30 = vld [vmem:[#allocation2 + $0x170] sm:$0xff]  ;;  %v5672_v13 = vpop.f32.mrf.mxu1 }
 0x232   : > { %v1469_v51 = vadd.f32 %v1468_v7, %v1356_v4  ;;  %v1771_v4 = vld [vmem:[#allocation2 + $0x1a0] sm:$0xff] }
 0x234   : > { %1910 = vmatmul.f32.gmra.mxu2 %v1749_v44  ;;  %v5665_v50 = vadd.f32 %v1581_v46, %v1469_v51  ;;  %v1483_v60 = vpop.f32.mrf.mxu3  ;;  %v1760_v46 = vld [vmem:[#allocation2 + $0x148] sm:$0xff]  ;;  %v2912_v44 = vld [vmem:[#allocation9 + $0x190] sm:$0xff] }
 0x235   : > { %v1590_v49 = vpop.f32.mrf.mxu0  ;;  %2038 = vmatmul.f32.gmra.mxu3 %v1765_v30  ;;  %2971 = vmatpush.msra.mxu1 %v2912_v44  ;;  %v1774_v30 = vld [vmem:[#allocation2 + $0x1b8] sm:$0xff] }
 0x236   : > { %7275 = vst [vmem:[#allocation26_spill] sm:$0xff] %v5665_v50  ;;  %v2931_v50 = vld [vmem:[#allocation9 + $0x228] sm:$0xff] }
 0x237   : > { %v1358_v9 = vpop.f32.mrf.mxu2 }
 0x238   : > { %v1359_v10 = vadd.f32 %v1358_v9, %v5404_v6  ;;  %2142 = vmatmul.f32.gmra.mxu0 %v1757_v17  ;;  %v1755_v6 = vld [vmem:[#allocation2 + $0x120] sm:$0xff]  ;;  %v5678_v54 = vpop.f32.mrf.mxu1  ;;  %v7281_v9 = vld [vmem:[#allocation19_spill] sm:$0xff] }
 0x23a   : > { %v1472_v22 = vadd.f32 %v1471_v11, %v1359_v10  ;;  %v1768_v11 = vld [vmem:[#allocation2 + $0x188] sm:$0xff] }
 0x23c   : > { %1913 = vmatmul.f32.gmra.mxu2 %v1752_v15  ;;  %v5670_v7 = vadd.f32 %v1584_v52, %v1472_v22  ;;  %v1486_v41 = vpop.f32.mrf.mxu3  ;;  %v1761_v15 = vld [vmem:[#allocation2 + $0x150] sm:$0xff] }
 0x23d   : > { %v1593_v20 = vpop.f32.mrf.mxu0  ;;  %2041 = vmatmul.f32.gmra.mxu3 %v1768_v11 }
 0x23e   : > { %7276 = vst [vmem:[#allocation27_spill] sm:$0xff] %v5670_v7 }
 0x23f   : > { %v1361_v3 = vpop.f32.mrf.mxu2 }
 0x240   : > { %v1362_v40 = vadd.f32 %v1361_v3, %v7277_v38  ;;  %2145 = vmatmul.f32.gmra.mxu0 %v1760_v46  ;;  %v5683_v2 = vpop.f32.mrf.mxu1  ;;  %v1769_v46 = vld [vmem:[#allocation2 + $0x190] sm:$0xff]  ;;  %v7283_v38 = vld [vmem:[#allocation20_spill] sm:$0xff] }
 0x242   : > { %v1475_v39 = vadd.f32 %v1474_v8, %v1362_v40 }
 0x244   : > { %1916 = vmatmul.f32.gmra.mxu2 %v1755_v6  ;;  %v5675_v29 = vadd.f32 %v1587_v62, %v1475_v39  ;;  %v1489_v26 = vpop.f32.mrf.mxu3  ;;  %v1764_v39 = vld [vmem:[#allocation2 + $0x168] sm:$0xff] }
 0x245   : > { %v1596_v18 = vpop.f32.mrf.mxu0  ;;  %2044 = vmatmul.f32.gmra.mxu3 %v1771_v4 }
 0x246   : > { %7278 = vst [vmem:[#allocation17_spill] sm:$0xff] %v5675_v29 }
 0x247   : > { %v1364_v52 = vpop.f32.mrf.mxu2 }
 0x248   : > { %v1365_v23 = vadd.f32 %v1364_v52, %v7279_v43  ;;  %2148 = vmatmul.f32.gmra.mxu0 %v1763_v27  ;;  %v1777_v52 = vld [vmem:[#allocation2 + $0x1d0] sm:$0xff]  ;;  %v5690_v27 = vpop.f32.mrf.mxu1  ;;  %v2911_v43 = vld [vmem:[#allocation9 + $0x188] sm:$0xff] }
 0x249   : > { %2972 = vmatpush.msra.mxu1 %v2911_v43  ;;  %v1773_v43 = vld [vmem:[#allocation2 + $0x1b0] sm:$0xff] }
 0x24a   : > { %v1478_v33 = vadd.f32 %v1477_v55, %v1365_v23 }
 0x24c   : > { %1919 = vmatmul.f32.gmra.mxu2 %v1758_v1  ;;  %v5680_v8 = vadd.f32 %v1590_v49, %v1478_v33  ;;  %v1492_v10 = vpop.f32.mrf.mxu3  ;;  %v1772_v1 = vld [vmem:[#allocation2 + $0x1a8] sm:$0xff] }
 0x24d   : > { %v1599_v51 = vpop.f32.mrf.mxu0  ;;  %2047 = vmatmul.f32.gmra.mxu3 %v1774_v30  ;;  %v7285_v33 = vld [vmem:[#allocation21_spill] sm:$0xff] }
 0x24e   : > { %7280 = vst [vmem:[#allocation18_spill] sm:$0xff] %v5680_v8  ;;  %v1810_v8 = vld [vmem:[#allocation2 + $0x2d8] sm:$0xff] }
 0x24f   : > { %v1367_v62 = vpop.f32.mrf.mxu2 }
 0x250   : > { %v1368_v17 = vadd.f32 %v1367_v62, %v7281_v9  ;;  %2151 = vmatmul.f32.gmra.mxu0 %v1766_v14  ;;  %v1767_v62 = vld [vmem:[#allocation2 + $0x180] sm:$0xff] }
 0x252   : > { %v1481_v22 = vadd.f32 %v1480_v42, %v1368_v17  ;;  %v1775_v17 = vld [vmem:[#allocation2 + $0x1c0] sm:$0xff] }
 0x254   : > { %1922 = vmatmul.f32.gmra.mxu2 %v1761_v15  ;;  %v5685_v55 = vadd.f32 %v1593_v20, %v1481_v22  ;;  %v1495_v6 = vpop.f32.mrf.mxu3  ;;  %v5696_v15 = vpop.f32.mrf.mxu1  ;;  %v7287_v22 = vld [vmem:[#allocation22_spill] sm:$0xff] }
 0x255   : > { %v1602_v3 = vpop.f32.mrf.mxu0  ;;  %2050 = vmatmul.f32.gmra.mxu3 %v1777_v52 }
 0x256   : > { %7282 = vst [vmem:[#allocation19_spill] sm:$0xff] %v5685_v55 }
 0x257   : > { %v1370_v49 = vpop.f32.mrf.mxu2 }
 0x258   : > { %v1371_v40 = vadd.f32 %v1370_v49, %v7283_v38  ;;  %2154 = vmatmul.f32.gmra.mxu0 %v1769_v46  ;;  %v1770_v46 = vld [vmem:[#allocation2 + $0x198] sm:$0xff] }
 0x25a   : > { %v1484_v11 = vadd.f32 %v1483_v60, %v1371_v40 }
 0x25c   : > { %1925 = vmatmul.f32.gmra.mxu2 %v1764_v39  ;;  %v5688_v42 = vadd.f32 %v1596_v18, %v1484_v11  ;;  %v1498_v44 = vpop.f32.mrf.mxu3  ;;  %v1778_v39 = vld [vmem:[#allocation2 + $0x1d8] sm:$0xff] }
 0x25d   : > { %v1605_v23 = vpop.f32.mrf.mxu0  ;;  %2053 = vmatmul.f32.gmra.mxu3 %v5532_v0  ;;  %v7289_v0 = vld [vmem:[#allocation23_spill] sm:$0xff] }
 0x25e   : > { %7284 = vst [vmem:[#allocation20_spill] sm:$0xff] %v5688_v42 }
 0x25f   : > { %v1373_v20 = vpop.f32.mrf.mxu2 }
 0x260   : > { %v1374_v4 = vadd.f32 %v1373_v20, %v7285_v33  ;;  %2157 = vmatmul.f32.gmra.mxu0 %v1772_v1  ;;  %v5705_v20 = vpop.f32.mrf.mxu1  ;;  %v1786_v33 = vld [vmem:[#allocation2 + $0x218] sm:$0xff] }
 0x262   : > { %v1487_v14 = vadd.f32 %v1486_v41, %v1374_v4 }
 0x264   : > { %1928 = vmatmul.f32.gmra.mxu2 %v1767_v62  ;;  %v5693_v60 = vadd.f32 %v1599_v51, %v1487_v14  ;;  %v2006_v49 = vpop.f32.mrf.mxu3  ;;  %v1781_v62 = vld [vmem:[#allocation2 + $0x1f0] sm:$0xff]  ;;  %v7291_v14 = vld [vmem:[#allocation24_spill] sm:$0xff] }
 0x265   : > { %v1608_v9 = vpop.f32.mrf.mxu0  ;;  %2056 = vmatmul.f32.gmra.mxu3 %v5542_v63 }
 0x266   : > { %7286 = vst [vmem:[#allocation21_spill] sm:$0xff] %v5693_v60  ;;  %v1804_v60 = vld [vmem:[#allocation2 + $0x2a8] sm:$0xff] }
 0x267   : > { %v1376_v18 = vpop.f32.mrf.mxu2 }
 0x268   : > { %v1377_v30 = vadd.f32 %v1376_v18, %v7287_v22  ;;  %2160 = vmatmul.f32.gmra.mxu0 %v1775_v17  ;;  %v1776_v22 = vld [vmem:[#allocation2 + $0x1c8] sm:$0xff] }
 0x26a   : > { %v1490_v38 = vadd.f32 %v1489_v26, %v1377_v30 }
 0x26c   : > { %1931 = vmatmul.f32.gmra.mxu2 %v1770_v46  ;;  %v5699_v40 = vadd.f32 %v1602_v3, %v1490_v38  ;;  %v5703_v52 = vpop.f32.mrf.mxu3  ;;  %v2910_v3 = vld [vmem:[#allocation9 + $0x180] sm:$0xff]  ;;  %v5712_v46 = vpop.f32.mrf.mxu1 }
 0x26d   : > { %v1611_v51 = vpop.f32.mrf.mxu0  ;;  %2059 = vmatmul.f32.gmra.mxu3 %v1786_v33  ;;  %2973 = vmatpush.msra.mxu1 %v2910_v3 }
 0x26e   : > { %7288 = vst [vmem:[#allocation22_spill] sm:$0xff] %v5699_v40 }
 0x26f   : > { %v1379_v41 = vpop.f32.mrf.mxu2 }
 0x270   : > { %v1380_v11 = vadd.f32 %v1379_v41, %v7289_v0  ;;  %2163 = vmatmul.f32.gmra.mxu0 %v1778_v39  ;;  %v1784_v39 = vld [vmem:[#allocation2 + $0x208] sm:$0xff]  ;;  %v2957_v0 = vld [vmem:[#allocation9 + $0x2f8] sm:$0xff] }
 0x271   : > { %3184 = vmatpush.msrb.mxu3 %v2957_v0  ;;  %v5725_v0 = vld [vmem:[#allocation10 + $0x2] ss:$0 sm:$0xff] }
 0x272   : > { %v1493_v1 = vadd.f32 %v1492_v10, %v1380_v11  ;;  %v7293_v11 = vld [vmem:[#allocation25_spill] sm:$0xff] }
 0x274   : > { %1934 = vmatmul.f32.gmra.mxu2 %v1773_v43  ;;  %v5707_v26 = vadd.f32 %v1605_v23, %v1493_v1  ;;  %v5710_v17 = vpop.f32.mrf.mxu3  ;;  %v1789_v23 = vld [vmem:[#allocation2 + $0x230] sm:$0xff] }
 0x275   : > { %v2119_v4 = vpop.f32.mrf.mxu0  ;;  %2062 = vmatmul.f32.gmra.mxu3 %v1789_v23  ;;  %v1787_v23 = vld [vmem:[#allocation2 + $0x220] sm:$0xff] }
 0x276   : > { %7290 = vst [vmem:[#allocation23_spill] sm:$0xff] %v5707_v26 }
 0x277   : > { %v1382_v63 = vpop.f32.mrf.mxu2 }
 0x278   : > { %v1383_v18 = vadd.f32 %v1382_v63, %v7291_v14  ;;  %2166 = vmatmul.f32.gmra.mxu0 %v1781_v62  ;;  %v1792_v63 = vld [vmem:[#allocation2 + $0x248] sm:$0xff]  ;;  %v2780_v62 = vld [vmem:[#allocation9 + $0x78] sm:$0xff] }
 0x279   : > { %v2796_v14 = vld [vmem:[#allocation9 + $0xf8] sm:$0xff]  ;;  %3297 = vmatpush.msrb.mxu0 %v2780_v62  ;;  %v2956_v62 = vld [vmem:[#allocation9 + $0x2f0] sm:$0xff] }
 0x27a   : > { %v1496_v30 = vadd.f32 %v1495_v6, %v1383_v18  ;;  %v4564_v6 = vld [vmem:[#allocation2 + $0x1e0] sm:$0xff]  ;;  %v5721_v18 = vpop.f32.mrf.mxu1  ;;  %3410 = vmatpush.msrb.mxu1 %v2796_v14  ;;  %3185 = vmatpush.msrb.mxu3 %v2956_v62 }
 0x27c   : > { %1937 = vmatmul.f32.gmra.mxu2 %v1776_v22  ;;  %v5714_v10 = vadd.f32 %v1608_v9, %v1496_v30  ;;  %v5717_v1 = vpop.f32.mrf.mxu3  ;;  %v2941_v9 = vld [vmem:[#allocation9 + $0x278] sm:$0xff] }
 0x27d   : > { %v2122_v41 = vpop.f32.mrf.mxu0  ;;  %2065 = vmatmul.f32.gmra.mxu3 %v1792_v63  ;;  %3071 = vmatpush.msrb.mxu2 %v2941_v9 }
 0x27e   : > { %7292 = vst [vmem:[#allocation24_spill] sm:$0xff] %v5714_v10  ;;  %v2779_v10 = vld [vmem:[#allocation9 + $0x70] sm:$0xff] }
 0x27f   : > { %v1385_v38 = vpop.f32.mrf.mxu2  ;;  %3298 = vmatpush.msrb.mxu0 %v2779_v10 }
 0x280   : > { %v1386_v43 = vadd.f32 %v1385_v38, %v7293_v11  ;;  %2169 = vmatmul.f32.gmra.mxu0 %v1784_v39  ;;  %v5728_v11 = vld [vmem:[#allocation10 + $0x3] ss:$0 sm:$0xff] }
 0x282   : > { %v1499_v33 = vadd.f32 %v1498_v44, %v1386_v43  ;;  %v4565_v43 = vld [vmem:[#allocation2 + $0x1f8] sm:$0xff]  ;;  %v5733_v14 = vpop.f32.mrf.mxu1 }
 0x284   : > { %1940 = vmatmul.f32.gmra.mxu2 %v4564_v6  ;;  %v5719_v3 = vadd.f32 %v1611_v51, %v1499_v33  ;;  %v5723_v44 = vpop.f32.mrf.mxu3  ;;  %v1795_v33 = vld [vmem:[#allocation2 + $0x260] sm:$0xff] }
 0x285   : > { %v2125_v30 = vpop.f32.mrf.mxu0  ;;  %2068 = vmatmul.f32.gmra.mxu3 %v1795_v33  ;;  %v1798_v33 = vld [vmem:[#allocation2 + $0x278] sm:$0xff] }
 0x286   : > { %7294 = vst [vmem:[#allocation25_spill] sm:$0xff] %v5719_v3  ;;  %v2940_v3 = vld [vmem:[#allocation9 + $0x270] sm:$0xff] }
 0x287   : > { %v1893_v22 = vpop.f32.mrf.mxu2  ;;  %3072 = vmatpush.msrb.mxu2 %v2940_v3 }
 0x288   : > { %v2007_v38 = vadd.f32 %v2006_v49, %v1893_v22  ;;  %2172 = vmatmul.f32.gmra.mxu0 %v1787_v23  ;;  %v1790_v49 = vld [vmem:[#allocation2 + $0x238] sm:$0xff]  ;;  %v1785_v23 = vld [vmem:[#allocation2 + $0x210] sm:$0xff] }
 0x28a   : > { %v2120_v39 = vadd.f32 %v2119_v4, %v2007_v38 }
 0x28c   : > { %v2215_v51 = vadd.f32 %v2120_v39, %v5517_v37  ;;  %1943 = vmatmul.f32.gmra.mxu2 %v4565_v43  ;;  %v5737_v22 = vpop.f32.mrf.mxu3 }
 0x28d   : > { %v5731_v9 = vpop.f32.mrf.mxu0  ;;  %2071 = vmatmul.f32.gmra.mxu3 %v1798_v33 }
 0x28e   : > { %v2248_v6 = vadd.f32 %v5725_v0, %v2215_v51 }
 0x28f   : > { %v1896_v63 = vpop.f32.mrf.mxu2 }
 0x290   : > { %vm2280_vm2 = vcmp.ge.f32.partialorder %v2248_v6, 0.0  ;;  %v2313_v4 = vmul.f32 %v5728_v11, %v2248_v6  ;;  %v2010_v37 = vadd.f32 %v5703_v52, %v1896_v63  ;;  %2175 = vmatmul.f32.gmra.mxu0 %v1790_v49  ;;  %v2795_v52 = vld [vmem:[#allocation9 + $0xf0] sm:$0xff] }
 0x291   : > { %v1793_v49 = vld [vmem:[#allocation2 + $0x250] sm:$0xff]  ;;  %3411 = vmatpush.msrb.mxu1 %v2795_v52 }
 0x292   : > { %v5739_v38 = vsel %vm2280_vm2, %v2248_v6, %v2313_v4  ;;  %v2123_v39 = vadd.f32 %v2122_v41, %v2010_v37  ;;  %v1788_v37 = vld [vmem:[#allocation2 + $0x228] sm:$0xff] }
 0x293   : > { %2379 = vst [vmem:[#allocation3 + $0x38] sm:$0xff] %v5739_v38  ;;  %v2443_v51 = vrot.slane %v5739_v38, 7  ;;  %v2555_v10 = vrot.slane %v5739_v38, 1 }
 0x294   : > { %v2216_v43 = vadd.f32 %v2123_v39, %v5530_v34  ;;  %1946 = vmatmul.f32.gmra.mxu2 %v1785_v23  ;;  %v5749_v4 = vpop.f32.mrf.mxu3  ;;  %v5751_v23 = vpop.f32.mrf.mxu1 }
 0x295   : > { %2523 = vst [vmem:[#allocation3 + $0x30] sm:$0xfe] %v2443_v51  ;;  %v5745_v41 = vpop.f32.mrf.mxu0 }
 0x296   : > { %v2249_v63 = vadd.f32 %v5725_v0, %v2216_v43 }
 0x297   : > { %v1899_v6 = vpop.f32.mrf.mxu2 }
 0x298   : > { %vm2281_vm3 = vcmp.ge.f32.partialorder %v2249_v63, 0.0  ;;  %v2314_v62 = vmul.f32 %v5728_v11, %v2249_v63  ;;  %v2013_v34 = vadd.f32 %v5710_v17, %v1899_v6  ;;  %2178 = vmatmul.f32.gmra.mxu0 %v1793_v49  ;;  %v1801_v6 = vld [vmem:[#allocation2 + $0x290] sm:$0xff] }
 0x299   : > { %2074 = vmatmul.f32.gmra.mxu3 %v1801_v6 }
 0x29a   : > { %v5753_v39 = vsel %vm2281_vm3, %v2249_v63, %v2314_v62  ;;  %v2126_v43 = vadd.f32 %v2125_v30, %v2013_v34  ;;  %v1796_v62 = vld [vmem:[#allocation2 + $0x268] sm:$0xff] }
 0x29b   : > { %2380 = vst [vmem:[#allocation3 + $0x50] sm:$0xff] %v5753_v39  ;;  %v2444_v3 = vrot.slane %v5753_v39, 7  ;;  %v2556_v33 = vrot.slane %v5753_v39, 1  ;;  %v2955_v34 = vld [vmem:[#allocation9 + $0x2e8] sm:$0xff] }
 0x29c   : > { %v2217_v52 = vadd.f32 %v2126_v43, %v5540_v47  ;;  %1949 = vmatmul.f32.gmra.mxu2 %v1788_v37  ;;  %v5760_v17 = vld [vmem:[#allocation3 + $0x30] sm:$0xff]  ;;  %3186 = vmatpush.msrb.mxu3 %v2955_v34  ;;  %v5773_v43 = vpop.f32.mrf.mxu3  ;;  %v5780_v6 = vpop.f32.mrf.mxu1  ;;  %v2794_v34 = vld [vmem:[#allocation9 + $0xe8] sm:$0xff] }
 0x29d   : > { %v2445_v26 = vsel %vm531_vm0, %v2443_v51, %v2444_v3  ;;  %v5764_v63 = vsel %vm644_vm1, %v2555_v10, %v2556_v33  ;;  %2636 = vst [vmem:[#allocation3 + $0x58] sm:$0x7f] %v2556_v33  ;;  %2974 = vmatmul.f32.vlgmr.msra.gmra.mxu1 %v5760_v17  ;;  %v5769_v47 = vpop.f32.mrf.mxu0  ;;  %v1791_v10 = vld [vmem:[#allocation2 + $0x240] sm:$0xff] }
 0x29e   : > { %2524 = vst [vmem:[#allocation3 + $0x48] sm:$0xff] %v2445_v26  ;;  %v2250_v30 = vadd.f32 %v5725_v0, %v2217_v52  ;;  %3412 = vmatpush.msrb.mxu1 %v2794_v34 }
 0x29f   : > { %2635 = vst [vmem:[#allocation3 + $0x40] sm:$0xff] %v5764_v63  ;;  %v1902_v49 = vpop.f32.mrf.mxu2 }
 0x2a0   : > { %vm2282_vm4 = vcmp.ge.f32.partialorder %v2250_v30, 0.0  ;;  %v2315_v51 = vmul.f32 %v5728_v11, %v2250_v30  ;;  %v2016_v37 = vadd.f32 %v5717_v1, %v1902_v49  ;;  %2181 = vmatmul.f32.gmra.mxu0 %v1796_v62  ;;  %v2939_v1 = vld [vmem:[#allocation9 + $0x268] sm:$0xff] }
 0x2a1   : > { %v2778_v49 = vld [vmem:[#allocation9 + $0x68] sm:$0xff]  ;;  %2077 = vmatmul.f32.gmra.mxu3 %v1804_v60  ;;  %3073 = vmatpush.msrb.mxu2 %v2939_v1 }
 0x2a2   : > { %v5775_v3 = vsel %vm2282_vm4, %v2250_v30, %v2315_v51  ;;  %v2129_v33 = vadd.f32 %v5731_v9, %v2016_v37  ;;  %3299 = vmatpush.msrb.mxu0 %v2778_v49  ;;  %v1799_v51 = vld [vmem:[#allocation2 + $0x280] sm:$0xff] }
 0x2a3   : > { %2381 = vst [vmem:[#allocation3 + $0x68] sm:$0xff] %v5775_v3  ;;  %v2446_v52 = vrot.slane %v5775_v3, 7 }
 0x2a4   : > { %v2218_v40 = vadd.f32 %v2129_v33, %v5556_v58  ;;  %1952 = vmatmul.f32.gmra.mxu2 %v1791_v10  ;;  %v5788_v10 = vpop.f32.mrf.mxu3 }
 0x2a5   : > { %2525 = vst [vmem:[#allocation3 + $0x60] sm:$0xfe] %v2446_v52  ;;  %2977 = vmatmul.f32.gmra.mxu1 %v2445_v26  ;;  %v5784_v62 = vpop.f32.mrf.mxu0  ;;  %v1794_v26 = vld [vmem:[#allocation2 + $0x258] sm:$0xff] }
 0x2a6   : > { %v2251_v30 = vadd.f32 %v5725_v0, %v2218_v40  ;;  %v2558_v40 = vrot.slane %v5775_v3, 1 }
 0x2a7   : > { %v1905_v9 = vpop.f32.mrf.mxu2 }
 0x2a8   : > { %vm2283_vm5 = vcmp.ge.f32.partialorder %v2251_v30, 0.0  ;;  %v2316_v58 = vmul.f32 %v5728_v11, %v2251_v30  ;;  %v2019_v37 = vadd.f32 %v5723_v44, %v1905_v9  ;;  %2184 = vmatmul.f32.gmra.mxu0 %v1799_v51  ;;  %v1807_v9 = vld [vmem:[#allocation2 + $0x2c0] sm:$0xff] }
 0x2a9   : > { %2080 = vmatmul.f32.gmra.mxu3 %v1807_v9 }
 0x2aa   : > { %v5790_v33 = vsel %vm2283_vm5, %v2251_v30, %v2316_v58  ;;  %v2132_v60 = vadd.f32 %v5745_v41, %v2019_v37  ;;  %v5805_v41 = vpop.f32.mrf.mxu1 }
 0x2ab   : > { %2382 = vst [vmem:[#allocation3 + $0x80] sm:$0xff] %v5790_v33  ;;  %v2447_v1 = vrot.slane %v5790_v33, 7  ;;  %v2559_v49 = vrot.slane %v5790_v33, 1 }
 0x2ac   : > { %v2219_v34 = vadd.f32 %v2132_v60, %v5563_v36  ;;  %1955 = vmatmul.f32.gmra.mxu2 %v1794_v26  ;;  %v5798_v44 = vld [vmem:[#allocation3 + $0x60] sm:$0xff]  ;;  %7295 = vst [vmem:[#allocation28_spill] sm:$0xff] %v5805_v41  ;;  %v1802_v26 = vld [vmem:[#allocation2 + $0x298] sm:$0xff]  ;;  %v1816_v41 = vld [vmem:[#allocation2 + $0x308] sm:$0xff] }
 0x2ad   : > { %v2448_v30 = vsel %vm531_vm0, %v2446_v52, %v2447_v1  ;;  %v5802_v58 = vsel %vm644_vm1, %v2558_v40, %v2559_v49  ;;  %2638 = vst [vmem:[#allocation3 + $0x88] sm:$0x7f] %v2559_v49  ;;  %2980 = vmatmul.f32.gmra.mxu1 %v5798_v44  ;;  %v5809_v37 = vpop.f32.mrf.mxu0  ;;  %v2954_v60 = vld [vmem:[#allocation9 + $0x2e0] sm:$0xff]  ;;  %v5813_v1 = vpop.f32.mrf.mxu3  ;;  %v1797_v49 = vld [vmem:[#allocation2 + $0x270] sm:$0xff] }
 0x2ae   : > { %2526 = vst [vmem:[#allocation3 + $0x78] sm:$0xff] %v2448_v30  ;;  %v2252_v51 = vadd.f32 %v5725_v0, %v2219_v34  ;;  %3187 = vmatpush.msrb.mxu3 %v2954_v60  ;;  %v2793_v60 = vld [vmem:[#allocation9 + $0xe0] sm:$0xff] }
 0x2af   : > { %2637 = vst [vmem:[#allocation3 + $0x70] sm:$0xff] %v5802_v58  ;;  %v1908_v36 = vpop.f32.mrf.mxu2  ;;  %3413 = vmatpush.msrb.mxu1 %v2793_v60 }
 0x2b0   : > { %vm2284_vm6 = vcmp.ge.f32.partialorder %v2252_v51, 0.0  ;;  %v2317_v52 = vmul.f32 %v5728_v11, %v2252_v51  ;;  %v2022_v40 = vadd.f32 %v5737_v22, %v1908_v36  ;;  %2187 = vmatmul.f32.gmra.mxu0 %v1802_v26  ;;  %v2938_v22 = vld [vmem:[#allocation9 + $0x260] sm:$0xff] }
 0x2b1   : > { %v2777_v36 = vld [vmem:[#allocation9 + $0x60] sm:$0xff]  ;;  %2083 = vmatmul.f32.gmra.mxu3 %v1810_v8  ;;  %3074 = vmatpush.msrb.mxu2 %v2938_v22 }
 0x2b2   : > { %v5815_v9 = vsel %vm2284_vm6, %v2252_v51, %v2317_v52  ;;  %v2135_v34 = vadd.f32 %v5769_v47, %v2022_v40  ;;  %3300 = vmatpush.msrb.mxu0 %v2777_v36  ;;  %v1805_v52 = vld [vmem:[#allocation2 + $0x2b0] sm:$0xff]  ;;  %v5824_v40 = vpop.f32.mrf.mxu1 }
 0x2b3   : > { %2383 = vst [vmem:[#allocation3 + $0x98] sm:$0xff] %v5815_v9  ;;  %v2449_v42 = vrot.slane %v5815_v9, 7  ;;  %v2561_v22 = vrot.slane %v5815_v9, 1 }
 0x2b4   : > { %v2220_v55 = vadd.f32 %v2135_v34, %v5576_v21  ;;  %1958 = vmatmul.f32.gmra.mxu2 %v1797_v49  ;;  %7296 = vst [vmem:[#allocation29_spill] sm:$0xff] %v5824_v40  ;;  %v1800_v34 = vld [vmem:[#allocation2 + $0x288] sm:$0xff] }
 0x2b5   : > { %2527 = vst [vmem:[#allocation3 + $0x90] sm:$0xfe] %v2449_v42  ;;  %2983 = vmatmul.f32.gmra.mxu1 %v2448_v30  ;;  %v5822_v26 = vpop.f32.mrf.mxu0  ;;  %v5828_v49 = vpop.f32.mrf.mxu3 }
 0x2b6   : > { %v2253_v51 = vadd.f32 %v5725_v0, %v2220_v55 }
 0x2b7   : > { %v1911_v47 = vpop.f32.mrf.mxu2 }
 0x2b8   : > { %vm2285_vm7 = vcmp.ge.f32.partialorder %v2253_v51, 0.0  ;;  %v2318_v21 = vmul.f32 %v5728_v11, %v2253_v51  ;;  %v2025_v30 = vadd.f32 %v5749_v4, %v1911_v47  ;;  %2190 = vmatmul.f32.gmra.mxu0 %v1805_v52  ;;  %v1813_v47 = vld [vmem:[#allocation2 + $0x2f0] sm:$0xff] }
 0x2b9   : > { %2086 = vmatmul.f32.gmra.mxu3 %v1813_v47 }
 0x2ba   : > { %v5830_v8 = vsel %vm2285_vm7, %v2253_v51, %v2318_v21  ;;  %v2138_v55 = vadd.f32 %v5784_v62, %v2025_v30  ;;  %v1808_v30 = vld [vmem:[#allocation2 + $0x2c8] sm:$0xff] }
 0x2bb   : > { %2384 = vst [vmem:[#allocation3 + $0xb0] sm:$0xff] %v5830_v8  ;;  %v2450_v36 = vrot.slane %v5830_v8, 7  ;;  %v2562_v60 = vrot.slane %v5830_v8, 1 }
 0x2bc   : > { %v2221_v29 = vadd.f32 %v2138_v55, %v5583_v59  ;;  %1961 = vmatmul.f32.gmra.mxu2 %v1800_v34  ;;  %v5838_v4 = vld [vmem:[#allocation3 + $0x90] sm:$0xff]  ;;  %v2953_v34 = vld [vmem:[#allocation9 + $0x2d8] sm:$0xff] }
 0x2bd   : > { %v2451_v51 = vsel %vm531_vm0, %v2449_v42, %v2450_v36  ;;  %v5842_v21 = vsel %vm644_vm1, %v2561_v22, %v2562_v60  ;;  %2640 = vst [vmem:[#allocation3 + $0xb8] sm:$0x7f] %v2562_v60  ;;  %2986 = vmatmul.f32.gmra.mxu1 %v5838_v4  ;;  %v5847_v59 = vpop.f32.mrf.mxu0  ;;  %3188 = vmatpush.msrb.mxu3 %v2953_v34  ;;  %v5851_v22 = vpop.f32.mrf.mxu3  ;;  %v1803_v36 = vld [vmem:[#allocation2 + $0x2a0] sm:$0xff]  ;;  %v2792_v34 = vld [vmem:[#allocation9 + $0xd8] sm:$0xff] }
 0x2be   : > { %2528 = vst [vmem:[#allocation3 + $0xa8] sm:$0xff] %v2451_v51  ;;  %v2254_v62 = vadd.f32 %v5725_v0, %v2221_v29  ;;  %v5853_v60 = vpop.f32.mrf.mxu1  ;;  %3414 = vmatpush.msrb.mxu1 %v2792_v34 }
 0x2bf   : > { %2639 = vst [vmem:[#allocation3 + $0xa0] sm:$0xff] %v5842_v21  ;;  %v1914_v52 = vpop.f32.mrf.mxu2 }
 0x2c0   : > { %vm2286_vm8 = vcmp.ge.f32.partialorder %v2254_v62, 0.0  ;;  %v2319_v42 = vmul.f32 %v5728_v11, %v2254_v62  ;;  %v2028_v55 = vadd.f32 %v5773_v43, %v1914_v52  ;;  %7297 = vst [vmem:[#allocation30_spill] sm:$0xff] %v5853_v60  ;;  %2193 = vmatmul.f32.gmra.mxu0 %v1808_v30  ;;  %v2937_v43 = vld [vmem:[#allocation9 + $0x258] sm:$0xff] }
 0x2c1   : > { %v2776_v52 = vld [vmem:[#allocation9 + $0x58] sm:$0xff]  ;;  %2089 = vmatmul.f32.gmra.mxu3 %v1816_v41  ;;  %3075 = vmatpush.msrb.mxu2 %v2937_v43  ;;  %v1656_v41 = vadd.f32 %v5660_v61, %v5601_v31  ;;  %v1819_v31 = vld [vmem:[#allocation2 + $0x320] sm:$0xff] }
 0x2c2   : > { %v5855_v47 = vsel %vm2286_vm8, %v2254_v62, %v2319_v42  ;;  %v2141_v29 = vadd.f32 %v5809_v37, %v2028_v55  ;;  %3301 = vmatpush.msrb.mxu0 %v2776_v52  ;;  %v1811_v42 = vld [vmem:[#allocation2 + $0x2e0] sm:$0xff] }
 0x2c3   : > { %7298 = vst [vmem:[#allocation31_spill] sm:$0xff] %v5855_v47  ;;  %v2452_v40 = vrot.slane %v5855_v47, 7  ;;  %v2564_v43 = vrot.slane %v5855_v47, 1 }
 0x2c4   : > { %2385 = vst [vmem:[#allocation3 + $0xc8] sm:$0xff] %v5855_v47  ;;  %v2222_v7 = vadd.f32 %v2141_v29, %v5596_v45  ;;  %1964 = vmatmul.f32.gmra.mxu2 %v1803_v36 }
 0x2c5   : > { %2529 = vst [vmem:[#allocation3 + $0xc0] sm:$0xfe] %v2452_v40  ;;  %2989 = vmatmul.f32.gmra.mxu1 %v2451_v51  ;;  %v5862_v30 = vpop.f32.mrf.mxu0  ;;  %v5866_v36 = vpop.f32.mrf.mxu3  ;;  %v1806_v51 = vld [vmem:[#allocation2 + $0x2b8] sm:$0xff] }
 0x2c6   : > { %v2255_v62 = vadd.f32 %v5725_v0, %v2222_v7 }
 0x2c7   : > { %v1917_v37 = vpop.f32.mrf.mxu2 }
 0x2c8   : > { %vm2287_vm9 = vcmp.ge.f32.partialorder %v2255_v62, 0.0  ;;  %v2320_v45 = vmul.f32 %v5728_v11, %v2255_v62  ;;  %v2031_v55 = vadd.f32 %v5788_v10, %v1917_v37  ;;  %2196 = vmatmul.f32.gmra.mxu0 %v1811_v42  ;;  %v5877_v10 = vpop.f32.mrf.mxu1  ;;  %v1814_v42 = vld [vmem:[#allocation2 + $0x2f8] sm:$0xff] }
 0x2c9   : > { %7300 = vst [vmem:[#allocation33_spill] sm:$0xff] %v5877_v10  ;;  %2092 = vmatmul.f32.gmra.mxu3 %v1819_v31  ;;  %v2951_v31 = vld [vmem:[#allocation9 + $0x2c8] sm:$0xff] }
 0x2ca   : > { %v5870_v29 = vsel %vm2287_vm9, %v2255_v62, %v2320_v45  ;;  %v2144_v7 = vadd.f32 %v5822_v26, %v2031_v55  ;;  %v2774_v10 = vld [vmem:[#allocation9 + $0x48] sm:$0xff] }
 0x2cb   : > { %7299 = vst [vmem:[#allocation32_spill] sm:$0xff] %v5870_v29  ;;  %v2453_v52 = vrot.slane %v5870_v29, 7  ;;  %v2565_v34 = vrot.slane %v5870_v29, 1 }
 0x2cc   : > { %2386 = vst [vmem:[#allocation3 + $0xe0] sm:$0xff] %v5870_v29  ;;  %v2223_v37 = vadd.f32 %v2144_v7, %v1656_v41  ;;  %1967 = vmatmul.f32.gmra.mxu2 %v1806_v51  ;;  %v5879_v60 = vld [vmem:[#allocation3 + $0xc0] sm:$0xff]  ;;  %v2952_v51 = vld [vmem:[#allocation9 + $0x2d0] sm:$0xff]  ;;  %v1659_v29 = vadd.f32 %v5667_v25, %v5613_v32  ;;  %v2933_v25 = vld [vmem:[#allocation9 + $0x238] sm:$0xff] }
 0x2cd   : > { %7301 = vst [vmem:[#allocation34_spill] sm:$0xff] %v5879_v60  ;;  %v2454_v61 = vsel %vm531_vm0, %v2452_v40, %v2453_v52  ;;  %v5883_v26 = vsel %vm644_vm1, %v2564_v43, %v2565_v34  ;;  %2992 = vmatmul.f32.gmra.mxu1 %v5879_v60  ;;  %v5888_v55 = vpop.f32.mrf.mxu0  ;;  %v2936_v41 = vld [vmem:[#allocation9 + $0x250] sm:$0xff]  ;;  %3189 = vmatpush.msrb.mxu3 %v2952_v51  ;;  %v2950_v51 = vld [vmem:[#allocation9 + $0x2c0] sm:$0xff] }
 0x2ce   : > { %2642 = vst [vmem:[#allocation3 + $0xe8] sm:$0x7f] %v2565_v34  ;;  %v2256_v62 = vadd.f32 %v5725_v0, %v2223_v37  ;;  %v2775_v7 = vld [vmem:[#allocation9 + $0x50] sm:$0xff]  ;;  %3076 = vmatpush.msrb.mxu2 %v2936_v41  ;;  %v5892_v34 = vpop.f32.mrf.mxu3  ;;  %v2935_v37 = vld [vmem:[#allocation9 + $0x248] sm:$0xff] }
 0x2cf   : > { %2530 = vst [vmem:[#allocation3 + $0xd8] sm:$0xff] %v2454_v61  ;;  %v1920_v45 = vpop.f32.mrf.mxu2  ;;  %v1809_v52 = vld [vmem:[#allocation2 + $0x2d0] sm:$0xff]  ;;  %3302 = vmatpush.msrb.mxu0 %v2775_v7  ;;  %3190 = vmatpush.msrb.mxu3 %v2951_v31  ;;  %v2773_v7 = vld [vmem:[#allocation9 + $0x40] sm:$0xff] }
 0x2d0   : > { %2641 = vst [vmem:[#allocation3 + $0xd0] sm:$0xff] %v5883_v26  ;;  %vm2288_vm10 = vcmp.ge.f32.partialorder %v2256_v62, 0.0  ;;  %v2321_v40 = vmul.f32 %v5728_v11, %v2256_v62  ;;  %v2034_v43 = vadd.f32 %v5813_v1, %v1920_v45  ;;  %2199 = vmatmul.f32.gmra.mxu0 %v1814_v42  ;;  %3077 = vmatpush.msrb.mxu2 %v2935_v37  ;;  %v2934_v45 = vld [vmem:[#allocation9 + $0x240] sm:$0xff]  ;;  %v2791_v32 = vld [vmem:[#allocation9 + $0xd0] sm:$0xff] }
 0x2d1   : > { %3303 = vmatpush.msrb.mxu0 %v2774_v10  ;;  %3415 = vmatpush.msrb.mxu1 %v2791_v32  ;;  %v1817_v37 = vld [vmem:[#allocation2 + $0x310] sm:$0xff] }
 0x2d2   : > { %v5896_v60 = vsel %vm2288_vm10, %v2256_v62, %v2321_v40  ;;  %v2147_v47 = vadd.f32 %v5847_v59, %v2034_v43  ;;  %3078 = vmatpush.msrb.mxu2 %v2934_v45  ;;  %v2949_v62 = vld [vmem:[#allocation9 + $0x2b8] sm:$0xff]  ;;  %v5901_v59 = vpop.f32.mrf.mxu1  ;;  %3191 = vmatpush.msrb.mxu3 %v2950_v51  ;;  %v2948_v45 = vld [vmem:[#allocation9 + $0x2b0] sm:$0xff] }
 0x2d3   : > { %2387 = vst [vmem:[#allocation3 + $0xf8] sm:$0xff] %v5896_v60  ;;  %v2455_v1 = vrot.slane %v5896_v60, 7  ;;  %v2772_v40 = vld [vmem:[#allocation9 + $0x38] sm:$0xff]  ;;  %3304 = vmatpush.msrb.mxu0 %v2773_v7  ;;  %v2771_v51 = vld [vmem:[#allocation9 + $0x30] sm:$0xff]  ;;  %v1662_v7 = vadd.f32 %v5672_v13, %v5619_v56 }
 0x2d4   : > { %v2224_v41 = vadd.f32 %v2147_v47, %v1659_v29  ;;  %1970 = vmatmul.f32.gmra.mxu2 %v1809_v52  ;;  %7302 = vst [vmem:[#allocation35_spill] sm:$0xff] %v5901_v59  ;;  %v5906_v47 = vld [vmem:[#allocation2] sm:$0xff]  ;;  %v2932_v29 = vld [vmem:[#allocation9 + $0x230] sm:$0xff]  ;;  %3192 = vmatpush.msrb.mxu3 %v2949_v62 }
 0x2d5   : > { %2531 = vst [vmem:[#allocation3 + $0xf0] sm:$0xfe] %v2455_v1  ;;  %2995 = vmatmul.f32.gmra.mxu1 %v2454_v61  ;;  %v5904_v10 = vpop.f32.mrf.mxu0  ;;  %2095 = vmatmul.f32.gmra.mxu3 %v5906_v47 }
 0x2d6   : > { %v2257_v42 = vadd.f32 %v5725_v0, %v2224_v41  ;;  %3079 = vmatpush.msrb.mxu2 %v2933_v25  ;;  %v5911_v31 = vpop.f32.mrf.mxu3  ;;  %v1812_v41 = vld [vmem:[#allocation2 + $0x2e8] sm:$0xff]  ;;  %3305 = vmatpush.msrb.mxu0 %v2772_v40 }
 0x2d7   : > { %v1923_v43 = vpop.f32.mrf.mxu2  ;;  %3193 = vmatpush.msrb.mxu3 %v2948_v45  ;;  %v2947_v40 = vld [vmem:[#allocation9 + $0x2a8] sm:$0xff] }
 0x2d8   : > { %vm2289_vm11 = vcmp.ge.f32.partialorder %v2257_v42, 0.0  ;;  %v2322_v61 = vmul.f32 %v5728_v11, %v2257_v42  ;;  %v2037_v52 = vadd.f32 %v5828_v49, %v1923_v43  ;;  %2202 = vmatmul.f32.gmra.mxu0 %v1817_v37  ;;  %3080 = vmatpush.msrb.mxu2 %v2932_v29  ;;  %v2567_v49 = vrot.slane %v5896_v60, 1  ;;  %v2770_v43 = vld [vmem:[#allocation9 + $0x28] sm:$0xff]  ;;  %v2946_v29 = vld [vmem:[#allocation9 + $0x2a0] sm:$0xff] }
 0x2d9   : > { %3306 = vmatpush.msrb.mxu0 %v2771_v51  ;;  %3194 = vmatpush.msrb.mxu3 %v2947_v40  ;;  %v2928_v40 = vld [vmem:[#allocation9 + $0x210] sm:$0xff] }
 0x2da   : > { %v5915_v32 = vsel %vm2289_vm11, %v2257_v42, %v2322_v61  ;;  %v2150_v59 = vadd.f32 %v5862_v30, %v2037_v52  ;;  %v2930_v30 = vld [vmem:[#allocation9 + $0x220] sm:$0xff]  ;;  %3081 = vmatpush.msrb.mxu2 %v2931_v50 }
 0x2db   : > { %7303 = vst [vmem:[#allocation36_spill] sm:$0xff] %v5915_v32  ;;  %v2456_v25 = vrot.slane %v5915_v32, 7  ;;  %v2568_v62 = vrot.slane %v5915_v32, 1  ;;  %v2769_v61 = vld [vmem:[#allocation9 + $0x20] sm:$0xff]  ;;  %3307 = vmatpush.msrb.mxu0 %v2770_v43  ;;  %3195 = vmatpush.msrb.mxu3 %v2946_v29  ;;  %v2927_v29 = vld [vmem:[#allocation9 + $0x208] sm:$0xff] }
 0x2dc   : > { %2388 = vst [vmem:[#allocation3 + $0x110] sm:$0xff] %v5915_v32  ;;  %v2225_v56 = vadd.f32 %v2150_v59, %v1662_v7  ;;  %1973 = vmatmul.f32.gmra.mxu2 %v1812_v41  ;;  %v5922_v13 = vld [vmem:[#allocation3 + $0xf0] sm:$0xff]  ;;  %v2929_v59 = vld [vmem:[#allocation9 + $0x218] sm:$0xff]  ;;  %v5934_v7 = vpop.f32.mrf.mxu1  ;;  %v1815_v43 = vld [vmem:[#allocation2 + $0x300] sm:$0xff] }
 0x2dd   : > { %7304 = vst [vmem:[#allocation37_spill] sm:$0xff] %v5922_v13  ;;  %v2457_v42 = vsel %vm531_vm0, %v2455_v1, %v2456_v25  ;;  %v5926_v37 = vsel %vm644_vm1, %v2567_v49, %v2568_v62  ;;  %2998 = vmatmul.f32.gmra.mxu1 %v5922_v13  ;;  %v5931_v51 = vpop.f32.mrf.mxu0  ;;  %v1820_v1 = vld [vmem:[#allocation2 + $0x328] sm:$0xff]  ;;  %3082 = vmatpush.msrb.mxu2 %v2930_v30  ;;  %v2945_v41 = vld [vmem:[#allocation9 + $0x298] sm:$0xff]  ;;  %v2767_v13 = vld [vmem:[#allocation9 + $0x10] sm:$0xff] }
 0x2de   : > { %2644 = vst [vmem:[#allocation3 + $0x118] sm:$0x7f] %v2568_v62  ;;  %v2258_v52 = vadd.f32 %v5725_v0, %v2225_v56  ;;  %2098 = vmatmul.f32.gmra.mxu3 %v5906_v47  ;;  %3308 = vmatpush.msrb.mxu0 %v2769_v61  ;;  %v2768_v25 = vld [vmem:[#allocation9 + $0x18] sm:$0xff]  ;;  %v5938_v62 = vpop.f32.mrf.mxu3  ;;  %v2944_v56 = vld [vmem:[#allocation9 + $0x290] sm:$0xff]  ;;  %v1665_v30 = vadd.f32 %v5678_v54, %v5626_v5  ;;  %v2790_v5 = vld [vmem:[#allocation9 + $0xc8] sm:$0xff] }
 0x2df   : > { %2532 = vst [vmem:[#allocation3 + $0x108] sm:$0xff] %v2457_v42  ;;  %v1926_v45 = vpop.f32.mrf.mxu2  ;;  %3083 = vmatpush.msrb.mxu2 %v2929_v59  ;;  %3196 = vmatpush.msrb.mxu3 %v2945_v41  ;;  %v2943_v59 = vld [vmem:[#allocation9 + $0x288] sm:$0xff]  ;;  %v2926_v54 = vld [vmem:[#allocation9 + $0x200] sm:$0xff] }
 0x2e0   : > { %2643 = vst [vmem:[#allocation3 + $0x100] sm:$0xff] %v5926_v37  ;;  %vm2290_vm12 = vcmp.ge.f32.partialorder %v2258_v52, 0.0  ;;  %v2323_v50 = vmul.f32 %v5728_v11, %v2258_v52  ;;  %v2040_v49 = vadd.f32 %v5851_v22, %v1926_v45  ;;  %2205 = vmatmul.f32.gmra.mxu0 %v1820_v1  ;;  %v2766_v45 = vld [vmem:[#allocation9 + $0x8] sm:$0xff]  ;;  %3416 = vmatpush.msrb.mxu1 %v2790_v5  ;;  %v2765_v1 = vld [vmem:[#allocation9] sm:$0xff] }
 0x2e1   : > { %7305 = vst [vmem:[#allocation38_spill] sm:$0xff] %v5934_v7  ;;  %3309 = vmatpush.msrb.mxu0 %v2768_v25  ;;  %3084 = vmatpush.msrb.mxu2 %v2928_v40  ;;  %v1668_v25 = vadd.f32 %v5683_v2, %v5631_v35 }
 0x2e2   : > { %v5942_v32 = vsel %vm2290_vm12, %v2258_v52, %v2323_v50  ;;  %v2153_v7 = vadd.f32 %v5888_v55, %v2040_v49  ;;  %3197 = vmatpush.msrb.mxu3 %v2944_v56  ;;  %v2942_v52 = vld [vmem:[#allocation9 + $0x280] sm:$0xff] }
 0x2e3   : > { %2389 = vst [vmem:[#allocation3 + $0x128] sm:$0xff] %v5942_v32  ;;  %v2458_v22 = vrot.slane %v5942_v32, 7  ;;  %3310 = vmatpush.msrb.mxu0 %v2767_v13  ;;  %3085 = vmatpush.msrb.mxu2 %v2927_v29  ;;  %v1818_v13 = vld [vmem:[#allocation2 + $0x318] sm:$0xff] }
 0x2e4   : > { %v2226_v61 = vadd.f32 %v2153_v7, %v1665_v30  ;;  %1976 = vmatmul.f32.gmra.mxu2 %v1815_v43  ;;  %3198 = vmatpush.msrb.mxu3 %v2943_v59  ;;  %v5954_v40 = vpop.f32.mrf.mxu1 }
 0x2e5   : > { %2533 = vst [vmem:[#allocation3 + $0x120] sm:$0xfe] %v2458_v22  ;;  %3001 = vmatmul.f32.gmra.mxu1 %v2457_v42  ;;  %v2161_v50 = vpop.f32.mrf.mxu0  ;;  %3311 = vmatpush.msrb.mxu0 %v2766_v45 }
 0x2e6   : > { %v2259_v55 = vadd.f32 %v5725_v0, %v2226_v61  ;;  %3086 = vmatpush.msrb.mxu2 %v2926_v54  ;;  %v5950_v42 = vpop.f32.mrf.mxu3  ;;  %3199 = vmatpush.msrb.mxu3 %v2942_v52  ;;  %v2818_v54 = vld [vmem:[#allocation3 + $0x58] sm:$0xff]  ;;  %v1671_v52 = vadd.f32 %v5690_v27, %v5637_v57  ;;  %v2789_v57 = vld [vmem:[#allocation9 + $0xc0] sm:$0xff] }
 0x2e7   : > { %v1929_v41 = vpop.f32.mrf.mxu2  ;;  %3312 = vmatpush.msrb.mxu0 %v2765_v1  ;;  %3200 = vmatmul.f32.vlgmr.msrb.gmra.mxu3 %v5764_v63 }
 0x2e8   : > { %vm2291_vm13 = vcmp.ge.f32.partialorder %v2259_v55, 0.0  ;;  %v2324_v7 = vmul.f32 %v5728_v11, %v2259_v55  ;;  %v2043_v49 = vadd.f32 %v5866_v36, %v1929_v41  ;;  %2208 = vmatmul.f32.gmra.mxu0 %v5906_v47  ;;  %v2570_v36 = vrot.slane %v5942_v32, 1  ;;  %3417 = vmatpush.msrb.mxu1 %v2789_v57 }
 0x2ea   : > { %v5956_v43 = vsel %vm2291_vm13, %v2259_v55, %v2324_v7  ;;  %v2156_v56 = vadd.f32 %v5904_v10, %v2043_v49 }
 0x2eb   : > { %2390 = vst [vmem:[#allocation3 + $0x140] sm:$0xff] %v5956_v43  ;;  %v2459_v30 = vrot.slane %v5956_v43, 7  ;;  %v2571_v29 = vrot.slane %v5956_v43, 1 }
 0x2ec   : > { %v2227_v61 = vadd.f32 %v2156_v56, %v1668_v25  ;;  %1979 = vmatmul.f32.gmra.mxu2 %v1818_v13  ;;  %v5965_v35 = vld [vmem:[#allocation3 + $0x120] sm:$0xff]  ;;  %v5989_v49 = vpop.f32.mrf.mxu1 }
 0x2ed   : > { %v5968_v2 = vsel %vm531_vm0, %v2458_v22, %v2459_v30  ;;  %v5971_v10 = vsel %vm644_vm1, %v2570_v36, %v2571_v29  ;;  %2646 = vst [vmem:[#allocation3 + $0x148] sm:$0x7f] %v2571_v29  ;;  %3004 = vmatmul.f32.gmra.mxu1 %v5965_v35  ;;  %v2164_v45 = vpop.f32.mrf.mxu0  ;;  %v1674_v30 = vadd.f32 %v5696_v15, %v5641_v12 }
 0x2ee   : > { %2534 = vst [vmem:[#allocation3 + $0x138] sm:$0xff] %v5968_v2  ;;  %v2260_v63 = vadd.f32 %v5725_v0, %v2227_v61  ;;  %v5979_v55 = vpop.f32.mrf.mxu3 }
 0x2ef   : > { %2645 = vst [vmem:[#allocation3 + $0x130] sm:$0xff] %v5971_v10  ;;  %v1932_v59 = vpop.f32.mrf.mxu2  ;;  %3203 = vmatmul.f32.gmra.mxu3 %v2818_v54 }
 0x2f0   : > { %vm2292_vm14 = vcmp.ge.f32.partialorder %v2260_v63, 0.0  ;;  %v2325_v5 = vmul.f32 %v5728_v11, %v2260_v63  ;;  %v2046_v22 = vadd.f32 %v5892_v34, %v1932_v59  ;;  %2211 = vmatmul.f32.gmra.mxu0 %v5906_v47 }
 0x2f2   : > { %v5983_v1 = vsel %vm2292_vm14, %v2260_v63, %v2325_v5  ;;  %v2159_v41 = vadd.f32 %v5931_v51, %v2046_v22 }
 0x2f3   : > { %2391 = vst [vmem:[#allocation3 + $0x158] sm:$0xff] %v5983_v1  ;;  %v2461_v7 = vrot.slane %v5983_v1, 7  ;;  %v2573_v63 = vrot.slane %v5983_v1, 1 }
 0x2f4   : > { %v2228_v34 = vadd.f32 %v2159_v41, %v1671_v52  ;;  %1982 = vmatmul.f32.gmra.mxu2 %v5906_v47 }
 0x2f5   : > { %2535 = vst [vmem:[#allocation3 + $0x150] sm:$0xfe] %v2461_v7  ;;  %3007 = vmatmul.f32.gmra.mxu1 %v5968_v2  ;;  %v2167_v13 = vpop.f32.mrf.mxu0 }
 0x2f6   : > { %v2261_v27 = vadd.f32 %v5725_v0, %v2228_v34  ;;  %v5996_v36 = vpop.f32.mrf.mxu3  ;;  %v2824_v34 = vld [vmem:[#allocation3 + $0x88] sm:$0xff] }
 0x2f7   : > { %v1935_v51 = vpop.f32.mrf.mxu2  ;;  %3206 = vmatmul.f32.gmra.mxu3 %v5802_v58  ;;  %v6018_v58 = vpop.f32.mrf.mxu1 }
 0x2f8   : > { %vm2293_vm15 = vcmp.ge.f32.partialorder %v2261_v27, 0.0  ;;  %v2326_v25 = vmul.f32 %v5728_v11, %v2261_v27  ;;  %v2049_v56 = vadd.f32 %v5911_v31, %v1935_v51  ;;  %3313 = vmatmul.f32.vlgmr.msrb.gmra.mxu0 %v5906_v47 }
 0x2fa   : > { %v6000_v29 = vsel %vm2293_vm15, %v2261_v27, %v2326_v25  ;;  %v2162_v61 = vadd.f32 %v2161_v50, %v2049_v56  ;;  %v1677_v27 = vadd.f32 %v5705_v20, %v5645_v16 }
 0x2fb   : > { %2392 = vst [vmem:[#allocation3 + $0x170] sm:$0xff] %v6000_v29  ;;  %v2462_v59 = vrot.slane %v6000_v29, 7  ;;  %v2574_v31 = vrot.slane %v6000_v29, 1 }
 0x2fc   : > { %v2229_v5 = vadd.f32 %v2162_v61, %v1674_v30  ;;  %1985 = vmatmul.f32.gmra.mxu2 %v5906_v47  ;;  %v6009_v22 = vld [vmem:[#allocation3 + $0x150] sm:$0xff] }
 0x2fd   : > { %v6012_v12 = vsel %vm531_vm0, %v2461_v7, %v2462_v59  ;;  %v6015_v15 = vsel %vm644_vm1, %v2573_v63, %v2574_v31  ;;  %2648 = vst [vmem:[#allocation3 + $0x178] sm:$0x7f] %v2574_v31  ;;  %3010 = vmatmul.f32.gmra.mxu1 %v6009_v22  ;;  %v2170_v52 = vpop.f32.mrf.mxu0 }
 0x2fe   : > { %2536 = vst [vmem:[#allocation3 + $0x168] sm:$0xff] %v6012_v12  ;;  %v2262_v50 = vadd.f32 %v5725_v0, %v2229_v5  ;;  %v6025_v57 = vpop.f32.mrf.mxu3 }
 0x2ff   : > { %2647 = vst [vmem:[#allocation3 + $0x160] sm:$0xff] %v6015_v15  ;;  %v1938_v54 = vpop.f32.mrf.mxu2  ;;  %3209 = vmatmul.f32.gmra.mxu3 %v2824_v34 }
 0x300   : > { %vm2294_vm2 = vcmp.ge.f32.partialorder %v2262_v50, 0.0  ;;  %v2327_v41 = vmul.f32 %v5728_v11, %v2262_v50  ;;  %v2052_v7 = vadd.f32 %v5938_v62, %v1938_v54  ;;  %3316 = vmatmul.f32.gmra.mxu0 %v5906_v47  ;;  %v2788_v62 = vld [vmem:[#allocation9 + $0xb8] sm:$0xff] }
 0x301   : > { %3418 = vmatpush.msrb.mxu1 %v2788_v62 }
 0x302   : > { %v6029_v51 = vsel %vm2294_vm2, %v2262_v50, %v2327_v41  ;;  %v2165_v25 = vadd.f32 %v2164_v45, %v2052_v7  ;;  %v6037_v45 = vpop.f32.mrf.mxu1 }
 0x303   : > { %2393 = vst [vmem:[#allocation3 + $0x188] sm:$0xff] %v6029_v51  ;;  %v2464_v56 = vrot.slane %v6029_v51, 7  ;;  %v2576_v50 = vrot.slane %v6029_v51, 1 }
 0x304   : > { %v2230_v30 = vadd.f32 %v2165_v25, %v1677_v27  ;;  %3087 = vmatmul.f32.vlgmr.msrb.gmra.mxu2 %v5739_v38  ;;  %v1680_v38 = vadd.f32 %v5712_v46, %v5648_v48  ;;  %v2678_v27 = vld [vmem:[#allocation3 + $0x48] sm:$0xff]  ;;  %v2830_v25 = vld [vmem:[#allocation3 + $0xb8] sm:$0xff] }
 0x305   : > { %2537 = vst [vmem:[#allocation3 + $0x180] sm:$0xfe] %v2464_v56  ;;  %3013 = vmatmul.f32.gmra.mxu1 %v6012_v12  ;;  %v2173_v20 = vpop.f32.mrf.mxu0 }
 0x306   : > { %v2263_v61 = vadd.f32 %v5725_v0, %v2230_v30  ;;  %v6041_v59 = vpop.f32.mrf.mxu3  ;;  %v1683_v30 = vadd.f32 %v5721_v18, %v5651_v53 }
 0x307   : > { %v1941_v16 = vpop.f32.mrf.mxu2  ;;  %3212 = vmatmul.f32.gmra.mxu3 %v5842_v21 }
 0x308   : > { %vm2295_vm3 = vcmp.ge.f32.partialorder %v2263_v61, 0.0  ;;  %v2328_v47 = vmul.f32 %v5728_v11, %v2263_v61  ;;  %v2055_v63 = vadd.f32 %v5950_v42, %v1941_v16  ;;  %3319 = vmatmul.f32.gmra.mxu0 %v5760_v17 }
 0x30a   : > { %v6045_v31 = vsel %vm2295_vm3, %v2263_v61, %v2328_v47  ;;  %v2168_v5 = vadd.f32 %v2167_v13, %v2055_v63  ;;  %v6072_v62 = vpop.f32.mrf.mxu1  ;;  %v6080_v47 = vld [vmem:[#allocation10 + $0x2] ss:$0 sm:$0xff]  ;;  %v6083_v63 = vld [vmem:[#allocation10 + $0x3] ss:$0 sm:$0xff] }
 0x30b   : > { %2394 = vst [vmem:[#allocation3 + $0x1a0] sm:$0xff] %v6045_v31  ;;  %v2465_v54 = vrot.slane %v6045_v31, 7  ;;  %v2577_v42 = vrot.slane %v6045_v31, 1 }
 0x30c   : > { %v2231_v41 = vadd.f32 %v2168_v5, %v1680_v38  ;;  %3090 = vmatmul.f32.gmra.mxu2 %v5753_v39  ;;  %v6054_v7 = vld [vmem:[#allocation3 + $0x180] sm:$0xff] }
 0x30d   : > { %v6057_v48 = vsel %vm531_vm0, %v2464_v56, %v2465_v54  ;;  %v6060_v46 = vsel %vm644_vm1, %v2576_v50, %v2577_v42  ;;  %2650 = vst [vmem:[#allocation3 + $0x1a8] sm:$0x7f] %v2577_v42  ;;  %3016 = vmatmul.f32.gmra.mxu1 %v6054_v7  ;;  %v2176_v13 = vpop.f32.mrf.mxu0 }
 0x30e   : > { %2538 = vst [vmem:[#allocation3 + $0x198] sm:$0xff] %v6057_v48  ;;  %v2264_v17 = vadd.f32 %v5725_v0, %v2231_v41  ;;  %v6068_v56 = vpop.f32.mrf.mxu3 }
 0x30f   : > { %2649 = vst [vmem:[#allocation3 + $0x190] sm:$0xff] %v6060_v46  ;;  %v1944_v21 = vpop.f32.mrf.mxu2  ;;  %3215 = vmatmul.f32.gmra.mxu3 %v2830_v25  ;;  %v2684_v25 = vld [vmem:[#allocation3 + $0x78] sm:$0xff] }
 0x310   : > { %vm2296_vm4 = vcmp.ge.f32.partialorder %v2264_v17, 0.0  ;;  %v2329_v39 = vmul.f32 %v5728_v11, %v2264_v17  ;;  %v2058_v34 = vadd.f32 %v5979_v55, %v1944_v21  ;;  %3322 = vmatmul.f32.gmra.mxu0 %v2678_v27  ;;  %v2787_v55 = vld [vmem:[#allocation9 + $0xb0] sm:$0xff] }
 0x311   : > { %3419 = vmatpush.msrb.mxu1 %v2787_v55 }
 0x312   : > { %v6074_v61 = vsel %vm2296_vm4, %v2264_v17, %v2329_v39  ;;  %v2171_v0 = vadd.f32 %v2170_v52, %v2058_v34 }
 0x313   : > { %2395 = vst [vmem:[#allocation3 + $0x1b8] sm:$0xff] %v6074_v61  ;;  %v2467_v11 = vrot.slane %v6074_v61, 7  ;;  %v2579_v17 = vrot.slane %v6074_v61, 1 }
 0x314   : > { %v2232_v16 = vadd.f32 %v2171_v0, %v1683_v30  ;;  %3093 = vmatmul.f32.gmra.mxu2 %v5775_v3  ;;  %v1686_v3 = vadd.f32 %v5733_v14, %v5654_v24  ;;  %v2836_v30 = vld [vmem:[#allocation3 + $0xe8] sm:$0xff] }
 0x315   : > { %2539 = vst [vmem:[#allocation3 + $0x1b0] sm:$0xfe] %v2467_v11  ;;  %3019 = vmatmul.f32.gmra.mxu1 %v6057_v48  ;;  %v2179_v52 = vpop.f32.mrf.mxu0 }
 0x316   : > { %v2265_v53 = vadd.f32 %v6080_v47, %v2232_v16  ;;  %v6087_v50 = vpop.f32.mrf.mxu3 }
 0x317   : > { %v1947_v18 = vpop.f32.mrf.mxu2  ;;  %3218 = vmatmul.f32.gmra.mxu3 %v5883_v26 }
 0x318   : > { %vm2297_vm5 = vcmp.ge.f32.partialorder %v2265_v53, 0.0  ;;  %v2330_v38 = vmul.f32 %v6083_v63, %v2265_v53  ;;  %v2061_v5 = vadd.f32 %v5996_v36, %v1947_v18  ;;  %3325 = vmatmul.f32.gmra.mxu0 %v5798_v44 }
 0x31a   : > { %v6091_v54 = vsel %vm2297_vm5, %v2265_v53, %v2330_v38  ;;  %v2174_v42 = vadd.f32 %v2173_v20, %v2061_v5  ;;  %v6093_v41 = vpop.f32.mrf.mxu1 }
 0x31b   : > { %2396 = vst [vmem:[#allocation3 + $0x1d0] sm:$0xff] %v6091_v54  ;;  %v2468_v36 = vrot.slane %v6091_v54, 7  ;;  %v2580_v21 = vrot.slane %v6091_v54, 1 }
 0x31c   : > { %v2233_v39 = vadd.f32 %v2174_v42, %v1686_v3  ;;  %3096 = vmatmul.f32.gmra.mxu2 %v5790_v33  ;;  %v6102_v24 = vld [vmem:[#allocation3 + $0x1b0] sm:$0xff] }
 0x31d   : > { %v6105_v14 = vsel %vm531_vm0, %v2467_v11, %v2468_v36  ;;  %v6108_v44 = vsel %vm644_vm1, %v2579_v17, %v2580_v21  ;;  %2652 = vst [vmem:[#allocation3 + $0x1d8] sm:$0x7f] %v2580_v21  ;;  %3022 = vmatmul.f32.gmra.mxu1 %v6102_v24  ;;  %v2182_v34 = vpop.f32.mrf.mxu0  ;;  %v1689_v11 = vadd.f32 %v5751_v23, %v5657_v28 }
 0x31e   : > { %2540 = vst [vmem:[#allocation3 + $0x1c8] sm:$0xff] %v6105_v14  ;;  %v2266_v26 = vadd.f32 %v6080_v47, %v2233_v39  ;;  %v6116_v0 = vpop.f32.mrf.mxu3  ;;  %v1692_v17 = vadd.f32 %v5780_v6, %v5662_v19 }
 0x31f   : > { %2651 = vst [vmem:[#allocation3 + $0x1c0] sm:$0xff] %v6108_v44  ;;  %v1950_v20 = vpop.f32.mrf.mxu2  ;;  %3221 = vmatmul.f32.gmra.mxu3 %v2836_v30  ;;  %v2842_v30 = vld [vmem:[#allocation3 + $0x118] sm:$0xff] }
 0x320   : > { %vm2298_vm6 = vcmp.ge.f32.partialorder %v2266_v26, 0.0  ;;  %v2331_v33 = vmul.f32 %v6083_v63, %v2266_v26  ;;  %v2064_v27 = vadd.f32 %v6025_v57, %v1950_v20  ;;  %3328 = vmatmul.f32.gmra.mxu0 %v2684_v25  ;;  %v2786_v57 = vld [vmem:[#allocation9 + $0xa8] sm:$0xff] }
 0x321   : > { %3420 = vmatpush.msrb.mxu1 %v2786_v57  ;;  %v2690_v25 = vld [vmem:[#allocation3 + $0xa8] sm:$0xff] }
 0x322   : > { %v6120_v16 = vsel %vm2298_vm6, %v2266_v26, %v2331_v33  ;;  %v2177_v55 = vadd.f32 %v2176_v13, %v2064_v27  ;;  %v6122_v53 = vpop.f32.mrf.mxu1 }
 0x323   : > { %2397 = vst [vmem:[#allocation3 + $0x1e8] sm:$0xff] %v6120_v16  ;;  %v2470_v18 = vrot.slane %v6120_v16, 7  ;;  %v2582_v39 = vrot.slane %v6120_v16, 1 }
 0x324   : > { %v2234_v38 = vadd.f32 %v2177_v55, %v1689_v11  ;;  %3099 = vmatmul.f32.gmra.mxu2 %v5815_v9  ;;  %v7306_v55 = vld [vmem:[#allocation26_spill] sm:$0xff] }
 0x325   : > { %2541 = vst [vmem:[#allocation3 + $0x1e0] sm:$0xfe] %v2470_v18  ;;  %3025 = vmatmul.f32.gmra.mxu1 %v6105_v14  ;;  %v2185_v13 = vpop.f32.mrf.mxu0 }
 0x326   : > { %v2267_v28 = vadd.f32 %v6080_v47, %v2234_v38  ;;  %v6131_v42 = vpop.f32.mrf.mxu3 }
 0x327   : > { %v1953_v23 = vpop.f32.mrf.mxu2  ;;  %3224 = vmatmul.f32.gmra.mxu3 %v5926_v37 }
 0x328   : > { %vm2299_vm7 = vcmp.ge.f32.partialorder %v2267_v28, 0.0  ;;  %v2332_v5 = vmul.f32 %v6083_v63, %v2267_v28  ;;  %v2067_v3 = vadd.f32 %v6041_v59, %v1953_v23  ;;  %3331 = vmatmul.f32.gmra.mxu0 %v5838_v4 }
 0x32a   : > { %v6135_v9 = vsel %vm2299_vm7, %v2267_v28, %v2332_v5  ;;  %v2180_v36 = vadd.f32 %v2179_v52, %v2067_v3  ;;  %v6137_v21 = vpop.f32.mrf.mxu1 }
 0x32b   : > { %2398 = vst [vmem:[#allocation3 + $0x200] sm:$0xff] %v6135_v9  ;;  %v2471_v59 = vrot.slane %v6135_v9, 7  ;;  %v2583_v26 = vrot.slane %v6135_v9, 1 }
 0x32c   : > { %v2235_v20 = vadd.f32 %v2180_v36, %v1692_v17  ;;  %3102 = vmatmul.f32.gmra.mxu2 %v5830_v8  ;;  %v6146_v19 = vld [vmem:[#allocation3 + $0x1e0] sm:$0xff] }
 0x32d   : > { %v6149_v6 = vsel %vm531_vm0, %v2470_v18, %v2471_v59  ;;  %v6152_v4 = vsel %vm644_vm1, %v2582_v39, %v2583_v26  ;;  %2654 = vst [vmem:[#allocation3 + $0x208] sm:$0x7f] %v2583_v26  ;;  %3028 = vmatmul.f32.gmra.mxu1 %v6146_v19  ;;  %v2188_v33 = vpop.f32.mrf.mxu0  ;;  %v7307_v18 = vld [vmem:[#allocation28_spill] sm:$0xff] }
 0x32e   : > { %2542 = vst [vmem:[#allocation3 + $0x1f8] sm:$0xff] %v6149_v6  ;;  %v2268_v37 = vadd.f32 %v6080_v47, %v2235_v20  ;;  %v6160_v11 = vpop.f32.mrf.mxu3  ;;  %v1695_v38 = vadd.f32 %v7307_v18, %v7306_v55  ;;  %v2785_v17 = vld [vmem:[#allocation9 + $0xa0] sm:$0xff]  ;;  %v7311_v55 = vld [vmem:[#allocation34_spill] sm:$0xff] }
 0x32f   : > { %2653 = vst [vmem:[#allocation3 + $0x1f0] sm:$0xff] %v6152_v4  ;;  %v1956_v52 = vpop.f32.mrf.mxu2  ;;  %3227 = vmatmul.f32.gmra.mxu3 %v2842_v30  ;;  %3421 = vmatpush.msrb.mxu1 %v2785_v17 }
 0x330   : > { %vm2300_vm8 = vcmp.ge.f32.partialorder %v2268_v37, 0.0  ;;  %v2333_v8 = vmul.f32 %v6083_v63, %v2268_v37  ;;  %v2070_v27 = vadd.f32 %v6068_v56, %v1956_v52  ;;  %3334 = vmatmul.f32.gmra.mxu0 %v2690_v25  ;;  %v7308_v56 = vld [vmem:[#allocation31_spill] sm:$0xff]  ;;  %v7310_v52 = vld [vmem:[#allocation29_spill] sm:$0xff] }
 0x332   : > { %v6164_v57 = vsel %vm2300_vm8, %v2268_v37, %v2333_v8  ;;  %v2183_v28 = vadd.f32 %v2182_v34, %v2070_v27  ;;  %v6166_v23 = vpop.f32.mrf.mxu1  ;;  %v7309_v37 = vld [vmem:[#allocation27_spill] sm:$0xff] }
 0x333   : > { %2399 = vst [vmem:[#allocation3 + $0x218] sm:$0xff] %v6164_v57  ;;  %v2473_v5 = vrot.slane %v6164_v57, 7  ;;  %v1698_v8 = vadd.f32 %v7310_v52, %v7309_v37  ;;  %v2585_v18 = vrot.slane %v6164_v57, 1  ;;  %v2848_v37 = vld [vmem:[#allocation3 + $0x148] sm:$0xff] }
 0x334   : > { %v2236_v3 = vadd.f32 %v2183_v28, %v1695_v38  ;;  %3105 = vmatmul.f32.gmra.mxu2 %v7308_v56 }
 0x335   : > { %2543 = vst [vmem:[#allocation3 + $0x210] sm:$0xfe] %v2473_v5  ;;  %3031 = vmatmul.f32.gmra.mxu1 %v6149_v6  ;;  %v2191_v34 = vpop.f32.mrf.mxu0 }
 0x336   : > { %v2269_v36 = vadd.f32 %v6080_v47, %v2236_v3  ;;  %v6175_v20 = vpop.f32.mrf.mxu3  ;;  %v7312_v3 = vld [vmem:[#allocation32_spill] sm:$0xff] }
 0x337   : > { %v1959_v39 = vpop.f32.mrf.mxu2  ;;  %3230 = vmatmul.f32.gmra.mxu3 %v5971_v10 }
 0x338   : > { %vm2301_vm9 = vcmp.ge.f32.partialorder %v2269_v36, 0.0  ;;  %v2334_v59 = vmul.f32 %v6083_v63, %v2269_v36  ;;  %v2073_v26 = vadd.f32 %v6087_v50, %v1959_v39  ;;  %3337 = vmatmul.f32.gmra.mxu0 %v7311_v55 }
 0x33a   : > { %v6179_v27 = vsel %vm2301_vm9, %v2269_v36, %v2334_v59  ;;  %v2186_v25 = vadd.f32 %v2185_v13, %v2073_v26  ;;  %v6181_v30 = vpop.f32.mrf.mxu1  ;;  %v2696_v26 = vld [vmem:[#allocation3 + $0xd8] sm:$0xff] }
 0x33b   : > { %2400 = vst [vmem:[#allocation3 + $0x230] sm:$0xff] %v6179_v27  ;;  %v2474_v50 = vrot.slane %v6179_v27, 7  ;;  %v2586_v38 = vrot.slane %v6179_v27, 1 }
 0x33c   : > { %v2237_v28 = vadd.f32 %v2186_v25, %v1698_v8  ;;  %3108 = vmatmul.f32.gmra.mxu2 %v7312_v3  ;;  %v6190_v56 = vld [vmem:[#allocation3 + $0x210] sm:$0xff]  ;;  %v7314_v8 = vld [vmem:[#allocation17_spill] sm:$0xff] }
 0x33d   : > { %v6193_v13 = vsel %vm531_vm0, %v2473_v5, %v2474_v50  ;;  %v6196_v17 = vsel %vm644_vm1, %v2585_v18, %v2586_v38  ;;  %2656 = vst [vmem:[#allocation3 + $0x238] sm:$0x7f] %v2586_v38  ;;  %3034 = vmatmul.f32.gmra.mxu1 %v6190_v56  ;;  %v2194_v39 = vpop.f32.mrf.mxu0  ;;  %v7315_v25 = vld [vmem:[#allocation30_spill] sm:$0xff] }
 0x33e   : > { %7313 = vst [vmem:[#allocation26_spill] sm:$0xff] %v6193_v13  ;;  %v2270_v10 = vadd.f32 %v6080_v47, %v2237_v28  ;;  %v6204_v52 = vpop.f32.mrf.mxu3  ;;  %v1701_v55 = vadd.f32 %v7315_v25, %v7314_v8  ;;  %v7318_v8 = vld [vmem:[#allocation33_spill] sm:$0xff] }
 0x33f   : > { %2544 = vst [vmem:[#allocation3 + $0x228] sm:$0xff] %v6193_v13  ;;  %v1962_v36 = vpop.f32.mrf.mxu2  ;;  %3233 = vmatmul.f32.gmra.mxu3 %v2848_v37  ;;  %v7317_v37 = vld [vmem:[#allocation18_spill] sm:$0xff] }
 0x340   : > { %2655 = vst [vmem:[#allocation3 + $0x220] sm:$0xff] %v6196_v17  ;;  %vm2302_vm10 = vcmp.ge.f32.partialorder %v2270_v10, 0.0  ;;  %v2335_v59 = vmul.f32 %v6083_v63, %v2270_v10  ;;  %v2076_v5 = vadd.f32 %v6116_v0, %v1962_v36  ;;  %3340 = vmatmul.f32.gmra.mxu0 %v2696_v26  ;;  %v2784_v0 = vld [vmem:[#allocation9 + $0x98] sm:$0xff]  ;;  %v1704_v25 = vadd.f32 %v7318_v8, %v7317_v37  ;;  %v2702_v37 = vld [vmem:[#allocation3 + $0x108] sm:$0xff] }
 0x341   : > { %3422 = vmatpush.msrb.mxu1 %v2784_v0  ;;  %v2854_v8 = vld [vmem:[#allocation3 + $0x178] sm:$0xff] }
 0x342   : > { %v6208_v18 = vsel %vm2302_vm10, %v2270_v10, %v2335_v59  ;;  %v2189_v50 = vadd.f32 %v2188_v33, %v2076_v5  ;;  %v6210_v38 = vpop.f32.mrf.mxu1 }
 0x343   : > { %7316 = vst [vmem:[#allocation28_spill] sm:$0xff] %v6210_v38  ;;  %v2476_v28 = vrot.slane %v6208_v18, 7  ;;  %v7322_v38 = vld [vmem:[#allocation36_spill] sm:$0xff] }
 0x344   : > { %2401 = vst [vmem:[#allocation3 + $0x248] sm:$0xff] %v6208_v18  ;;  %v2238_v3 = vadd.f32 %v2189_v50, %v1701_v55  ;;  %3111 = vmatmul.f32.gmra.mxu2 %v5896_v60 }
 0x345   : > { %2545 = vst [vmem:[#allocation3 + $0x240] sm:$0xfe] %v2476_v28  ;;  %3037 = vmatmul.f32.gmra.mxu1 %v6193_v13  ;;  %v2197_v33 = vpop.f32.mrf.mxu0  ;;  %v7321_v13 = vld [vmem:[#allocation37_spill] sm:$0xff] }
 0x346   : > { %v2271_v36 = vadd.f32 %v6080_v47, %v2238_v3  ;;  %v6219_v26 = vpop.f32.mrf.mxu3  ;;  %v2588_v3 = vrot.slane %v6208_v18, 1 }
 0x347   : > { %v1965_v10 = vpop.f32.mrf.mxu2  ;;  %3236 = vmatmul.f32.gmra.mxu3 %v6015_v15 }
 0x348   : > { %vm2303_vm11 = vcmp.ge.f32.partialorder %v2271_v36, 0.0  ;;  %v2336_v59 = vmul.f32 %v6083_v63, %v2271_v36  ;;  %v2079_v5 = vadd.f32 %v6131_v42, %v1965_v10  ;;  %3343 = vmatmul.f32.gmra.mxu0 %v7321_v13 }
 0x34a   : > { %v6223_v60 = vsel %vm2303_vm11, %v2271_v36, %v2336_v59  ;;  %v2192_v55 = vadd.f32 %v2191_v34, %v2079_v5  ;;  %v6225_v50 = vpop.f32.mrf.mxu1 }
 0x34b   : > { %7319 = vst [vmem:[#allocation31_spill] sm:$0xff] %v6223_v60  ;;  %v2477_v42 = vrot.slane %v6223_v60, 7  ;;  %v2589_v0 = vrot.slane %v6223_v60, 1 }
 0x34c   : > { %7320 = vst [vmem:[#allocation27_spill] sm:$0xff] %v6225_v50  ;;  %v2239_v10 = vadd.f32 %v2192_v55, %v1704_v25  ;;  %3114 = vmatmul.f32.gmra.mxu2 %v7322_v38  ;;  %v6234_v36 = vld [vmem:[#allocation3 + $0x240] sm:$0xff]  ;;  %v7324_v55 = vld [vmem:[#allocation19_spill] sm:$0xff] }
 0x34d   : > { %2402 = vst [vmem:[#allocation3 + $0x260] sm:$0xff] %v6223_v60  ;;  %v6237_v34 = vsel %vm531_vm0, %v2476_v28, %v2477_v42  ;;  %v6240_v13 = vsel %vm644_vm1, %v2588_v3, %v2589_v0  ;;  %3040 = vmatmul.f32.gmra.mxu1 %v6234_v36  ;;  %v2200_v5 = vpop.f32.mrf.mxu0  ;;  %v7325_v3 = vld [vmem:[#allocation35_spill] sm:$0xff] }
 0x34e   : > { %7323 = vst [vmem:[#allocation29_spill] sm:$0xff] %v6234_v36  ;;  %v2272_v15 = vadd.f32 %v6080_v47, %v2239_v10  ;;  %v6248_v25 = vpop.f32.mrf.mxu3  ;;  %v1707_v42 = vadd.f32 %v7325_v3, %v7324_v55 }
 0x34f   : > { %2658 = vst [vmem:[#allocation3 + $0x268] sm:$0x7f] %v2589_v0  ;;  %v1968_v59 = vpop.f32.mrf.mxu2  ;;  %3239 = vmatmul.f32.gmra.mxu3 %v2854_v8  ;;  %v7327_v8 = vld [vmem:[#allocation38_spill] sm:$0xff] }
 0x350   : > { %2546 = vst [vmem:[#allocation3 + $0x258] sm:$0xff] %v6237_v34  ;;  %vm2304_vm12 = vcmp.ge.f32.partialorder %v2272_v15, 0.0  ;;  %v2337_v38 = vmul.f32 %v6083_v63, %v2272_v15  ;;  %v2082_v28 = vadd.f32 %v6160_v11, %v1968_v59  ;;  %3346 = vmatmul.f32.gmra.mxu0 %v2702_v37  ;;  %v2783_v11 = vld [vmem:[#allocation9 + $0x90] sm:$0xff]  ;;  %v7326_v37 = vld [vmem:[#allocation20_spill] sm:$0xff] }
 0x351   : > { %2657 = vst [vmem:[#allocation3 + $0x250] sm:$0xff] %v6240_v13  ;;  %3423 = vmatpush.msrb.mxu1 %v2783_v11  ;;  %v1710_v55 = vadd.f32 %v7327_v8, %v7326_v37  ;;  %v2860_v37 = vld [vmem:[#allocation3 + $0x1a8] sm:$0xff] }
 0x352   : > { %v6252_v0 = vsel %vm2304_vm12, %v2272_v15, %v2337_v38  ;;  %v2195_v60 = vadd.f32 %v2194_v39, %v2082_v28  ;;  %v6254_v10 = vpop.f32.mrf.mxu1  ;;  %v7329_v8 = vld [vmem:[#allocation21_spill] sm:$0xff] }
 0x353   : > { %2403 = vst [vmem:[#allocation3 + $0x278] sm:$0xff] %v6252_v0  ;;  %v2479_v36 = vrot.slane %v6252_v0, 7 }
 0x354   : > { %v2240_v50 = vadd.f32 %v2195_v60, %v1707_v42  ;;  %3117 = vmatmul.f32.gmra.mxu2 %v5942_v32  ;;  %v2591_v42 = vrot.slane %v6252_v0, 1 }
 0x355   : > { %2547 = vst [vmem:[#allocation3 + $0x270] sm:$0xfe] %v2479_v36  ;;  %3043 = vmatmul.f32.gmra.mxu1 %v6237_v34  ;;  %v2203_v39 = vpop.f32.mrf.mxu0 }
 0x356   : > { %v2273_v59 = vadd.f32 %v6080_v47, %v2240_v50 }
 0x357   : > { %v1971_v15 = vpop.f32.mrf.mxu2  ;;  %3242 = vmatmul.f32.gmra.mxu3 %v6060_v46 }
 0x358   : > { %vm2305_vm13 = vcmp.ge.f32.partialorder %v2273_v59, 0.0  ;;  %v2338_v38 = vmul.f32 %v6083_v63, %v2273_v59  ;;  %v2085_v28 = vadd.f32 %v6175_v20, %v1971_v15  ;;  %3349 = vmatmul.f32.gmra.mxu0 %v5965_v35  ;;  %v6271_v50 = vpop.f32.mrf.mxu3 }
 0x35a   : > { %v6265_v60 = vsel %vm2305_vm13, %v2273_v59, %v2338_v38  ;;  %v2198_v32 = vadd.f32 %v2197_v33, %v2085_v28  ;;  %v6267_v3 = vpop.f32.mrf.mxu1 }
 0x35b   : > { %7328 = vst [vmem:[#allocation34_spill] sm:$0xff] %v6265_v60  ;;  %v2480_v20 = vrot.slane %v6265_v60, 7  ;;  %v2592_v11 = vrot.slane %v6265_v60, 1 }
 0x35c   : > { %2404 = vst [vmem:[#allocation3 + $0x290] sm:$0xff] %v6265_v60  ;;  %v2241_v15 = vadd.f32 %v2198_v32, %v1710_v55  ;;  %3120 = vmatmul.f32.gmra.mxu2 %v5956_v43  ;;  %v6278_v33 = vld [vmem:[#allocation3 + $0x270] sm:$0xff]  ;;  %v1713_v55 = vadd.f32 %v5954_v40, %v7329_v8  ;;  %v2782_v40 = vld [vmem:[#allocation9 + $0x88] sm:$0xff] }
 0x35d   : > { %v6281_v59 = vsel %vm531_vm0, %v2479_v36, %v2480_v20  ;;  %v6284_v35 = vsel %vm644_vm1, %v2591_v42, %v2592_v11  ;;  %2660 = vst [vmem:[#allocation3 + $0x298] sm:$0x7f] %v2592_v11  ;;  %3046 = vmatmul.f32.gmra.mxu1 %v6278_v33  ;;  %v2206_v28 = vpop.f32.mrf.mxu0 }
 0x35e   : > { %2548 = vst [vmem:[#allocation3 + $0x288] sm:$0xff] %v6281_v59  ;;  %v2274_v46 = vadd.f32 %v6080_v47, %v2241_v15  ;;  %3424 = vmatpush.msrb.mxu1 %v2782_v40 }
 0x35f   : > { %2659 = vst [vmem:[#allocation3 + $0x280] sm:$0xff] %v6284_v35  ;;  %v1974_v38 = vpop.f32.mrf.mxu2  ;;  %3245 = vmatmul.f32.gmra.mxu3 %v2860_v37 }
 0x360   : > { %vm2306_vm14 = vcmp.ge.f32.partialorder %v2274_v46, 0.0  ;;  %v2339_v43 = vmul.f32 %v6083_v63, %v2274_v46  ;;  %v2088_v36 = vadd.f32 %v6204_v52, %v1974_v38  ;;  %3352 = vmatmul.f32.gmra.mxu0 %v5968_v2 }
 0x361   : > { %v6301_v15 = vpop.f32.mrf.mxu3 }
 0x362   : > { %v6294_v32 = vsel %vm2306_vm14, %v2274_v46, %v2339_v43  ;;  %v2201_v42 = vadd.f32 %v2200_v5, %v2088_v36  ;;  %v6296_v20 = vpop.f32.mrf.mxu1  ;;  %v7330_v43 = vld [vmem:[#allocation22_spill] sm:$0xff] }
 0x363   : > { %2405 = vst [vmem:[#allocation3 + $0x2a8] sm:$0xff] %v6294_v32  ;;  %v2482_v11 = vrot.slane %v6294_v32, 7  ;;  %v1716_v36 = vadd.f32 %v5989_v49, %v7330_v43  ;;  %v7331_v43 = vld [vmem:[#allocation23_spill] sm:$0xff] }
 0x364   : > { %v2242_v60 = vadd.f32 %v2201_v42, %v1713_v55  ;;  %3123 = vmatmul.f32.gmra.mxu2 %v5983_v1 }
 0x365   : > { %2549 = vst [vmem:[#allocation3 + $0x2a0] sm:$0xfe] %v2482_v11  ;;  %3049 = vmatmul.f32.gmra.mxu1 %v6281_v59  ;;  %v2209_v46 = vpop.f32.mrf.mxu0 }
 0x366   : > { %v2275_v52 = vadd.f32 %v6080_v47, %v2242_v60  ;;  %v2594_v60 = vrot.slane %v6294_v32, 1 }
 0x367   : > { %v1977_v5 = vpop.f32.mrf.mxu2  ;;  %3248 = vmatmul.f32.gmra.mxu3 %v6108_v44 }
 0x368   : > { %vm2307_vm15 = vcmp.ge.f32.partialorder %v2275_v52, 0.0  ;;  %v2340_v2 = vmul.f32 %v6083_v63, %v2275_v52  ;;  %v2091_v38 = vadd.f32 %v6219_v26, %v1977_v5  ;;  %3355 = vmatmul.f32.gmra.mxu0 %v6009_v22  ;;  %v2781_v5 = vld [vmem:[#allocation9 + $0x80] sm:$0xff] }
 0x369   : > { %3425 = vmatpush.msrb.mxu1 %v2781_v5 }
 0x36a   : > { %v6310_v37 = vsel %vm2307_vm15, %v2275_v52, %v2340_v2  ;;  %v2204_v1 = vadd.f32 %v2203_v39, %v2091_v38  ;;  %v6312_v8 = vpop.f32.mrf.mxu1  ;;  %v6330_v44 = vpop.f32.mrf.mxu3  ;;  %v2866_v38 = vld [vmem:[#allocation3 + $0x1d8] sm:$0xff] }
 0x36b   : > { %2406 = vst [vmem:[#allocation3 + $0x2c0] sm:$0xff] %v6310_v37  ;;  %v2483_v55 = vrot.slane %v6310_v37, 7  ;;  %v2595_v26 = vrot.slane %v6310_v37, 1 }
 0x36c   : > { %v2243_v42 = vadd.f32 %v2204_v1, %v1716_v36  ;;  %3126 = vmatmul.f32.gmra.mxu2 %v6000_v29  ;;  %v6321_v49 = vld [vmem:[#allocation3 + $0x2a0] sm:$0xff]  ;;  %v1719_v36 = vadd.f32 %v6018_v58, %v7331_v43  ;;  %v3750_v58 = vld [vmem:[#allocation9 + $0x378] sm:$0xff] }
 0x36d   : > { %v6324_v39 = vsel %vm531_vm0, %v2482_v11, %v2483_v55  ;;  %v6327_v22 = vsel %vm644_vm1, %v2594_v60, %v2595_v26  ;;  %2662 = vst [vmem:[#allocation3 + $0x2c8] sm:$0x7f] %v2595_v26  ;;  %3052 = vmatmul.f32.gmra.mxu1 %v6321_v49  ;;  %v6335_v52 = vpop.f32.mrf.mxu0  ;;  %3783 = vmatpush.msra.mxu3 %v3750_v58  ;;  %v3766_v58 = vld [vmem:[#allocation9 + $0x3f8] sm:$0xff] }
 0x36e   : > { %2550 = vst [vmem:[#allocation3 + $0x2b8] sm:$0xff] %v6324_v39  ;;  %v2276_v40 = vadd.f32 %v6080_v47, %v2243_v42  ;;  %3896 = vmatpush.msra.mxu0 %v3766_v58 }
 0x36f   : > { %2661 = vst [vmem:[#allocation3 + $0x2b0] sm:$0xff] %v6327_v22  ;;  %v1980_v29 = vpop.f32.mrf.mxu2  ;;  %3251 = vmatmul.f32.gmra.mxu3 %v2866_v38 }
 0x370   : > { %vm2308_vm2 = vcmp.ge.f32.partialorder %v2276_v40, 0.0  ;;  %v2341_v11 = vmul.f32 %v6083_v63, %v2276_v40  ;;  %v2094_v2 = vadd.f32 %v6248_v25, %v1980_v29  ;;  %3358 = vmatmul.f32.gmra.mxu0 %v6012_v12 }
 0x372   : > { %v6341_v1 = vsel %vm2308_vm2, %v2276_v40, %v2341_v11  ;;  %v2207_v60 = vadd.f32 %v2206_v28, %v2094_v2  ;;  %v6343_v55 = vpop.f32.mrf.mxu1  ;;  %v6350_v25 = vpop.f32.mrf.mxu3  ;;  %v7332_v11 = vld [vmem:[#allocation24_spill] sm:$0xff] }
 0x373   : > { %2407 = vst [vmem:[#allocation3 + $0x2d8] sm:$0xff] %v6341_v1  ;;  %v2485_v26 = vrot.slane %v6341_v1, 7 }
 0x374   : > { %v2244_v42 = vadd.f32 %v2207_v60, %v1719_v36  ;;  %3129 = vmatmul.f32.gmra.mxu2 %v6029_v51  ;;  %v1722_v51 = vadd.f32 %v6037_v45, %v7332_v11  ;;  %v2812_v36 = vld [vmem:[#allocation9 + $0x178] sm:$0xff]  ;;  %v2597_v60 = vrot.slane %v6341_v1, 1 }
 0x375   : > { %2551 = vst [vmem:[#allocation3 + $0x2d0] sm:$0xfe] %v2485_v26  ;;  %3055 = vmatmul.f32.gmra.mxu1 %v6324_v39  ;;  %v6353_v29 = vpop.f32.mrf.mxu0  ;;  %3523 = vmatpush.msra.mxu2 %v2812_v36 }
 0x376   : > { %v2277_v28 = vadd.f32 %v6080_v47, %v2244_v42 }
 0x377   : > { %v1983_v40 = vpop.f32.mrf.mxu2  ;;  %3254 = vmatmul.f32.gmra.mxu3 %v6152_v4 }
 0x378   : > { %vm2309_vm3 = vcmp.ge.f32.partialorder %v2277_v28, 0.0  ;;  %v2342_v12 = vmul.f32 %v6083_v63, %v2277_v28  ;;  %v2097_v5 = vadd.f32 %v6271_v50, %v1983_v40  ;;  %3361 = vmatmul.f32.gmra.mxu0 %v6054_v7  ;;  %v3782_v40 = vld [vmem:[#allocation9 + $0x478] sm:$0xff] }
 0x379   : > { %4009 = vmatpush.msra.mxu1 %v3782_v40 }
 0x37a   : > { %v6359_v2 = vsel %vm2309_vm3, %v2277_v28, %v2342_v12  ;;  %v2210_v38 = vadd.f32 %v2209_v46, %v2097_v5  ;;  %v6361_v43 = vpop.f32.mrf.mxu1  ;;  %v6379_v28 = vpop.f32.mrf.mxu3 }
 0x37b   : > { %2408 = vst [vmem:[#allocation3 + $0x2f0] sm:$0xff] %v6359_v2  ;;  %v2486_v42 = vrot.slane %v6359_v2, 7  ;;  %v2598_v50 = vrot.slane %v6359_v2, 1 }
 0x37c   : > { %v2245_v45 = vadd.f32 %v2210_v38, %v1722_v51  ;;  %3132 = vmatmul.f32.gmra.mxu2 %v6045_v31  ;;  %v6370_v46 = vld [vmem:[#allocation3 + $0x2d0] sm:$0xff]  ;;  %v2872_v51 = vld [vmem:[#allocation3 + $0x208] sm:$0xff] }
 0x37d   : > { %v6373_v7 = vsel %vm531_vm0, %v2485_v26, %v2486_v42  ;;  %v6376_v4 = vsel %vm644_vm1, %v2597_v60, %v2598_v50  ;;  %2664 = vst [vmem:[#allocation3 + $0x2f8] sm:$0x7f] %v2598_v50  ;;  %3058 = vmatmul.f32.gmra.mxu1 %v6370_v46  ;;  %v3317_v26 = vpop.f32.mrf.mxu0  ;;  %v7333_v38 = vld [vmem:[#allocation25_spill] sm:$0xff] }
 0x37e   : > { %2552 = vst [vmem:[#allocation3 + $0x2e8] sm:$0xff] %v6373_v7  ;;  %v2278_v31 = vadd.f32 %v6080_v47, %v2245_v45  ;;  %v1725_v36 = vadd.f32 %v6072_v62, %v7333_v38 }
 0x37f   : > { %2663 = vst [vmem:[#allocation3 + $0x2e0] sm:$0xff] %v6376_v4  ;;  %v1986_v12 = vpop.f32.mrf.mxu2  ;;  %3257 = vmatmul.f32.gmra.mxu3 %v2872_v51  ;;  %v2811_v51 = vld [vmem:[#allocation9 + $0x170] sm:$0xff] }
 0x380   : > { %vm2310_vm4 = vcmp.ge.f32.partialorder %v2278_v31, 0.0  ;;  %v2343_v5 = vmul.f32 %v6083_v63, %v2278_v31  ;;  %v2100_v11 = vadd.f32 %v6301_v15, %v1986_v12  ;;  %3364 = vmatmul.f32.gmra.mxu0 %v6057_v48  ;;  %v3749_v15 = vld [vmem:[#allocation9 + $0x370] sm:$0xff]  ;;  %3524 = vmatpush.msra.mxu2 %v2811_v51 }
 0x381   : > { %3784 = vmatpush.msra.mxu3 %v3749_v15 }
 0x382   : > { %v6388_v60 = vsel %vm2310_vm4, %v2278_v31, %v2343_v5  ;;  %v2213_v42 = vadd.f32 %v6335_v52, %v2100_v11  ;;  %v6391_v50 = vpop.f32.mrf.mxu1  ;;  %v6398_v62 = vpop.f32.mrf.mxu3 }
 0x383   : > { %2409 = vst [vmem:[#allocation3 + $0x308] sm:$0xff] %v6388_v60  ;;  %v2488_v45 = vrot.slane %v6388_v60, 7 }
 0x384   : > { %v2246_v58 = vadd.f32 %v2213_v42, %v1725_v36  ;;  %3135 = vmatmul.f32.gmra.mxu2 %v6074_v61 }
 0x385   : > { %2553 = vst [vmem:[#allocation3 + $0x300] sm:$0xfe] %v2488_v45  ;;  %3061 = vmatmul.f32.gmra.mxu1 %v6373_v7  ;;  %v3320_v31 = vpop.f32.mrf.mxu0 }
 0x386   : > { %v2279_v52 = vadd.f32 %v6080_v47, %v2246_v58  ;;  %v2600_v47 = vrot.slane %v6388_v60, 1  ;;  %v3781_v58 = vld [vmem:[#allocation9 + $0x470] sm:$0xff] }
 0x387   : > { %v3088_v40 = vpop.f32.mrf.mxu2  ;;  %3260 = vmatmul.f32.gmra.mxu3 %v6196_v17  ;;  %4010 = vmatpush.msra.mxu1 %v3781_v58 }
 0x388   : > { %vm2311_vm5 = vcmp.ge.f32.partialorder %v2279_v52, 0.0  ;;  %v2344_v48 = vmul.f32 %v6083_v63, %v2279_v52  ;;  %v3089_v12 = vadd.f32 %v3088_v40, %v6093_v41  ;;  %3367 = vmatmul.f32.gmra.mxu0 %v6102_v24 }
 0x38a   : > { %v6403_v5 = vsel %vm2311_vm5, %v2279_v52, %v2344_v48  ;;  %v3202_v61 = vadd.f32 %v6330_v44, %v3089_v12  ;;  %v6406_v11 = vpop.f32.mrf.mxu1  ;;  %v3765_v44 = vld [vmem:[#allocation9 + $0x3f0] sm:$0xff]  ;;  %v3213_v42 = vpop.f32.mrf.mxu3 }
 0x38b   : > { %2410 = vst [vmem:[#allocation3 + $0x320] sm:$0xff] %v6403_v5  ;;  %v2489_v38 = vrot.slane %v6403_v5, 7  ;;  %v2601_v63 = vrot.slane %v6403_v5, 1  ;;  %3897 = vmatpush.msra.mxu0 %v3765_v44 }
 0x38c   : > { %3138 = vmatmul.f32.gmra.mxu2 %v6091_v54  ;;  %v2903_v41 = vld [vmem:[#allocation3 + $0x300] sm:$0xff]  ;;  %v6416_v36 = vadd.f32 %v6353_v29, %v3202_v61  ;;  %v2878_v29 = vld [vmem:[#allocation3 + $0x238] sm:$0xff]  ;;  %v3748_v61 = vld [vmem:[#allocation9 + $0x368] sm:$0xff] }
 0x38d   : > { %v2490_v24 = vsel %vm531_vm0, %v2488_v45, %v2489_v38  ;;  %v6420_v17 = vsel %vm644_vm1, %v2600_v47, %v2601_v63  ;;  %2666 = vst [vmem:[#allocation3 + $0x328] sm:$0x7f] %v2601_v63  ;;  %3064 = vmatmul.f32.gmra.mxu1 %v2903_v41  ;;  %v3323_v15 = vpop.f32.mrf.mxu0  ;;  %3785 = vmatpush.msra.mxu3 %v3748_v61  ;;  %v6440_v63 = vld [vmem:[#allocation2] sm:$0xff] }
 0x38e   : > { %2554 = vst [vmem:[#allocation3 + $0x318] sm:$0xff] %v2490_v24 }
 0x38f   : > { %2665 = vst [vmem:[#allocation3 + $0x310] sm:$0xff] %v6420_v17  ;;  %v3091_v54 = vpop.f32.mrf.mxu2  ;;  %3263 = vmatmul.f32.gmra.mxu3 %v2878_v29 }
 0x390   : > { %v3092_v52 = vadd.f32 %v3091_v54, %v6122_v53  ;;  %3370 = vmatmul.f32.gmra.mxu0 %v6105_v14  ;;  %v2810_v14 = vld [vmem:[#allocation9 + $0x168] sm:$0xff]  ;;  %v3747_v54 = vld [vmem:[#allocation9 + $0x360] sm:$0xff] }
 0x391   : > { %3525 = vmatpush.msra.mxu2 %v2810_v14  ;;  %3786 = vmatpush.msra.mxu3 %v3747_v54  ;;  %v7336_v54 = vld [vmem:[#allocation27_spill] sm:$0xff] }
 0x392   : > { %v3205_v40 = vadd.f32 %v6350_v25, %v3092_v52  ;;  %v6425_v45 = vpop.f32.mrf.mxu1  ;;  %v3216_v12 = vpop.f32.mrf.mxu3 }
 0x394   : > { %3141 = vmatmul.f32.gmra.mxu2 %v6120_v16  ;;  %v6429_v48 = vadd.f32 %v3317_v26, %v3205_v40  ;;  %v3764_v16 = vld [vmem:[#allocation9 + $0x3e8] sm:$0xff] }
 0x395   : > { %3067 = vmatmul.f32.gmra.mxu1 %v2490_v24  ;;  %v3326_v47 = vpop.f32.mrf.mxu0  ;;  %3898 = vmatpush.msra.mxu0 %v3764_v16 }
 0x397   : > { %v3094_v51 = vpop.f32.mrf.mxu2  ;;  %3266 = vmatmul.f32.gmra.mxu3 %v6240_v13  ;;  %v2884_v13 = vld [vmem:[#allocation3 + $0x268] sm:$0xff] }
 0x398   : > { %v3095_v53 = vadd.f32 %v3094_v51, %v6137_v21  ;;  %3373 = vmatmul.f32.gmra.mxu0 %v6146_v19 }
 0x39a   : > { %v3208_v38 = vadd.f32 %v6379_v28, %v3095_v53  ;;  %v6433_v25 = vpop.f32.mrf.mxu1  ;;  %v3219_v21 = vpop.f32.mrf.mxu3  ;;  %v3780_v28 = vld [vmem:[#allocation9 + $0x468] sm:$0xff]  ;;  %v3779_v53 = vld [vmem:[#allocation9 + $0x460] sm:$0xff] }
 0x39b   : > { %4011 = vmatpush.msra.mxu1 %v3780_v28  ;;  %v7335_v28 = vld [vmem:[#allocation26_spill] sm:$0xff] }
 0x39c   : > { %3144 = vmatmul.f32.gmra.mxu2 %v6135_v9  ;;  %v6438_v26 = vadd.f32 %v3320_v31, %v3208_v38  ;;  %v7334_v38 = vld [vmem:[#allocation28_spill] sm:$0xff] }
 0x39d   : > { %3426 = vmatmul.f32.vlgmr.msrb.gmra.mxu1 %v6440_v63  ;;  %v3329_v44 = vpop.f32.mrf.mxu0 }
 0x39e   : > { %4012 = vmatpush.msra.mxu1 %v3779_v53 }
 0x39f   : > { %v3097_v41 = vpop.f32.mrf.mxu2  ;;  %3269 = vmatmul.f32.gmra.mxu3 %v2884_v13 }
 0x3a0   : > { %v3098_v19 = vadd.f32 %v3097_v41, %v6166_v23  ;;  %3376 = vmatmul.f32.gmra.mxu0 %v6149_v6  ;;  %v2809_v6 = vld [vmem:[#allocation9 + $0x160] sm:$0xff] }
 0x3a1   : > { %3526 = vmatpush.msra.mxu2 %v2809_v6  ;;  %v2808_v6 = vld [vmem:[#allocation9 + $0x158] sm:$0xff] }
 0x3a2   : > { %v3211_v24 = vadd.f32 %v6398_v62, %v3098_v19  ;;  %v6445_v58 = vpop.f32.mrf.mxu1  ;;  %v3222_v31 = vpop.f32.mrf.mxu3  ;;  %v3746_v19 = vld [vmem:[#allocation9 + $0x358] sm:$0xff] }
 0x3a3   : > { %3787 = vmatpush.msra.mxu3 %v3746_v19  ;;  %3527 = vmatpush.msra.mxu2 %v2808_v6  ;;  %v3745_v19 = vld [vmem:[#allocation9 + $0x350] sm:$0xff] }
 0x3a4   : > { %3147 = vmatmul.f32.gmra.mxu2 %v6164_v57  ;;  %v6449_v9 = vadd.f32 %v3323_v15, %v3211_v24  ;;  %v2676_v57 = vld [vmem:[#allocation3 + $0x38] sm:$0xff]  ;;  %v3763_v15 = vld [vmem:[#allocation9 + $0x3e0] sm:$0xff] }
 0x3a5   : > { %3429 = vmatmul.f32.gmra.mxu1 %v6440_v63  ;;  %v3332_v29 = vpop.f32.mrf.mxu0  ;;  %3899 = vmatpush.msra.mxu0 %v3763_v15 }
 0x3a6   : > { %3788 = vmatpush.msra.mxu3 %v3745_v19  ;;  %v3759_v19 = vld [vmem:[#allocation9 + $0x3c0] sm:$0xff] }
 0x3a7   : > { %v3100_v52 = vpop.f32.mrf.mxu2  ;;  %3272 = vmatmul.f32.gmra.mxu3 %v6284_v35 }
 0x3a8   : > { %v3101_v23 = vadd.f32 %v3100_v52, %v6181_v30  ;;  %3379 = vmatmul.f32.gmra.mxu0 %v6190_v56  ;;  %v2890_v56 = vld [vmem:[#allocation3 + $0x298] sm:$0xff] }
 0x3aa   : > { %v3214_v40 = vadd.f32 %v3213_v42, %v3101_v23  ;;  %v6453_v62 = vpop.f32.mrf.mxu1  ;;  %v3225_v51 = vpop.f32.mrf.mxu3 }
 0x3ac   : > { %3150 = vmatmul.f32.gmra.mxu2 %v6179_v27  ;;  %v6458_v61 = vadd.f32 %v3326_v47, %v3214_v40  ;;  %v2679_v27 = vld [vmem:[#allocation3 + $0x50] sm:$0xff]  ;;  %v7337_v40 = vld [vmem:[#allocation29_spill] sm:$0xff] }
 0x3ad   : > { %3432 = vmatmul.f32.gmra.mxu1 %v2676_v57  ;;  %v3335_v42 = vpop.f32.mrf.mxu0  ;;  %v3762_v57 = vld [vmem:[#allocation9 + $0x3d8] sm:$0xff] }
 0x3ae   : > { %3900 = vmatpush.msra.mxu0 %v3762_v57 }
 0x3af   : > { %v3103_v30 = vpop.f32.mrf.mxu2  ;;  %3275 = vmatmul.f32.gmra.mxu3 %v2890_v56 }
 0x3b0   : > { %v3104_v14 = vadd.f32 %v3103_v30, %v7334_v38  ;;  %3382 = vmatmul.f32.gmra.mxu0 %v7335_v28 }
 0x3b2   : > { %v3217_v16 = vadd.f32 %v3216_v12, %v3104_v14  ;;  %v6461_v35 = vpop.f32.mrf.mxu1  ;;  %v3228_v41 = vpop.f32.mrf.mxu3  ;;  %v2896_v14 = vld [vmem:[#allocation3 + $0x2c8] sm:$0xff] }
 0x3b4   : > { %3153 = vmatmul.f32.gmra.mxu2 %v6208_v18  ;;  %v6465_v47 = vadd.f32 %v3329_v44, %v3217_v16  ;;  %v7338_v18 = vld [vmem:[#allocation31_spill] sm:$0xff]  ;;  %v6473_v44 = vld [vmem:[#allocation3 + $0x68] sm:$0xff] }
 0x3b5   : > { %3435 = vmatmul.f32.gmra.mxu1 %v2679_v27  ;;  %v3338_v24 = vpop.f32.mrf.mxu0 }
 0x3b7   : > { %v3106_v13 = vpop.f32.mrf.mxu2  ;;  %3278 = vmatmul.f32.gmra.mxu3 %v6327_v22 }
 0x3b8   : > { %v3107_v52 = vadd.f32 %v3106_v13, %v7336_v54  ;;  %3385 = vmatmul.f32.gmra.mxu0 %v7337_v40 }
 0x3ba   : > { %v3220_v23 = vadd.f32 %v3219_v21, %v3107_v52  ;;  %v6468_v12 = vpop.f32.mrf.mxu1  ;;  %v6478_v53 = vpop.f32.mrf.mxu3  ;;  %v3778_v21 = vld [vmem:[#allocation9 + $0x458] sm:$0xff] }
 0x3bb   : > { %4013 = vmatpush.msra.mxu1 %v3778_v21  ;;  %v6500_v52 = vld [vmem:[#allocation3 + $0x98] sm:$0xff] }
 0x3bc   : > { %3156 = vmatmul.f32.gmra.mxu2 %v7338_v18  ;;  %v6475_v15 = vadd.f32 %v3332_v29, %v3220_v23  ;;  %v6485_v29 = vld [vmem:[#allocation3 + $0x80] sm:$0xff]  ;;  %v3761_v23 = vld [vmem:[#allocation9 + $0x3d0] sm:$0xff]  ;;  %v2902_v18 = vld [vmem:[#allocation3 + $0x2f8] sm:$0xff] }
 0x3bd   : > { %3438 = vmatmul.f32.gmra.mxu1 %v6473_v44  ;;  %v3341_v38 = vpop.f32.mrf.mxu0  ;;  %3901 = vmatpush.msra.mxu0 %v3761_v23  ;;  %v2803_v23 = vld [vmem:[#allocation9 + $0x130] sm:$0xff] }
 0x3bf   : > { %v3109_v30 = vpop.f32.mrf.mxu2  ;;  %3281 = vmatmul.f32.gmra.mxu3 %v2896_v14  ;;  %v2805_v14 = vld [vmem:[#allocation9 + $0x140] sm:$0xff] }
 0x3c0   : > { %v3110_v22 = vadd.f32 %v3109_v30, %v6254_v10  ;;  %3388 = vmatmul.f32.gmra.mxu0 %v6237_v34  ;;  %v3744_v30 = vld [vmem:[#allocation9 + $0x348] sm:$0xff] }
 0x3c1   : > { %3789 = vmatpush.msra.mxu3 %v3744_v30  ;;  %v2801_v30 = vld [vmem:[#allocation9 + $0x120] sm:$0xff] }
 0x3c2   : > { %v3223_v56 = vadd.f32 %v3222_v31, %v3110_v22  ;;  %v6481_v16 = vpop.f32.mrf.mxu1  ;;  %v6490_v27 = vpop.f32.mrf.mxu3  ;;  %v3760_v22 = vld [vmem:[#allocation9 + $0x3c8] sm:$0xff] }
 0x3c3   : > { %3902 = vmatpush.msra.mxu0 %v3760_v22 }
 0x3c4   : > { %3159 = vmatmul.f32.gmra.mxu2 %v6252_v0  ;;  %v6487_v28 = vadd.f32 %v3335_v42, %v3223_v56  ;;  %v2807_v0 = vld [vmem:[#allocation9 + $0x150] sm:$0xff]  ;;  %v3743_v56 = vld [vmem:[#allocation9 + $0x340] sm:$0xff] }
 0x3c5   : > { %3441 = vmatmul.f32.gmra.mxu1 %v6485_v29  ;;  %v6492_v13 = vpop.f32.mrf.mxu0  ;;  %3528 = vmatpush.msra.mxu2 %v2807_v0  ;;  %v7339_v42 = vld [vmem:[#allocation34_spill] sm:$0xff] }
 0x3c6   : > { %3790 = vmatpush.msra.mxu3 %v3743_v56  ;;  %3903 = vmatpush.msra.mxu0 %v3759_v19  ;;  %v2800_v56 = vld [vmem:[#allocation9 + $0x118] sm:$0xff] }
 0x3c7   : > { %v3112_v10 = vpop.f32.mrf.mxu2  ;;  %3284 = vmatmul.f32.gmra.mxu3 %v6376_v4 }
 0x3c8   : > { %v3113_v31 = vadd.f32 %v3112_v10, %v6267_v3  ;;  %3391 = vmatmul.f32.gmra.mxu0 %v6278_v33  ;;  %v3777_v3 = vld [vmem:[#allocation9 + $0x450] sm:$0xff] }
 0x3c9   : > { %4014 = vmatpush.msra.mxu1 %v3777_v3  ;;  %v6514_v10 = vld [vmem:[#allocation3 + $0xb0] sm:$0xff] }
 0x3ca   : > { %v3226_v54 = vadd.f32 %v3225_v51, %v3113_v31  ;;  %v6495_v34 = vpop.f32.mrf.mxu1  ;;  %v6505_v6 = vpop.f32.mrf.mxu3  ;;  %v3742_v31 = vld [vmem:[#allocation9 + $0x338] sm:$0xff]  ;;  %v3757_v3 = vld [vmem:[#allocation9 + $0x3b0] sm:$0xff] }
 0x3cb   : > { %3791 = vmatpush.msra.mxu3 %v3742_v31  ;;  %v3754_v31 = vld [vmem:[#allocation9 + $0x398] sm:$0xff] }
 0x3cc   : > { %3162 = vmatmul.f32.gmra.mxu2 %v7339_v42  ;;  %v6502_v40 = vadd.f32 %v3338_v24, %v3226_v54  ;;  %v2806_v24 = vld [vmem:[#allocation9 + $0x148] sm:$0xff]  ;;  %v3758_v54 = vld [vmem:[#allocation9 + $0x3b8] sm:$0xff] }
 0x3cd   : > { %3444 = vmatmul.f32.gmra.mxu1 %v6500_v52  ;;  %v6507_v33 = vpop.f32.mrf.mxu0  ;;  %3529 = vmatpush.msra.mxu2 %v2806_v24  ;;  %v3756_v24 = vld [vmem:[#allocation9 + $0x3a8] sm:$0xff] }
 0x3ce   : > { %3904 = vmatpush.msra.mxu0 %v3758_v54  ;;  %v2908_v54 = vld [vmem:[#allocation3 + $0x328] sm:$0xff] }
 0x3cf   : > { %v3115_v51 = vpop.f32.mrf.mxu2  ;;  %3287 = vmatmul.f32.gmra.mxu3 %v2902_v18  ;;  %3530 = vmatpush.msra.mxu2 %v2805_v14  ;;  %v2802_v18 = vld [vmem:[#allocation9 + $0x128] sm:$0xff] }
 0x3d0   : > { %v3116_v4 = vadd.f32 %v3115_v51, %v6296_v20  ;;  %3394 = vmatmul.f32.gmra.mxu0 %v6281_v59  ;;  %v2804_v20 = vld [vmem:[#allocation9 + $0x138] sm:$0xff]  ;;  %v3776_v14 = vld [vmem:[#allocation9 + $0x448] sm:$0xff] }
 0x3d1   : > { %3531 = vmatpush.msra.mxu2 %v2804_v20  ;;  %3905 = vmatpush.msra.mxu0 %v3757_v3  ;;  %v3753_v3 = vld [vmem:[#allocation9 + $0x390] sm:$0xff] }
 0x3d2   : > { %v3229_v57 = vadd.f32 %v3228_v41, %v3116_v4  ;;  %v6510_v21 = vpop.f32.mrf.mxu1  ;;  %v6519_v59 = vpop.f32.mrf.mxu3  ;;  %4015 = vmatpush.msra.mxu1 %v3776_v14  ;;  %v3751_v14 = vld [vmem:[#allocation9 + $0x380] sm:$0xff] }
 0x3d3   : > { %3532 = vmatpush.msra.mxu2 %v2803_v23  ;;  %3906 = vmatpush.msra.mxu0 %v3756_v24  ;;  %v2799_v23 = vld [vmem:[#allocation9 + $0x110] sm:$0xff]  ;;  %v2797_v24 = vld [vmem:[#allocation9 + $0x100] sm:$0xff] }
 0x3d4   : > { %3165 = vmatmul.f32.gmra.mxu2 %v6294_v32  ;;  %v6516_v41 = vadd.f32 %v3341_v38, %v3229_v57  ;;  %v3741_v38 = vld [vmem:[#allocation9 + $0x330] sm:$0xff]  ;;  %v3740_v57 = vld [vmem:[#allocation9 + $0x328] sm:$0xff] }
 0x3d5   : > { %3447 = vmatmul.f32.gmra.mxu1 %v6514_v10  ;;  %v6521_v42 = vpop.f32.mrf.mxu0  ;;  %3792 = vmatpush.msra.mxu3 %v3741_v38  ;;  %v3737_v38 = vld [vmem:[#allocation9 + $0x310] sm:$0xff] }
 0x3d6   : > { %3533 = vmatpush.msra.mxu2 %v2802_v18 }
 0x3d7   : > { %v3118_v0 = vpop.f32.mrf.mxu2  ;;  %3290 = vmatmul.f32.gmra.mxu3 %v6420_v17  ;;  %v3755_v17 = vld [vmem:[#allocation9 + $0x3a0] sm:$0xff] }
 0x3d8   : > { %v3119_v32 = vadd.f32 %v3118_v0, %v6312_v8  ;;  %3397 = vmatmul.f32.gmra.mxu0 %v6321_v49  ;;  %v6530_v8 = vld [vmem:[#allocation3 + $0xc8] sm:$0xff]  ;;  %v3739_v49 = vld [vmem:[#allocation9 + $0x320] sm:$0xff]  ;;  %3793 = vmatpush.msra.mxu3 %v3740_v57 }
 0x3d9   : > { %3534 = vmatpush.msra.mxu2 %v2801_v30  ;;  %3907 = vmatpush.msra.mxu0 %v3755_v17  ;;  %v3736_v57 = vld [vmem:[#allocation9 + $0x308] sm:$0xff]  ;;  %v3735_v17 = vld [vmem:[#allocation9 + $0x300] sm:$0xff] }
 0x3da   : > { %v3232_v51 = vadd.f32 %v6478_v53, %v3119_v32  ;;  %v6525_v4 = vpop.f32.mrf.mxu1  ;;  %v6536_v53 = vpop.f32.mrf.mxu3  ;;  %3794 = vmatpush.msra.mxu3 %v3739_v49 }
 0x3db   : > { %3535 = vmatpush.msra.mxu2 %v2800_v56  ;;  %3908 = vmatpush.msra.mxu0 %v3754_v31  ;;  %v3775_v31 = vld [vmem:[#allocation9 + $0x440] sm:$0xff] }
 0x3dc   : > { %3168 = vmatmul.f32.gmra.mxu2 %v6310_v37  ;;  %v6533_v22 = vadd.f32 %v6492_v13, %v3232_v51  ;;  %v3738_v13 = vld [vmem:[#allocation9 + $0x318] sm:$0xff]  ;;  %v2798_v51 = vld [vmem:[#allocation9 + $0x108] sm:$0xff]  ;;  %4016 = vmatpush.msra.mxu1 %v3775_v31 }
 0x3dd   : > { %3450 = vmatmul.f32.gmra.mxu1 %v6530_v8  ;;  %v6538_v20 = vpop.f32.mrf.mxu0  ;;  %3795 = vmatpush.msra.mxu3 %v3738_v13 }
 0x3de   : > { %3536 = vmatpush.msra.mxu2 %v2799_v23  ;;  %3909 = vmatpush.msra.mxu0 %v3753_v3 }
 0x3df   : > { %v3121_v19 = vpop.f32.mrf.mxu2  ;;  %3293 = vmatmul.f32.gmra.mxu3 %v2908_v54 }
 0x3e0   : > { %v3122_v37 = vadd.f32 %v3121_v19, %v6343_v55  ;;  %3400 = vmatmul.f32.gmra.mxu0 %v6324_v39  ;;  %v6546_v55 = vld [vmem:[#allocation3 + $0xe0] sm:$0xff]  ;;  %v3752_v39 = vld [vmem:[#allocation9 + $0x388] sm:$0xff]  ;;  %3796 = vmatpush.msra.mxu3 %v3737_v38 }
 0x3e1   : > { %3537 = vmatpush.msra.mxu2 %v2798_v51  ;;  %3910 = vmatpush.msra.mxu0 %v3752_v39  ;;  %v3638_v19 = vld [vmem:[#allocation3 + $0x60] sm:$0xff] }
 0x3e2   : > { %v3235_v0 = vadd.f32 %v6490_v27, %v3122_v37  ;;  %v6542_v32 = vpop.f32.mrf.mxu1  ;;  %v3246_v27 = vpop.f32.mrf.mxu3  ;;  %3797 = vmatpush.msra.mxu3 %v3736_v57  ;;  %v6558_v37 = vld [vmem:[#allocation3 + $0xf8] sm:$0xff] }
 0x3e3   : > { %3538 = vmatpush.msra.mxu2 %v2797_v24  ;;  %3911 = vmatpush.msra.mxu0 %v3751_v14  ;;  %v3774_v24 = vld [vmem:[#allocation9 + $0x438] sm:$0xff] }
 0x3e4   : > { %3171 = vmatmul.f32.gmra.mxu2 %v6341_v1  ;;  %v6549_v18 = vadd.f32 %v6507_v33, %v3235_v0  ;;  %3798 = vmatpush.msra.mxu3 %v3735_v17 }
 0x3e5   : > { %3453 = vmatmul.f32.gmra.mxu1 %v6546_v55  ;;  %v3356_v49 = vpop.f32.mrf.mxu0 }
 0x3e6   : > { %4017 = vmatpush.msra.mxu1 %v3774_v24 }
 0x3e7   : > { %v3124_v30 = vpop.f32.mrf.mxu2  ;;  %3799 = vmatmul.f32.vlgmr.msra.gmra.mxu3 %v3638_v19 }
 0x3e8   : > { %v3125_v1 = vadd.f32 %v3124_v30, %v6361_v43  ;;  %3403 = vmatmul.f32.gmra.mxu0 %v6370_v46 }
 0x3ea   : > { %v3238_v33 = vadd.f32 %v6505_v6, %v3125_v1  ;;  %v6554_v56 = vpop.f32.mrf.mxu1  ;;  %v3249_v13 = vpop.f32.mrf.mxu3 }
 0x3ec   : > { %3174 = vmatmul.f32.gmra.mxu2 %v6359_v2  ;;  %v6561_v43 = vadd.f32 %v6521_v42, %v3238_v33  ;;  %v3641_v2 = vld [vmem:[#allocation3 + $0x78] sm:$0xff]  ;;  %v6570_v42 = vld [vmem:[#allocation3 + $0x110] sm:$0xff] }
 0x3ed   : > { %3456 = vmatmul.f32.gmra.mxu1 %v6558_v37  ;;  %v3359_v54 = vpop.f32.mrf.mxu0 }
 0x3ef   : > { %v3127_v6 = vpop.f32.mrf.mxu2  ;;  %3802 = vmatmul.f32.gmra.mxu3 %v3641_v2 }
 0x3f0   : > { %v3128_v46 = vadd.f32 %v3127_v6, %v6391_v50  ;;  %3406 = vmatmul.f32.gmra.mxu0 %v6373_v7  ;;  %v3644_v7 = vld [vmem:[#allocation3 + $0x90] sm:$0xff] }
 0x3f2   : > { %v3241_v0 = vadd.f32 %v6519_v59, %v3128_v46  ;;  %v6566_v23 = vpop.f32.mrf.mxu1  ;;  %v3252_v3 = vpop.f32.mrf.mxu3  ;;  %v6602_v46 = vld [vmem:[#allocation3 + $0x158] sm:$0xff] }
 0x3f4   : > { %3177 = vmatmul.f32.gmra.mxu2 %v6388_v60  ;;  %v6573_v38 = vadd.f32 %v6538_v20, %v3241_v0  ;;  %v6582_v60 = vld [vmem:[#allocation3 + $0x128] sm:$0xff]  ;;  %v3773_v0 = vld [vmem:[#allocation9 + $0x430] sm:$0xff] }
 0x3f5   : > { %3459 = vmatmul.f32.gmra.mxu1 %v6570_v42  ;;  %v3362_v50 = vpop.f32.mrf.mxu0 }
 0x3f6   : > { %4018 = vmatpush.msra.mxu1 %v3773_v0 }
 0x3f7   : > { %v3130_v51 = vpop.f32.mrf.mxu2  ;;  %3805 = vmatmul.f32.gmra.mxu3 %v3644_v7 }
 0x3f8   : > { %v3131_v59 = vadd.f32 %v3130_v51, %v6406_v11  ;;  %3912 = vmatmul.f32.vlgmr.msra.gmra.mxu0 %v6473_v44  ;;  %v3647_v44 = vld [vmem:[#allocation3 + $0xa8] sm:$0xff] }
 0x3fa   : > { %v3244_v57 = vadd.f32 %v6536_v53, %v3131_v59  ;;  %v6578_v39 = vpop.f32.mrf.mxu1  ;;  %v3255_v30 = vpop.f32.mrf.mxu3 }
 0x3fc   : > { %3180 = vmatmul.f32.gmra.mxu2 %v6403_v5  ;;  %v6584_v20 = vadd.f32 %v3356_v49, %v3244_v57  ;;  %v6592_v5 = vld [vmem:[#allocation3 + $0x140] sm:$0xff] }
 0x3fd   : > { %3462 = vmatmul.f32.gmra.mxu1 %v6582_v60  ;;  %v3365_v17 = vpop.f32.mrf.mxu0  ;;  %v2677_v57 = vld [vmem:[#allocation3 + $0x40] sm:$0xff] }
 0x3ff   : > { %v3133_v11 = vpop.f32.mrf.mxu2  ;;  %3808 = vmatmul.f32.gmra.mxu3 %v3647_v44  ;;  %v6620_v44 = vld [vmem:[#allocation3 + $0x188] sm:$0xff] }
 0x400   : > { %v3134_v53 = vadd.f32 %v3133_v11, %v6425_v45  ;;  %3915 = vmatmul.f32.gmra.mxu0 %v6485_v29  ;;  %v3650_v29 = vld [vmem:[#allocation3 + $0xc0] sm:$0xff] }
 0x402   : > { %v3247_v1 = vadd.f32 %v3246_v27, %v3134_v53  ;;  %v6588_v14 = vpop.f32.mrf.mxu1  ;;  %v3258_v45 = vpop.f32.mrf.mxu3 }
 0x404   : > { %3539 = vmatmul.f32.vlgmr.msra.gmra.mxu2 %v6440_v63  ;;  %v6594_v49 = vadd.f32 %v3359_v54, %v3247_v1  ;;  %v2680_v1 = vld [vmem:[#allocation3 + $0x58] sm:$0xff] }
 0x405   : > { %3465 = vmatmul.f32.gmra.mxu1 %v6592_v5  ;;  %v3368_v19 = vpop.f32.mrf.mxu0 }
 0x407   : > { %v3136_v33 = vpop.f32.mrf.mxu2  ;;  %3811 = vmatmul.f32.gmra.mxu3 %v3650_v29 }
 0x408   : > { %v3137_v31 = vadd.f32 %v3136_v33, %v6433_v25  ;;  %3918 = vmatmul.f32.gmra.mxu0 %v6500_v52  ;;  %v3653_v52 = vld [vmem:[#allocation3 + $0xd8] sm:$0xff] }
 0x40a   : > { %v3250_v27 = vadd.f32 %v3249_v13, %v3137_v31  ;;  %v6598_v6 = vpop.f32.mrf.mxu1  ;;  %v3772_v31 = vld [vmem:[#allocation9 + $0x428] sm:$0xff] }
 0x40b   : > { %4019 = vmatpush.msra.mxu1 %v3772_v31 }
 0x40c   : > { %3542 = vmatmul.f32.gmra.mxu2 %v6440_v63  ;;  %v6604_v54 = vadd.f32 %v3362_v50, %v3250_v27  ;;  %v3261_v63 = vpop.f32.mrf.mxu3  ;;  %v6611_v50 = vld [vmem:[#allocation3 + $0x170] sm:$0xff] }
 0x40d   : > { %3468 = vmatmul.f32.gmra.mxu1 %v6602_v46  ;;  %v3371_v25 = vpop.f32.mrf.mxu0 }
 0x40f   : > { %v3139_v2 = vpop.f32.mrf.mxu2  ;;  %3814 = vmatmul.f32.gmra.mxu3 %v3653_v52 }
 0x410   : > { %v3140_v13 = vadd.f32 %v3139_v2, %v6445_v58  ;;  %3921 = vmatmul.f32.gmra.mxu0 %v6514_v10  ;;  %v3656_v10 = vld [vmem:[#allocation3 + $0xf0] sm:$0xff] }
 0x411   : > { %v6629_v2 = vld [vmem:[#allocation3 + $0x70] sm:$0xff] }
 0x412   : > { %v3253_v51 = vadd.f32 %v3252_v3, %v3140_v13  ;;  %v6608_v59 = vpop.f32.mrf.mxu1 }
 0x414   : > { %3545 = vmatmul.f32.gmra.mxu2 %v2677_v57  ;;  %v6613_v7 = vadd.f32 %v3365_v17, %v3253_v51  ;;  %v3264_v17 = vpop.f32.mrf.mxu3 }
 0x415   : > { %3471 = vmatmul.f32.gmra.mxu1 %v6611_v50  ;;  %v3374_v11 = vpop.f32.mrf.mxu0 }
 0x416   : > { %7340 = vst [vmem:[#allocation32_spill] sm:$0xff] %v6613_v7 }
 0x417   : > { %v3142_v24 = vpop.f32.mrf.mxu2  ;;  %3817 = vmatmul.f32.gmra.mxu3 %v3656_v10  ;;  %v3771_v10 = vld [vmem:[#allocation9 + $0x420] sm:$0xff] }
 0x418   : > { %v3143_v58 = vadd.f32 %v3142_v24, %v6453_v62  ;;  %3924 = vmatmul.f32.gmra.mxu0 %v6530_v8  ;;  %v3659_v8 = vld [vmem:[#allocation3 + $0x108] sm:$0xff]  ;;  %4020 = vmatpush.msra.mxu1 %v3771_v10 }
 0x419   : > { %v6668_v10 = vld [vmem:[#allocation3 + $0x1e8] sm:$0xff] }
 0x41a   : > { %v3256_v3 = vadd.f32 %v3255_v30, %v3143_v58  ;;  %v6617_v53 = vpop.f32.mrf.mxu1  ;;  %v6641_v58 = vld [vmem:[#allocation3 + $0x88] sm:$0xff] }
 0x41c   : > { %3548 = vmatmul.f32.gmra.mxu2 %v2680_v1  ;;  %v6622_v33 = vadd.f32 %v3368_v19, %v3256_v3  ;;  %v6632_v19 = vld [vmem:[#allocation3 + $0x1a0] sm:$0xff]  ;;  %v3267_v52 = vpop.f32.mrf.mxu3 }
 0x41d   : > { %3474 = vmatmul.f32.gmra.mxu1 %v6620_v44  ;;  %v3377_v62 = vpop.f32.mrf.mxu0 }
 0x41e   : > { %7341 = vst [vmem:[#allocation17_spill] sm:$0xff] %v6622_v33 }
 0x41f   : > { %v3145_v27 = vpop.f32.mrf.mxu2  ;;  %3820 = vmatmul.f32.gmra.mxu3 %v3659_v8 }
 0x420   : > { %v3146_v30 = vadd.f32 %v3145_v27, %v6461_v35  ;;  %3927 = vmatmul.f32.gmra.mxu0 %v6546_v55  ;;  %v3662_v55 = vld [vmem:[#allocation3 + $0x120] sm:$0xff]  ;;  %v3665_v27 = vld [vmem:[#allocation3 + $0x138] sm:$0xff] }
 0x422   : > { %v3259_v29 = vadd.f32 %v3258_v45, %v3146_v30  ;;  %v6626_v0 = vpop.f32.mrf.mxu1  ;;  %v6653_v30 = vld [vmem:[#allocation3 + $0xa0] sm:$0xff] }
 0x424   : > { %3551 = vmatmul.f32.gmra.mxu2 %v6629_v2  ;;  %v6634_v13 = vadd.f32 %v3371_v25, %v3259_v29  ;;  %v6644_v25 = vld [vmem:[#allocation3 + $0x1b8] sm:$0xff]  ;;  %v3270_v1 = vpop.f32.mrf.mxu3 }
 0x425   : > { %3477 = vmatmul.f32.gmra.mxu1 %v6632_v19  ;;  %v3380_v45 = vpop.f32.mrf.mxu0 }
 0x426   : > { %7342 = vst [vmem:[#allocation30_spill] sm:$0xff] %v6634_v13 }
 0x427   : > { %v3148_v51 = vpop.f32.mrf.mxu2  ;;  %3823 = vmatmul.f32.gmra.mxu3 %v3662_v55 }
 0x428   : > { %v3149_v35 = vadd.f32 %v3148_v51, %v6468_v12  ;;  %3930 = vmatmul.f32.gmra.mxu0 %v6558_v37 }
 0x42a   : > { %v3262_v57 = vadd.f32 %v3261_v63, %v3149_v35  ;;  %v6638_v24 = vpop.f32.mrf.mxu1 }
 0x42c   : > { %3554 = vmatmul.f32.gmra.mxu2 %v6641_v58  ;;  %v6646_v3 = vadd.f32 %v3374_v11, %v3262_v57  ;;  %v6656_v11 = vld [vmem:[#allocation3 + $0x1d0] sm:$0xff]  ;;  %v6665_v57 = vld [vmem:[#allocation3 + $0xb8] sm:$0xff]  ;;  %v3273_v55 = vpop.f32.mrf.mxu3 }
 0x42d   : > { %3480 = vmatmul.f32.gmra.mxu1 %v6644_v25  ;;  %v3383_v29 = vpop.f32.mrf.mxu0 }
 0x42e   : > { %7343 = vst [vmem:[#allocation18_spill] sm:$0xff] %v6646_v3  ;;  %v6749_v3 = vld [vmem:[#allocation3 + $0x160] sm:$0xff] }
 0x42f   : > { %v3151_v12 = vpop.f32.mrf.mxu2  ;;  %3826 = vmatmul.f32.gmra.mxu3 %v3665_v27  ;;  %v3671_v27 = vld [vmem:[#allocation3 + $0x168] sm:$0xff] }
 0x430   : > { %v3152_v63 = vadd.f32 %v3151_v12, %v6481_v16  ;;  %3933 = vmatmul.f32.gmra.mxu0 %v6570_v42  ;;  %v3668_v42 = vld [vmem:[#allocation3 + $0x150] sm:$0xff] }
 0x432   : > { %v3265_v31 = vadd.f32 %v3264_v17, %v3152_v63  ;;  %v6650_v37 = vpop.f32.mrf.mxu1 }
 0x434   : > { %3557 = vmatmul.f32.gmra.mxu2 %v6653_v30  ;;  %v6658_v8 = vadd.f32 %v3377_v62, %v3265_v31 }
 0x435   : > { %3483 = vmatmul.f32.gmra.mxu1 %v6656_v11  ;;  %v3386_v12 = vpop.f32.mrf.mxu0 }
 0x436   : > { %7344 = vst [vmem:[#allocation33_spill] sm:$0xff] %v6658_v8 }
 0x437   : > { %v3154_v16 = vpop.f32.mrf.mxu2  ;;  %3829 = vmatmul.f32.gmra.mxu3 %v3668_v42 }
 0x438   : > { %v3155_v17 = vadd.f32 %v3154_v16, %v6495_v34  ;;  %3936 = vmatmul.f32.gmra.mxu0 %v6582_v60  ;;  %v3770_v34 = vld [vmem:[#allocation9 + $0x418] sm:$0xff]  ;;  %v6677_v16 = vld [vmem:[#allocation3 + $0xd0] sm:$0xff] }
 0x439   : > { %4021 = vmatpush.msra.mxu1 %v3770_v34 }
 0x43a   : > { %v3268_v51 = vadd.f32 %v3267_v52, %v3155_v17  ;;  %v6662_v35 = vpop.f32.mrf.mxu1 }
 0x43c   : > { %3560 = vmatmul.f32.gmra.mxu2 %v6665_v57  ;;  %v6670_v62 = vadd.f32 %v3380_v45, %v3268_v51  ;;  %v6680_v45 = vld [vmem:[#allocation3 + $0x200] sm:$0xff]  ;;  %v3276_v51 = vpop.f32.mrf.mxu3 }
 0x43d   : > { %3486 = vmatmul.f32.gmra.mxu1 %v6668_v10 }
 0x43e   : > { %7345 = vst [vmem:[#allocation37_spill] sm:$0xff] %v6670_v62  ;;  %v6701_v62 = vld [vmem:[#allocation3 + $0x100] sm:$0xff] }
 0x43f   : > { %v3157_v52 = vpop.f32.mrf.mxu2  ;;  %3832 = vmatmul.f32.gmra.mxu3 %v3671_v27  ;;  %v3769_v27 = vld [vmem:[#allocation9 + $0x410] sm:$0xff] }
 0x440   : > { %v3158_v63 = vadd.f32 %v3157_v52, %v6510_v21  ;;  %3939 = vmatmul.f32.gmra.mxu0 %v6592_v5  ;;  %v3389_v21 = vpop.f32.mrf.mxu0  ;;  %v3674_v5 = vld [vmem:[#allocation3 + $0x180] sm:$0xff]  ;;  %4022 = vmatpush.msra.mxu1 %v3769_v27 }
 0x442   : > { %v3271_v60 = vadd.f32 %v3270_v1, %v3158_v63  ;;  %v6674_v31 = vpop.f32.mrf.mxu1  ;;  %v6689_v63 = vld [vmem:[#allocation3 + $0xe8] sm:$0xff] }
 0x444   : > { %3563 = vmatmul.f32.gmra.mxu2 %v6677_v16  ;;  %v6682_v17 = vadd.f32 %v3383_v29, %v3271_v60  ;;  %v6692_v29 = vld [vmem:[#allocation3 + $0x218] sm:$0xff] }
 0x445   : > { %3489 = vmatmul.f32.gmra.mxu1 %v6680_v45 }
 0x446   : > { %7346 = vst [vmem:[#allocation36_spill] sm:$0xff] %v6682_v17 }
 0x447   : > { %v3160_v42 = vpop.f32.mrf.mxu2  ;;  %3835 = vmatmul.f32.gmra.mxu3 %v3674_v5  ;;  %v3677_v5 = vld [vmem:[#allocation3 + $0x198] sm:$0xff] }
 0x448   : > { %v3161_v1 = vadd.f32 %v3160_v42, %v6525_v4  ;;  %3942 = vmatmul.f32.gmra.mxu0 %v6602_v46 }
 0x44a   : > { %v3274_v34 = vadd.f32 %v3273_v55, %v3161_v1  ;;  %v6686_v52 = vpop.f32.mrf.mxu1  ;;  %v3279_v55 = vpop.f32.mrf.mxu3 }
 0x44b   : > { %v3392_v1 = vpop.f32.mrf.mxu0 }
 0x44c   : > { %3566 = vmatmul.f32.gmra.mxu2 %v6689_v63  ;;  %v6694_v60 = vadd.f32 %v3386_v12, %v3274_v34  ;;  %v6704_v12 = vld [vmem:[#allocation3 + $0x230] sm:$0xff] }
 0x44d   : > { %3492 = vmatmul.f32.gmra.mxu1 %v6692_v29 }
 0x44e   : > { %7347 = vst [vmem:[#allocation19_spill] sm:$0xff] %v6694_v60 }
 0x44f   : > { %v3163_v4 = vpop.f32.mrf.mxu2  ;;  %3838 = vmatmul.f32.gmra.mxu3 %v3677_v5  ;;  %v6713_v5 = vld [vmem:[#allocation3 + $0x118] sm:$0xff] }
 0x450   : > { %v3164_v42 = vadd.f32 %v3163_v4, %v6542_v32  ;;  %3945 = vmatmul.f32.gmra.mxu0 %v6611_v50  ;;  %v3680_v50 = vld [vmem:[#allocation3 + $0x1b0] sm:$0xff] }
 0x452   : > { %v3277_v46 = vadd.f32 %v3276_v51, %v3164_v42  ;;  %v6698_v17 = vpop.f32.mrf.mxu1  ;;  %v3282_v51 = vpop.f32.mrf.mxu3 }
 0x453   : > { %v3395_v60 = vpop.f32.mrf.mxu0 }
 0x454   : > { %3569 = vmatmul.f32.gmra.mxu2 %v6701_v62  ;;  %v6706_v34 = vadd.f32 %v3389_v21, %v3277_v46  ;;  %v6716_v21 = vld [vmem:[#allocation3 + $0x248] sm:$0xff] }
 0x455   : > { %3495 = vmatmul.f32.gmra.mxu1 %v6704_v12 }
 0x456   : > { %7348 = vst [vmem:[#allocation35_spill] sm:$0xff] %v6706_v34  ;;  %v3683_v34 = vld [vmem:[#allocation3 + $0x1c8] sm:$0xff] }
 0x457   : > { %v3166_v27 = vpop.f32.mrf.mxu2  ;;  %3841 = vmatmul.f32.gmra.mxu3 %v3680_v50  ;;  %v6725_v50 = vld [vmem:[#allocation3 + $0x130] sm:$0xff] }
 0x458   : > { %v3167_v32 = vadd.f32 %v3166_v27, %v6554_v56  ;;  %3948 = vmatmul.f32.gmra.mxu0 %v6620_v44  ;;  %v3768_v56 = vld [vmem:[#allocation9 + $0x408] sm:$0xff] }
 0x459   : > { %4023 = vmatpush.msra.mxu1 %v3768_v56 }
 0x45a   : > { %v3280_v4 = vadd.f32 %v3279_v55, %v3167_v32  ;;  %v6710_v42 = vpop.f32.mrf.mxu1  ;;  %v3285_v8 = vpop.f32.mrf.mxu3 }
 0x45b   : > { %v3398_v56 = vpop.f32.mrf.mxu0 }
 0x45c   : > { %3572 = vmatmul.f32.gmra.mxu2 %v6713_v5  ;;  %v6718_v46 = vadd.f32 %v3392_v1, %v3280_v4  ;;  %v6728_v1 = vld [vmem:[#allocation3 + $0x260] sm:$0xff] }
 0x45d   : > { %3498 = vmatmul.f32.gmra.mxu1 %v6716_v21 }
 0x45e   : > { %7349 = vst [vmem:[#allocation20_spill] sm:$0xff] %v6718_v46  ;;  %v6737_v46 = vld [vmem:[#allocation3 + $0x148] sm:$0xff] }
 0x45f   : > { %v3169_v55 = vpop.f32.mrf.mxu2  ;;  %3844 = vmatmul.f32.gmra.mxu3 %v3683_v34  ;;  %v6740_v34 = vld [vmem:[#allocation3 + $0x278] sm:$0xff] }
 0x460   : > { %v3170_v27 = vadd.f32 %v3169_v55, %v6566_v23  ;;  %3951 = vmatmul.f32.gmra.mxu0 %v6632_v19  ;;  %v3686_v19 = vld [vmem:[#allocation3 + $0x1e0] sm:$0xff] }
 0x462   : > { %v3283_v32 = vadd.f32 %v3282_v51, %v3170_v27  ;;  %v6722_v44 = vpop.f32.mrf.mxu1 }
 0x464   : > { %3575 = vmatmul.f32.gmra.mxu2 %v6725_v50  ;;  %v6730_v4 = vadd.f32 %v3395_v60, %v3283_v32  ;;  %v3288_v32 = vpop.f32.mrf.mxu3 }
 0x465   : > { %3501 = vmatmul.f32.gmra.mxu1 %v6728_v1 }
 0x466   : > { %7350 = vst [vmem:[#allocation38_spill] sm:$0xff] %v6730_v4  ;;  %v3767_v4 = vld [vmem:[#allocation9 + $0x400] sm:$0xff] }
 0x467   : > { %v3172_v23 = vpop.f32.mrf.mxu2  ;;  %3847 = vmatmul.f32.gmra.mxu3 %v3686_v19  ;;  %4024 = vmatpush.msra.mxu1 %v3767_v4  ;;  %v3689_v19 = vld [vmem:[#allocation3 + $0x1f8] sm:$0xff] }
 0x468   : > { %v3173_v51 = vadd.f32 %v3172_v23, %v6578_v39  ;;  %3954 = vmatmul.f32.gmra.mxu0 %v6644_v25  ;;  %v3401_v39 = vpop.f32.mrf.mxu0 }
 0x46a   : > { %v3286_v55 = vadd.f32 %v3285_v8, %v3173_v51  ;;  %v6734_v27 = vpop.f32.mrf.mxu1 }
 0x46c   : > { %3578 = vmatmul.f32.gmra.mxu2 %v6737_v46  ;;  %v6742_v60 = vadd.f32 %v3398_v56, %v3286_v55  ;;  %v6752_v56 = vld [vmem:[#allocation3 + $0x290] sm:$0xff] }
 0x46d   : > { %3504 = vmatmul.f32.gmra.mxu1 %v6740_v34 }
 0x46e   : > { %7351 = vst [vmem:[#allocation21_spill] sm:$0xff] %v6742_v60  ;;  %v3291_v60 = vpop.f32.mrf.mxu3 }
 0x46f   : > { %v3175_v8 = vpop.f32.mrf.mxu2  ;;  %3850 = vmatmul.f32.gmra.mxu3 %v3689_v19  ;;  %v6761_v19 = vld [vmem:[#allocation3 + $0x178] sm:$0xff] }
 0x470   : > { %v3176_v23 = vadd.f32 %v3175_v8, %v6588_v14  ;;  %3957 = vmatmul.f32.gmra.mxu0 %v6656_v11  ;;  %v3692_v11 = vld [vmem:[#allocation3 + $0x210] sm:$0xff] }
 0x472   : > { %v3289_v25 = vadd.f32 %v3288_v32, %v3176_v23  ;;  %v6746_v51 = vpop.f32.mrf.mxu1  ;;  %v3404_v32 = vpop.f32.mrf.mxu0 }
 0x474   : > { %3581 = vmatmul.f32.gmra.mxu2 %v6749_v3  ;;  %v6754_v55 = vadd.f32 %v3401_v39, %v3289_v25  ;;  %v6764_v39 = vld [vmem:[#allocation3 + $0x2a8] sm:$0xff] }
 0x475   : > { %3507 = vmatmul.f32.gmra.mxu1 %v6752_v56 }
 0x476   : > { %7352 = vst [vmem:[#allocation22_spill] sm:$0xff] %v6754_v55 }
 0x477   : > { %v3178_v4 = vpop.f32.mrf.mxu2  ;;  %3853 = vmatmul.f32.gmra.mxu3 %v3692_v11  ;;  %v6773_v11 = vld [vmem:[#allocation3 + $0x190] sm:$0xff] }
 0x478   : > { %v3179_v14 = vadd.f32 %v3178_v4, %v6598_v6  ;;  %3960 = vmatmul.f32.gmra.mxu0 %v6668_v10  ;;  %v3695_v10 = vld [vmem:[#allocation3 + $0x228] sm:$0xff] }
 0x47a   : > { %v3292_v8 = vadd.f32 %v3291_v60, %v3179_v14  ;;  %v6758_v23 = vpop.f32.mrf.mxu1  ;;  %v3294_v60 = vpop.f32.mrf.mxu3 }
 0x47b   : > { %v3407_v13 = vpop.f32.mrf.mxu0 }
 0x47c   : > { %3584 = vmatmul.f32.gmra.mxu2 %v6761_v19  ;;  %v6766_v25 = vadd.f32 %v3404_v32, %v3292_v8  ;;  %v6776_v32 = vld [vmem:[#allocation3 + $0x2c0] sm:$0xff] }
 0x47d   : > { %3510 = vmatmul.f32.gmra.mxu1 %v6764_v39 }
 0x47e   : > { %7353 = vst [vmem:[#allocation23_spill] sm:$0xff] %v6766_v25  ;;  %v6827_v25 = vld [vmem:[#allocation3 + $0x1f0] sm:$0xff] }
 0x47f   : > { %v3181_v55 = vpop.f32.mrf.mxu2  ;;  %3856 = vmatmul.f32.gmra.mxu3 %v3695_v10  ;;  %v6788_v10 = vld [vmem:[#allocation3 + $0x1a8] sm:$0xff] }
 0x480   : > { %v3182_v6 = vadd.f32 %v3181_v55, %v6608_v59  ;;  %3963 = vmatmul.f32.gmra.mxu0 %v6680_v45  ;;  %v3428_v59 = vadd.f32 %v6617_v53, %v6416_v36  ;;  %v3431_v36 = vadd.f32 %v6626_v0, %v6429_v48  ;;  %v3434_v48 = vadd.f32 %v6638_v24, %v6438_v26 }
 0x481   : > { %v3437_v26 = vadd.f32 %v6650_v37, %v6449_v9 }
 0x482   : > { %v3295_v4 = vadd.f32 %v3294_v60, %v3182_v6  ;;  %v6770_v14 = vpop.f32.mrf.mxu1  ;;  %v3698_v60 = vld [vmem:[#allocation3 + $0x240] sm:$0xff] }
 0x484   : > { %3587 = vmatmul.f32.gmra.mxu2 %v6773_v11  ;;  %v6778_v8 = vadd.f32 %v3407_v13, %v3295_v4  ;;  %v6791_v13 = vld [vmem:[#allocation3 + $0x2d8] sm:$0xff] }
 0x485   : > { %3513 = vmatmul.f32.gmra.mxu1 %v6776_v32 }
 0x486   : > { %7354 = vst [vmem:[#allocation24_spill] sm:$0xff] %v6778_v8  ;;  %v6814_v8 = vld [vmem:[#allocation3 + $0x1d8] sm:$0xff] }
 0x487   : > { %v3540_v55 = vpop.f32.mrf.mxu2  ;;  %3859 = vmatmul.f32.gmra.mxu3 %v3698_v60  ;;  %v6804_v60 = vld [vmem:[#allocation3 + $0x2f0] sm:$0xff] }
 0x488   : > { %v6783_v6 = vadd.f32 %v3540_v55, %v3428_v59  ;;  %3966 = vmatmul.f32.gmra.mxu0 %v6692_v29  ;;  %v3701_v29 = vld [vmem:[#allocation3 + $0x258] sm:$0xff]  ;;  %v6801_v55 = vld [vmem:[#allocation3 + $0x1c0] sm:$0xff] }
 0x48a   : > { %v6785_v45 = vpop.f32.mrf.mxu1 }
 0x48c   : > { %3590 = vmatmul.f32.gmra.mxu2 %v6788_v10 }
 0x48d   : > { %3516 = vmatmul.f32.gmra.mxu1 %v6791_v13 }
 0x48f   : > { %v3543_v53 = vpop.f32.mrf.mxu2  ;;  %3862 = vmatmul.f32.gmra.mxu3 %v3701_v29  ;;  %v6817_v29 = vpop.f32.mrf.mxu3 }
 0x490   : > { %v6796_v4 = vadd.f32 %v3543_v53, %v3431_v36  ;;  %3969 = vmatmul.f32.gmra.mxu0 %v6704_v12  ;;  %v3704_v12 = vld [vmem:[#allocation3 + $0x270] sm:$0xff] }
 0x492   : > { %v6798_v59 = vpop.f32.mrf.mxu1 }
 0x494   : > { %3593 = vmatmul.f32.gmra.mxu2 %v6801_v55 }
 0x495   : > { %3519 = vmatmul.f32.gmra.mxu1 %v6804_v60 }
 0x497   : > { %v3546_v0 = vpop.f32.mrf.mxu2  ;;  %3865 = vmatmul.f32.gmra.mxu3 %v3704_v12  ;;  %v6833_v12 = vpop.f32.mrf.mxu3 }
 0x498   : > { %v6809_v36 = vadd.f32 %v3546_v0, %v3434_v48  ;;  %3972 = vmatmul.f32.gmra.mxu0 %v6716_v21  ;;  %v3707_v21 = vld [vmem:[#allocation3 + $0x288] sm:$0xff] }
 0x49a   : > { %v6811_v53 = vpop.f32.mrf.mxu1 }
 0x49b   : > { %7355 = vst [vmem:[#allocation25_spill] sm:$0xff] %v6811_v53 }
 0x49c   : > { %3596 = vmatmul.f32.gmra.mxu2 %v6814_v8 }
 0x49d   : > { %4025 = vmatmul.f32.vlgmr.msra.gmra.mxu1 %v6629_v2  ;;  %v3440_v2 = vadd.f32 %v6662_v35, %v6458_v61  ;;  %v3443_v61 = vadd.f32 %v6674_v31, %v6465_v47  ;;  %v3446_v47 = vadd.f32 %v6686_v52, %v6475_v15  ;;  %v3449_v15 = vadd.f32 %v6698_v17, %v6487_v28  ;;  %v3722_v17 = vld [vmem:[#allocation3 + $0x300] sm:$0xff] }
 0x49f   : > { %v3549_v24 = vpop.f32.mrf.mxu2  ;;  %3868 = vmatmul.f32.gmra.mxu3 %v3707_v21  ;;  %v6842_v21 = vpop.f32.mrf.mxu0 }
 0x4a0   : > { %v6822_v48 = vadd.f32 %v3549_v24, %v3437_v26  ;;  %3975 = vmatmul.f32.gmra.mxu0 %v6728_v1  ;;  %v3710_v1 = vld [vmem:[#allocation3 + $0x2a0] sm:$0xff]  ;;  %v6840_v24 = vld [vmem:[#allocation3 + $0x208] sm:$0xff] }
 0x4a2   : > { %v6824_v0 = vpop.f32.mrf.mxu1 }
 0x4a3   : > { %7356 = vst [vmem:[#allocation28_spill] sm:$0xff] %v6824_v0  ;;  %v6945_v0 = vld [vmem:[#allocation3 + $0x2e0] sm:$0xff] }
 0x4a4   : > { %3599 = vmatmul.f32.gmra.mxu2 %v6827_v25 }
 0x4a5   : > { %4028 = vmatmul.f32.gmra.mxu1 %v6641_v58 }
 0x4a7   : > { %v3552_v9 = vpop.f32.mrf.mxu2  ;;  %3871 = vmatmul.f32.gmra.mxu3 %v3710_v1  ;;  %v6855_v1 = vld [vmem:[#allocation3 + $0x220] sm:$0xff] }
 0x4a8   : > { %v6835_v37 = vadd.f32 %v3552_v9, %v3440_v2  ;;  %3978 = vmatmul.f32.gmra.mxu0 %v6740_v34  ;;  %v6850_v2 = vpop.f32.mrf.mxu3  ;;  %v3713_v34 = vld [vmem:[#allocation3 + $0x2b8] sm:$0xff] }
 0x4aa   : > { %v6837_v26 = vpop.f32.mrf.mxu1 }
 0x4ab   : > { %7357 = vst [vmem:[#allocation26_spill] sm:$0xff] %v6837_v26 }
 0x4ac   : > { %3602 = vmatmul.f32.gmra.mxu2 %v6840_v24 }
 0x4ad   : > { %4031 = vmatmul.f32.gmra.mxu1 %v6653_v30  ;;  %v6861_v30 = vpop.f32.mrf.mxu0 }
 0x4af   : > { %v3555_v58 = vpop.f32.mrf.mxu2  ;;  %3874 = vmatmul.f32.gmra.mxu3 %v3713_v34  ;;  %v6870_v34 = vld [vmem:[#allocation3 + $0x238] sm:$0xff] }
 0x4b0   : > { %v6848_v35 = vadd.f32 %v3555_v58, %v3443_v61  ;;  %3981 = vmatmul.f32.gmra.mxu0 %v6752_v56  ;;  %v3716_v56 = vld [vmem:[#allocation3 + $0x2d0] sm:$0xff] }
 0x4b2   : > { %v6852_v9 = vpop.f32.mrf.mxu1 }
 0x4b3   : > { %7358 = vst [vmem:[#allocation27_spill] sm:$0xff] %v6852_v9  ;;  %v6868_v9 = vpop.f32.mrf.mxu3 }
 0x4b4   : > { %3605 = vmatmul.f32.gmra.mxu2 %v6855_v1 }
 0x4b5   : > { %4034 = vmatmul.f32.gmra.mxu1 %v6665_v57  ;;  %v6876_v52 = vpop.f32.mrf.mxu0 }
 0x4b7   : > { %v3558_v31 = vpop.f32.mrf.mxu2  ;;  %3877 = vmatmul.f32.gmra.mxu3 %v3716_v56 }
 0x4b8   : > { %v6863_v61 = vadd.f32 %v3558_v31, %v3446_v47  ;;  %3984 = vmatmul.f32.gmra.mxu0 %v6764_v39  ;;  %v3719_v39 = vld [vmem:[#allocation3 + $0x2e8] sm:$0xff] }
 0x4ba   : > { %v6865_v58 = vpop.f32.mrf.mxu1 }
 0x4bb   : > { %7359 = vst [vmem:[#allocation29_spill] sm:$0xff] %v6865_v58  ;;  %v6883_v58 = vld [vmem:[#allocation3 + $0x250] sm:$0xff]  ;;  %v6886_v56 = vpop.f32.mrf.mxu3 }
 0x4bc   : > { %3608 = vmatmul.f32.gmra.mxu2 %v6870_v34 }
 0x4bd   : > { %4037 = vmatmul.f32.gmra.mxu1 %v6677_v16  ;;  %v6889_v28 = vpop.f32.mrf.mxu0 }
 0x4bf   : > { %v3561_v57 = vpop.f32.mrf.mxu2  ;;  %3880 = vmatmul.f32.gmra.mxu3 %v3719_v39  ;;  %v6903_v39 = vld [vmem:[#allocation3 + $0x280] sm:$0xff] }
 0x4c0   : > { %v6878_v47 = vadd.f32 %v3561_v57, %v3449_v15  ;;  %3987 = vmatmul.f32.gmra.mxu0 %v6776_v32  ;;  %v6894_v15 = vld [vmem:[#allocation3 + $0x268] sm:$0xff] }
 0x4c2   : > { %v6880_v31 = vpop.f32.mrf.mxu1 }
 0x4c3   : > { %7360 = vst [vmem:[#allocation31_spill] sm:$0xff] %v6880_v31  ;;  %v6898_v32 = vpop.f32.mrf.mxu3  ;;  %v6913_v31 = vld [vmem:[#allocation3 + $0x298] sm:$0xff] }
 0x4c4   : > { %3611 = vmatmul.f32.gmra.mxu2 %v6883_v58 }
 0x4c5   : > { %4040 = vmatmul.f32.gmra.mxu1 %v6689_v63  ;;  %v3725_v63 = vld [vmem:[#allocation3 + $0x318] sm:$0xff] }
 0x4c7   : > { %3883 = vmatmul.f32.gmra.mxu3 %v3722_v17  ;;  %v3723_v17 = vld [vmem:[#allocation3 + $0x308] sm:$0xff] }
 0x4c8   : > { %3990 = vmatmul.f32.gmra.mxu0 %v6791_v13 }
 0x4ca   : > { %v6891_v16 = vpop.f32.mrf.mxu1 }
 0x4cb   : > { %7361 = vst [vmem:[#allocation34_spill] sm:$0xff] %v6891_v16  ;;  %v6905_v16 = vpop.f32.mrf.mxu0  ;;  %v6909_v13 = vpop.f32.mrf.mxu3 }
 0x4cc   : > { %3614 = vmatmul.f32.gmra.mxu2 %v6894_v15 }
 0x4cd   : > { %4043 = vmatmul.f32.gmra.mxu1 %v6701_v62 }
 0x4cf   : > { %3886 = vmatmul.f32.gmra.mxu3 %v3725_v63  ;;  %v3726_v63 = vld [vmem:[#allocation3 + $0x320] sm:$0xff] }
 0x4d0   : > { %3993 = vmatmul.f32.gmra.mxu0 %v6804_v60 }
 0x4d2   : > { %v6900_v57 = vpop.f32.mrf.mxu1 }
 0x4d3   : > { %7362 = vst [vmem:[#allocation39_spill] sm:$0xff] %v6900_v57  ;;  %v6915_v57 = vld [vmem:[#allocation2] sm:$0xff]  ;;  %v6920_v60 = vpop.f32.mrf.mxu0  ;;  %v6924_v26 = vpop.f32.mrf.mxu3 }
 0x4d4   : > { %3617 = vmatmul.f32.gmra.mxu2 %v6903_v39 }
 0x4d5   : > { %4046 = vmatmul.f32.gmra.mxu1 %v6713_v5 }
 0x4d7   : > { %3889 = vmatmul.f32.gmra.mxu3 %v6915_v57 }
 0x4d8   : > { %3996 = vmatmul.f32.gmra.mxu0 %v3723_v17 }
 0x4da   : > { %v6911_v62 = vpop.f32.mrf.mxu1 }
 0x4db   : > { %7363 = vst [vmem:[#allocation40_spill] sm:$0xff] %v6911_v62  ;;  %v6926_v62 = vld [vmem:[#allocation3 + $0x2b0] sm:$0xff]  ;;  %v6931_v17 = vpop.f32.mrf.mxu0 }
 0x4dc   : > { %3620 = vmatmul.f32.gmra.mxu2 %v6913_v31 }
 0x4dd   : > { %4049 = vmatmul.f32.gmra.mxu1 %v6725_v50  ;;  %v6936_v50 = vld [vmem:[#allocation3 + $0x2c8] sm:$0xff] }
 0x4df   : > { %3892 = vmatmul.f32.gmra.mxu3 %v6915_v57 }
 0x4e0   : > { %3999 = vmatmul.f32.gmra.mxu0 %v3726_v63 }
 0x4e2   : > { %v6922_v5 = vpop.f32.mrf.mxu1 }
 0x4e3   : > { %7364 = vst [vmem:[#allocation41_spill] sm:$0xff] %v6922_v5  ;;  %v6940_v63 = vpop.f32.mrf.mxu0 }
 0x4e4   : > { %3623 = vmatmul.f32.gmra.mxu2 %v6926_v62 }
 0x4e5   : > { %4052 = vmatmul.f32.gmra.mxu1 %v6737_v46 }
 0x4e8   : > { %4002 = vmatmul.f32.gmra.mxu0 %v6915_v57 }
 0x4ea   : > { %v6933_v33 = vpop.f32.mrf.mxu1 }
 0x4eb   : > { %7365 = vst [vmem:[#allocation42_spill] sm:$0xff] %v6933_v33  ;;  %v6951_v33 = vld [vmem:[#allocation3 + $0x2f8] sm:$0xff] }
 0x4ec   : > { %3626 = vmatmul.f32.gmra.mxu2 %v6936_v50 }
 0x4ed   : > { %4055 = vmatmul.f32.gmra.mxu1 %v6749_v3 }
 0x4f0   : > { %4005 = vmatmul.f32.gmra.mxu0 %v6915_v57 }
 0x4f2   : > { %v6942_v5 = vpop.f32.mrf.mxu1 }
 0x4f3   : > { %7366 = vst [vmem:[#allocation43_spill] sm:$0xff] %v6942_v5 }
 0x4f4   : > { %3629 = vmatmul.f32.gmra.mxu2 %v6945_v0 }
 0x4f5   : > { %4058 = vmatmul.f32.gmra.mxu1 %v6761_v19  ;;  %v3914_v19 = vadd.f32 %v6842_v21, %v6817_v29 }
 0x4fa   : > { %v6949_v46 = vpop.f32.mrf.mxu1 }
 0x4fb   : > { %7367 = vst [vmem:[#allocation44_spill] sm:$0xff] %v6949_v46 }
 0x4fc   : > { %3632 = vmatmul.f32.gmra.mxu2 %v6951_v33 }
 0x4fd   : > { %4061 = vmatmul.f32.gmra.mxu1 %v6773_v11  ;;  %v6966_v11 = vld [vmem:[#allocation10 + $0x4] ss:$0 sm:$0xff] }
 0x502   : > { %v6955_v3 = vpop.f32.mrf.mxu1 }
 0x503   : > { %7368 = vst [vmem:[#allocation45_spill] sm:$0xff] %v6955_v3 }
 0x505   : > { %4064 = vmatmul.f32.gmra.mxu1 %v6788_v10  ;;  %v4187_v10 = vld [vmem:[%s4924_s25] sm:$0xff] }
 0x50a   : > { %v6958_v5 = vpop.f32.mrf.mxu1 }
 0x50b   : > { %7369 = vst [vmem:[#allocation46_spill] sm:$0xff] %v6958_v5 }
 0x50d   : > { %4067 = vmatmul.f32.gmra.mxu1 %v6801_v55  ;;  %v3917_v55 = vadd.f32 %v6861_v30, %v6833_v12  ;;  %v6985_v12 = vpop.f32.mrf.mxu0  ;;  %v3920_v30 = vadd.f32 %v6876_v52, %v6850_v2 }
 0x512   : > { %v6961_v7 = vpop.f32.mrf.mxu1 }
 0x513   : > { %7370 = vst [vmem:[#allocation47_spill] sm:$0xff] %v6961_v7 }
 0x515   : > { %4070 = vmatmul.f32.gmra.mxu1 %v6814_v8  ;;  %v7000_v52 = vpop.f32.mrf.mxu0 }
 0x51a   : > { %v4026_v46 = vpop.f32.mrf.mxu1 }
 0x51b   : > { %v4027_v53 = vadd.f32 %v4026_v46, %v3914_v19  ;;  %v6989_v46 = vpop.f32.mrf.mxu2 }
 0x51d   : > { %v4122_v3 = vadd.f32 %v4027_v53, %v6783_v6  ;;  %4073 = vmatmul.f32.gmra.mxu1 %v6827_v25  ;;  %v4188_v25 = vld [vmem:[%s4924_s25 + $0x8] sm:$0xff]  ;;  %v6982_v53 = vpop.f32.mrf.mxu3 }
 0x51f   : > { %v4155_v5 = vadd.f32 %v6966_v11, %v4122_v3  ;;  %v4189_v3 = vld [vmem:[%s4924_s25 + $0x10] sm:$0xff] }
 0x521   : > { %v4219_v7 = vadd.f32 %v4187_v10, %v4155_v5  ;;  %v3923_v10 = vadd.f32 %v6889_v28, %v6868_v9  ;;  %v3926_v9 = vadd.f32 %v6905_v16, %v6886_v56  ;;  %v3929_v56 = vadd.f32 %v6920_v60, %v6898_v32 }
 0x522   : > { %v4029_v8 = vpop.f32.mrf.mxu1  ;;  %v3932_v32 = vadd.f32 %v6931_v17, %v6909_v13 }
 0x523   : > { %4252 = vst [vmem:[%s6976_s21] sm:$0xff] %v4219_v7  ;;  %v4030_v29 = vadd.f32 %v4029_v8, %v3917_v55 }
 0x525   : > { %v4123_v6 = vadd.f32 %v4030_v29, %v6796_v4  ;;  %4076 = vmatmul.f32.gmra.mxu1 %v6840_v24  ;;  %v6998_v55 = vpop.f32.mrf.mxu3 }
 0x527   : > { %v4156_v21 = vadd.f32 %v6966_v11, %v4123_v6  ;;  %v7003_v6 = vpop.f32.mrf.mxu2 }
 0x529   : > { %v4220_v5 = vadd.f32 %v4188_v25, %v4156_v21 }
 0x52a   : > { %v4032_v7 = vpop.f32.mrf.mxu1 }
 0x52b   : > { %4253 = vst [vmem:[%s6976_s21 + $0x8] sm:$0xff] %v4220_v5  ;;  %v4033_v4 = vadd.f32 %v4032_v7, %v3920_v30  ;;  %v7014_v7 = vpop.f32.mrf.mxu0 }
 0x52d   : > { %v4124_v24 = vadd.f32 %v4033_v4, %v6809_v36  ;;  %4079 = vmatmul.f32.gmra.mxu1 %v6855_v1  ;;  %v4190_v1 = vld [vmem:[%s4924_s25 + $0x18] sm:$0xff]  ;;  %v7011_v30 = vpop.f32.mrf.mxu3  ;;  %v4191_v4 = vld [vmem:[%s4924_s25 + $0x20] sm:$0xff] }
 0x52f   : > { %v4157_v19 = vadd.f32 %v6966_v11, %v4124_v24 }
 0x531   : > { %v4221_v2 = vadd.f32 %v4189_v3, %v4157_v19 }
 0x532   : > { %v4035_v8 = vpop.f32.mrf.mxu1 }
 0x533   : > { %4254 = vst [vmem:[%s6976_s21 + $0x10] sm:$0xff] %v4221_v2  ;;  %v4036_v29 = vadd.f32 %v4035_v8, %v3923_v10  ;;  %v4192_v2 = vld [vmem:[%s4924_s25 + $0x28] sm:$0xff] }
 0x535   : > { %v4125_v36 = vadd.f32 %v4036_v29, %v6822_v48  ;;  %4082 = vmatmul.f32.gmra.mxu1 %v6870_v34  ;;  %v7018_v34 = vpop.f32.mrf.mxu2  ;;  %v7025_v10 = vpop.f32.mrf.mxu3 }
 0x537   : > { %v4158_v25 = vadd.f32 %v6966_v11, %v4125_v36 }
 0x539   : > { %v4222_v28 = vadd.f32 %v4190_v1, %v4158_v25 }
 0x53a   : > { %v4038_v21 = vpop.f32.mrf.mxu1 }
 0x53b   : > { %4255 = vst [vmem:[%s6976_s21 + $0x18] sm:$0xff] %v4222_v28  ;;  %v4039_v5 = vadd.f32 %v4038_v21, %v3926_v9  ;;  %v3935_v21 = vadd.f32 %v6940_v63, %v6924_v26  ;;  %v3938_v26 = vadd.f32 %v6985_v12, %v6982_v53  ;;  %v3455_v53 = vadd.f32 %v6722_v44, %v6516_v41 }
 0x53c   : > { %v3941_v12 = vadd.f32 %v7000_v52, %v6998_v55  ;;  %v3458_v44 = vadd.f32 %v6734_v27, %v6533_v22  ;;  %v3944_v55 = vadd.f32 %v7014_v7, %v7011_v30  ;;  %v3461_v30 = vadd.f32 %v6746_v51, %v6549_v18 }
 0x53d   : > { %v4126_v48 = vadd.f32 %v4039_v5, %v6835_v37  ;;  %4085 = vmatmul.f32.gmra.mxu1 %v6883_v58  ;;  %v7029_v58 = vpop.f32.mrf.mxu0  ;;  %v7033_v29 = vpop.f32.mrf.mxu2  ;;  %v3464_v18 = vadd.f32 %v6758_v23, %v6561_v43  ;;  %v3467_v43 = vadd.f32 %v6770_v14, %v6573_v38  ;;  %v3470_v14 = vadd.f32 %v6785_v45, %v6584_v20 }
 0x53e   : > { %v7041_v25 = vpop.f32.mrf.mxu3  ;;  %v3947_v7 = vadd.f32 %v7029_v58, %v7025_v10  ;;  %v3473_v20 = vadd.f32 %v6798_v59, %v6594_v49  ;;  %v7371_v49 = vld [vmem:[#allocation25_spill] sm:$0xff] }
 0x53f   : > { %v4159_v24 = vadd.f32 %v6966_v11, %v4126_v48  ;;  %v3476_v59 = vadd.f32 %v7371_v49, %v6604_v54  ;;  %v4207_v49 = vld [vmem:[%s4924_s25 + $0xa0] sm:$0xff] }
 0x541   : > { %v4223_v16 = vadd.f32 %v4191_v4, %v4159_v24  ;;  %v3452_v24 = vadd.f32 %v6710_v42, %v6502_v40  ;;  %v4195_v40 = vld [vmem:[%s4924_s25 + $0x40] sm:$0xff] }
 0x542   : > { %v4041_v3 = vpop.f32.mrf.mxu1 }
 0x543   : > { %4256 = vst [vmem:[%s6976_s21 + $0x20] sm:$0xff] %v4223_v16  ;;  %v4042_v19 = vadd.f32 %v4041_v3, %v3929_v56 }
 0x545   : > { %v4127_v37 = vadd.f32 %v4042_v19, %v6848_v35  ;;  %4088 = vmatmul.f32.gmra.mxu1 %v6894_v15  ;;  %v4193_v15 = vld [vmem:[%s4924_s25 + $0x30] sm:$0xff]  ;;  %v7044_v28 = vpop.f32.mrf.mxu0  ;;  %v7048_v17 = vpop.f32.mrf.mxu2 }
 0x546   : > { %v7059_v63 = vpop.f32.mrf.mxu3  ;;  %v3950_v51 = vadd.f32 %v7044_v28, %v7041_v25 }
 0x547   : > { %v4160_v8 = vadd.f32 %v6966_v11, %v4127_v37 }
 0x549   : > { %v4224_v60 = vadd.f32 %v4192_v2, %v4160_v8 }
 0x54a   : > { %v4044_v36 = vpop.f32.mrf.mxu1 }
 0x54b   : > { %4257 = vst [vmem:[%s6976_s21 + $0x28] sm:$0xff] %v4224_v60  ;;  %v4045_v1 = vadd.f32 %v4044_v36, %v3932_v32 }
 0x54d   : > { %v4128_v35 = vadd.f32 %v4045_v1, %v6863_v61  ;;  %4091 = vmatmul.f32.gmra.mxu1 %v6903_v39  ;;  %v4194_v39 = vld [vmem:[%s4924_s25 + $0x38] sm:$0xff]  ;;  %v7061_v16 = vpop.f32.mrf.mxu0  ;;  %v7065_v19 = vpop.f32.mrf.mxu2 }
 0x54e   : > { %v7075_v32 = vpop.f32.mrf.mxu3  ;;  %v3953_v23 = vadd.f32 %v7061_v16, %v7059_v63 }
 0x54f   : > { %v4161_v9 = vadd.f32 %v6966_v11, %v4128_v35  ;;  %v4196_v35 = vld [vmem:[%s4924_s25 + $0x48] sm:$0xff] }
 0x551   : > { %v4225_v13 = vadd.f32 %v4193_v15, %v4161_v9  ;;  %v3571_v15 = vadd.f32 %v7018_v34, %v3458_v44 }
 0x552   : > { %v4047_v5 = vpop.f32.mrf.mxu1 }
 0x553   : > { %4258 = vst [vmem:[%s6976_s21 + $0x30] sm:$0xff] %v4225_v13  ;;  %v4048_v48 = vadd.f32 %v4047_v5, %v3935_v21  ;;  %v4197_v5 = vld [vmem:[%s4924_s25 + $0x50] sm:$0xff] }
 0x555   : > { %v4129_v61 = vadd.f32 %v4048_v48, %v6878_v47  ;;  %4094 = vmatmul.f32.gmra.mxu1 %v6913_v31  ;;  %v3565_v47 = vadd.f32 %v6989_v46, %v3452_v24  ;;  %v3568_v46 = vadd.f32 %v7003_v6, %v3455_v53  ;;  %v3955_v36 = vpop.f32.mrf.mxu0  ;;  %v3582_v1 = vpop.f32.mrf.mxu2 }
 0x556   : > { %v7087_v21 = vpop.f32.mrf.mxu3  ;;  %v3956_v63 = vadd.f32 %v3955_v36, %v7075_v32 }
 0x557   : > { %v4162_v4 = vadd.f32 %v6966_v11, %v4129_v61  ;;  %v3574_v61 = vadd.f32 %v7033_v29, %v3461_v30  ;;  %v4202_v30 = vld [vmem:[%s4924_s25 + $0x78] sm:$0xff] }
 0x559   : > { %v4226_v56 = vadd.f32 %v4194_v39, %v4162_v4 }
 0x55a   : > { %v4050_v3 = vpop.f32.mrf.mxu1 }
 0x55b   : > { %4259 = vst [vmem:[%s6976_s21 + $0x38] sm:$0xff] %v4226_v56  ;;  %v4051_v31 = vadd.f32 %v4050_v3, %v3938_v26  ;;  %v3577_v3 = vadd.f32 %v7048_v17, %v3464_v18  ;;  %v3580_v17 = vadd.f32 %v7065_v19, %v3467_v43  ;;  %v7372_v18 = vld [vmem:[#allocation32_spill] sm:$0xff] }
 0x55d   : > { %v4130_v37 = vadd.f32 %v4051_v31, %v3565_v47  ;;  %4097 = vmatmul.f32.gmra.mxu1 %v6926_v62  ;;  %v3958_v13 = vpop.f32.mrf.mxu0  ;;  %v3585_v27 = vpop.f32.mrf.mxu2  ;;  %v3724_v47 = vld [vmem:[#allocation3 + $0x310] sm:$0xff] }
 0x55e   : > { %v3848_v24 = vpop.f32.mrf.mxu3  ;;  %v3959_v45 = vadd.f32 %v3958_v13, %v7087_v21 }
 0x55f   : > { %v4163_v42 = vadd.f32 %v6966_v11, %v4130_v37  ;;  %v4199_v37 = vld [vmem:[%s4924_s25 + $0x60] sm:$0xff] }
 0x561   : > { %v4227_v2 = vadd.f32 %v4195_v40, %v4163_v42 }
 0x562   : > { %v4053_v8 = vpop.f32.mrf.mxu1 }
 0x563   : > { %4260 = vst [vmem:[%s6976_s21 + $0x40] sm:$0xff] %v4227_v2  ;;  %v4054_v60 = vadd.f32 %v4053_v8, %v3941_v12  ;;  %v3727_v8 = vld [vmem:[#allocation3 + $0x328] sm:$0xff] }
 0x565   : > { %v4131_v62 = vadd.f32 %v4054_v60, %v3568_v46  ;;  %4100 = vmatmul.f32.gmra.mxu1 %v6936_v50  ;;  %v3961_v56 = vpop.f32.mrf.mxu0  ;;  %v3588_v58 = vpop.f32.mrf.mxu2  ;;  %v4200_v60 = vld [vmem:[%s4924_s25 + $0x68] sm:$0xff] }
 0x566   : > { %v3851_v25 = vpop.f32.mrf.mxu3  ;;  %v3962_v21 = vadd.f32 %v3961_v56, %v3848_v24 }
 0x567   : > { %v4164_v41 = vadd.f32 %v6966_v11, %v4131_v62 }
 0x569   : > { %v4228_v52 = vadd.f32 %v4196_v35, %v4164_v41  ;;  %v3583_v35 = vadd.f32 %v3582_v1, %v3470_v14  ;;  %v3586_v1 = vadd.f32 %v3585_v27, %v3473_v20  ;;  %v3589_v27 = vadd.f32 %v3588_v58, %v3476_v59  ;;  %v7377_v14 = vld [vmem:[#allocation27_spill] sm:$0xff] }
 0x56a   : > { %v4056_v6 = vpop.f32.mrf.mxu1 }
 0x56b   : > { %4261 = vst [vmem:[%s6976_s21 + $0x48] sm:$0xff] %v4228_v52  ;;  %v4057_v9 = vadd.f32 %v4056_v6, %v3944_v55  ;;  %v4201_v6 = vld [vmem:[%s4924_s25 + $0x70] sm:$0xff] }
 0x56d   : > { %v4132_v50 = vadd.f32 %v4057_v9, %v3571_v15  ;;  %4103 = vmatmul.f32.gmra.mxu1 %v6945_v0  ;;  %v4198_v0 = vld [vmem:[%s4924_s25 + $0x58] sm:$0xff]  ;;  %v3964_v42 = vpop.f32.mrf.mxu0  ;;  %v3591_v2 = vpop.f32.mrf.mxu2 }
 0x56e   : > { %v3854_v19 = vpop.f32.mrf.mxu3 }
 0x56f   : > { %v4165_v22 = vadd.f32 %v6966_v11, %v4132_v50 }
 0x571   : > { %v4229_v34 = vadd.f32 %v4197_v5, %v4165_v22 }
 0x572   : > { %v4059_v48 = vpop.f32.mrf.mxu1 }
 0x573   : > { %4262 = vst [vmem:[%s6976_s21 + $0x50] sm:$0xff] %v4229_v34  ;;  %v4060_v39 = vadd.f32 %v4059_v48, %v3947_v7 }
 0x575   : > { %v4133_v4 = vadd.f32 %v4060_v39, %v3574_v61  ;;  %4106 = vmatmul.f32.gmra.mxu1 %v6951_v33  ;;  %v3967_v44 = vpop.f32.mrf.mxu0  ;;  %v3594_v52 = vpop.f32.mrf.mxu2 }
 0x576   : > { %v3857_v50 = vpop.f32.mrf.mxu3 }
 0x577   : > { %v4166_v26 = vadd.f32 %v6966_v11, %v4133_v4  ;;  %v4203_v4 = vld [vmem:[%s4924_s25 + $0x80] sm:$0xff] }
 0x579   : > { %v4230_v10 = vadd.f32 %v4198_v0, %v4166_v26 }
 0x57a   : > { %v4062_v29 = vpop.f32.mrf.mxu1 }
 0x57b   : > { %4263 = vst [vmem:[%s6976_s21 + $0x58] sm:$0xff] %v4230_v10  ;;  %v4063_v33 = vadd.f32 %v4062_v29, %v3950_v51  ;;  %v7373_v51 = vld [vmem:[#allocation28_spill] sm:$0xff]  ;;  %v3965_v29 = vadd.f32 %v3964_v42, %v3851_v25 }
 0x57c   : > { %v3479_v10 = vadd.f32 %v7373_v51, %v7372_v18  ;;  %v4208_v18 = vld [vmem:[%s4924_s25 + $0xa8] sm:$0xff] }
 0x57d   : > { %v4134_v31 = vadd.f32 %v4063_v33, %v3577_v3  ;;  %4109 = vmatmul.f32.gmra.mxu1 %v3724_v47  ;;  %v3970_v22 = vpop.f32.mrf.mxu0  ;;  %v3597_v34 = vpop.f32.mrf.mxu2  ;;  %v4204_v47 = vld [vmem:[%s4924_s25 + $0x88] sm:$0xff] }
 0x57e   : > { %v3860_v0 = vpop.f32.mrf.mxu3  ;;  %v3592_v56 = vadd.f32 %v3591_v2, %v3479_v10 }
 0x57f   : > { %v4167_v40 = vadd.f32 %v6966_v11, %v4134_v31 }
 0x581   : > { %v4231_v28 = vadd.f32 %v4199_v37, %v4167_v40  ;;  %v7374_v37 = vld [vmem:[#allocation17_spill] sm:$0xff]  ;;  %v7375_v40 = vld [vmem:[#allocation26_spill] sm:$0xff] }
 0x582   : > { %v4065_v53 = vpop.f32.mrf.mxu1  ;;  %v3482_v43 = vadd.f32 %v7375_v40, %v7374_v37 }
 0x583   : > { %4264 = vst [vmem:[%s6976_s21 + $0x60] sm:$0xff] %v4231_v28  ;;  %v4066_v12 = vadd.f32 %v4065_v53, %v3953_v23  ;;  %v3968_v23 = vadd.f32 %v3967_v44, %v3854_v19 }
 0x585   : > { %v4135_v46 = vadd.f32 %v4066_v12, %v3580_v17  ;;  %4112 = vmatmul.f32.gmra.mxu1 %v3727_v8  ;;  %v3973_v26 = vpop.f32.mrf.mxu0  ;;  %v3600_v54 = vpop.f32.mrf.mxu2  ;;  %v3595_v17 = vadd.f32 %v3594_v52, %v3482_v43  ;;  %v4209_v43 = vld [vmem:[%s4924_s25 + $0xb0] sm:$0xff] }
 0x586   : > { %v3863_v28 = vpop.f32.mrf.mxu3 }
 0x587   : > { %v4168_v38 = vadd.f32 %v6966_v11, %v4135_v46  ;;  %v4205_v46 = vld [vmem:[%s4924_s25 + $0x90] sm:$0xff] }
 0x589   : > { %v4232_v16 = vadd.f32 %v4200_v60, %v4168_v38  ;;  %v7376_v38 = vld [vmem:[#allocation30_spill] sm:$0xff] }
 0x58a   : > { %v4068_v62 = vpop.f32.mrf.mxu1 }
 0x58b   : > { %4265 = vst [vmem:[%s6976_s21 + $0x68] sm:$0xff] %v4232_v16  ;;  %v4069_v41 = vadd.f32 %v4068_v62, %v3956_v63  ;;  %v3485_v63 = vadd.f32 %v7377_v14, %v7376_v38  ;;  %v3971_v16 = vadd.f32 %v3970_v22, %v3857_v50 }
 0x58d   : > { %v4136_v55 = vadd.f32 %v4069_v41, %v3583_v35  ;;  %4115 = vmatmul.f32.gmra.mxu1 %v6915_v57  ;;  %v3976_v25 = vpop.f32.mrf.mxu0  ;;  %v3603_v2 = vpop.f32.mrf.mxu2  ;;  %v3598_v19 = vadd.f32 %v3597_v34, %v3485_v63  ;;  %v4210_v63 = vld [vmem:[%s4924_s25 + $0xb8] sm:$0xff] }
 0x58e   : > { %v3866_v41 = vpop.f32.mrf.mxu3 }
 0x58f   : > { %v4169_v15 = vadd.f32 %v6966_v11, %v4136_v55 }
 0x591   : > { %v4233_v32 = vadd.f32 %v4201_v6, %v4169_v15  ;;  %v4206_v15 = vld [vmem:[%s4924_s25 + $0x98] sm:$0xff] }
 0x592   : > { %v4071_v36 = vpop.f32.mrf.mxu1 }
 0x593   : > { %4266 = vst [vmem:[%s6976_s21 + $0x70] sm:$0xff] %v4233_v32  ;;  %v4072_v9 = vadd.f32 %v4071_v36, %v3959_v45  ;;  %v7378_v45 = vld [vmem:[#allocation18_spill] sm:$0xff]  ;;  %v7379_v32 = vld [vmem:[#allocation29_spill] sm:$0xff] }
 0x594   : > { %v3488_v36 = vadd.f32 %v7379_v32, %v7378_v45 }
 0x595   : > { %v4137_v5 = vadd.f32 %v4072_v9, %v3586_v1  ;;  %4118 = vmatmul.f32.gmra.mxu1 %v6915_v57  ;;  %v3979_v55 = vpop.f32.mrf.mxu0  ;;  %v3606_v6 = vpop.f32.mrf.mxu2  ;;  %v3974_v1 = vadd.f32 %v3973_v26, %v3860_v0 }
 0x597   : > { %v4170_v7 = vadd.f32 %v6966_v11, %v4137_v5  ;;  %v3601_v5 = vadd.f32 %v3600_v54, %v3488_v36  ;;  %v7383_v54 = vld [vmem:[#allocation34_spill] sm:$0xff]  ;;  %v4211_v36 = vld [vmem:[%s4924_s25 + $0xc0] sm:$0xff] }
 0x599   : > { %v4234_v13 = vadd.f32 %v4202_v30, %v4170_v7  ;;  %v3869_v30 = vpop.f32.mrf.mxu3 }
 0x59a   : > { %v4074_v48 = vpop.f32.mrf.mxu1 }
 0x59b   : > { %4267 = vst [vmem:[%s6976_s21 + $0x78] sm:$0xff] %v4234_v13  ;;  %v4075_v61 = vadd.f32 %v4074_v48, %v3962_v21  ;;  %v7380_v13 = vld [vmem:[#allocation33_spill] sm:$0xff]  ;;  %v7381_v48 = vld [vmem:[#allocation31_spill] sm:$0xff] }
 0x59d   : > { %v4138_v39 = vadd.f32 %v4075_v61, %v3589_v27  ;;  %v3982_v34 = vpop.f32.mrf.mxu0  ;;  %v3609_v21 = vpop.f32.mrf.mxu2  ;;  %v3491_v27 = vadd.f32 %v7381_v48, %v7380_v13  ;;  %v3977_v61 = vadd.f32 %v3976_v25, %v3863_v28  ;;  %v7384_v28 = vld [vmem:[#allocation36_spill] sm:$0xff]  ;;  %v4212_v48 = vld [vmem:[%s4924_s25 + $0xc8] sm:$0xff] }
 0x59f   : > { %v4171_v57 = vadd.f32 %v6966_v11, %v4138_v39  ;;  %v3604_v0 = vadd.f32 %v3603_v2, %v3491_v27 }
 0x5a1   : > { %v4235_v3 = vadd.f32 %v4203_v4, %v4171_v57  ;;  %v3872_v51 = vpop.f32.mrf.mxu3 }
 0x5a2   : > { %v4077_v24 = vpop.f32.mrf.mxu1 }
 0x5a3   : > { %4268 = vst [vmem:[%s6976_s21 + $0x80] sm:$0xff] %v4235_v3  ;;  %v4078_v58 = vadd.f32 %v4077_v24, %v3965_v29  ;;  %v7382_v3 = vld [vmem:[#allocation37_spill] sm:$0xff] }
 0x5a4   : > { %v3494_v24 = vadd.f32 %v7383_v54, %v7382_v3  ;;  %v4213_v3 = vld [vmem:[%s4924_s25 + $0xd0] sm:$0xff] }
 0x5a5   : > { %v4139_v33 = vadd.f32 %v4078_v58, %v3592_v56  ;;  %v3985_v29 = vpop.f32.mrf.mxu0  ;;  %v3980_v56 = vadd.f32 %v3979_v55, %v3866_v41 }
 0x5a6   : > { %v3986_v41 = vadd.f32 %v3985_v29, %v3872_v51 }
 0x5a7   : > { %v4172_v31 = vadd.f32 %v6966_v11, %v4139_v33  ;;  %v3612_v33 = vpop.f32.mrf.mxu2 }
 0x5a9   : > { %v4236_v53 = vadd.f32 %v4204_v47, %v4172_v31  ;;  %v3607_v31 = vadd.f32 %v3606_v6, %v3494_v24 }
 0x5aa   : > { %v4080_v42 = vpop.f32.mrf.mxu1 }
 0x5ab   : > { %4269 = vst [vmem:[%s6976_s21 + $0x88] sm:$0xff] %v4236_v53  ;;  %v4081_v12 = vadd.f32 %v4080_v42, %v3968_v23  ;;  %v7385_v53 = vld [vmem:[#allocation39_spill] sm:$0xff]  ;;  %v3983_v42 = vadd.f32 %v3982_v34, %v3869_v30 }
 0x5ac   : > { %v3497_v25 = vadd.f32 %v7385_v53, %v7384_v28 }
 0x5ad   : > { %v4140_v8 = vadd.f32 %v4081_v12, %v3595_v17  ;;  %v3875_v17 = vpop.f32.mrf.mxu3  ;;  %v3988_v2 = vpop.f32.mrf.mxu0 }
 0x5af   : > { %v4173_v60 = vadd.f32 %v6966_v11, %v4140_v8  ;;  %v3615_v38 = vpop.f32.mrf.mxu2 }
 0x5b1   : > { %v4237_v62 = vadd.f32 %v4205_v46, %v4173_v60  ;;  %v3610_v46 = vadd.f32 %v3609_v21, %v3497_v25  ;;  %v4214_v25 = vld [vmem:[%s4924_s25 + $0xd8] sm:$0xff] }
 0x5b2   : > { %v4083_v35 = vpop.f32.mrf.mxu1 }
 0x5b3   : > { %4270 = vst [vmem:[%s6976_s21 + $0x90] sm:$0xff] %v4237_v62  ;;  %v4084_v44 = vadd.f32 %v4083_v35, %v3971_v16  ;;  %v7386_v62 = vld [vmem:[#allocation19_spill] sm:$0xff]  ;;  %v7387_v35 = vld [vmem:[#allocation40_spill] sm:$0xff] }
 0x5b5   : > { %v4141_v52 = vadd.f32 %v4084_v44, %v3598_v19  ;;  %v3500_v19 = vadd.f32 %v7387_v35, %v7386_v62  ;;  %v3878_v6 = vpop.f32.mrf.mxu3 }
 0x5b7   : > { %v4174_v20 = vadd.f32 %v6966_v11, %v4141_v52  ;;  %v3613_v52 = vadd.f32 %v3612_v33, %v3500_v19  ;;  %v3618_v32 = vpop.f32.mrf.mxu2  ;;  %v7393_v33 = vld [vmem:[#allocation43_spill] sm:$0xff]  ;;  %v4215_v19 = vld [vmem:[%s4924_s25 + $0xe0] sm:$0xff] }
 0x5b9   : > { %v4238_v9 = vadd.f32 %v4206_v15, %v4174_v20  ;;  %v3991_v20 = vpop.f32.mrf.mxu0 }
 0x5ba   : > { %v4086_v50 = vpop.f32.mrf.mxu1 }
 0x5bb   : > { %4271 = vst [vmem:[%s6976_s21 + $0x98] sm:$0xff] %v4238_v9  ;;  %v4087_v22 = vadd.f32 %v4086_v50, %v3974_v1  ;;  %v7388_v9 = vld [vmem:[#allocation35_spill] sm:$0xff]  ;;  %v7389_v50 = vld [vmem:[#allocation41_spill] sm:$0xff] }
 0x5bd   : > { %v4142_v7 = vadd.f32 %v4087_v22, %v3601_v5  ;;  %v3503_v5 = vadd.f32 %v7389_v50, %v7388_v9  ;;  %v3989_v22 = vadd.f32 %v3988_v2, %v3875_v17  ;;  %v7394_v17 = vld [vmem:[#allocation21_spill] sm:$0xff] }
 0x5bf   : > { %v4175_v59 = vadd.f32 %v6966_v11, %v4142_v7  ;;  %v3616_v34 = vadd.f32 %v3615_v38, %v3503_v5  ;;  %v4216_v5 = vld [vmem:[%s4924_s25 + $0xe8] sm:$0xff] }
 0x5c1   : > { %v4239_v39 = vadd.f32 %v4207_v49, %v4175_v59  ;;  %v3881_v59 = vpop.f32.mrf.mxu3  ;;  %v3994_v13 = vpop.f32.mrf.mxu0 }
 0x5c2   : > { %v4089_v4 = vpop.f32.mrf.mxu1 }
 0x5c3   : > { %4272 = vst [vmem:[%s6976_s21 + $0xa0] sm:$0xff] %v4239_v39  ;;  %v4090_v57 = vadd.f32 %v4089_v4, %v3977_v61  ;;  %v3621_v61 = vpop.f32.mrf.mxu2  ;;  %v7390_v39 = vld [vmem:[#allocation20_spill] sm:$0xff]  ;;  %v7391_v4 = vld [vmem:[#allocation42_spill] sm:$0xff] }
 0x5c5   : > { %v4143_v26 = vadd.f32 %v4090_v57, %v3604_v0  ;;  %v3506_v0 = vadd.f32 %v7391_v4, %v7390_v39  ;;  %v3992_v57 = vadd.f32 %v3991_v20, %v3878_v6  ;;  %v4217_v4 = vld [vmem:[%s4924_s25 + $0xf0] sm:$0xff] }
 0x5c7   : > { %v4176_v10 = vadd.f32 %v6966_v11, %v4143_v26  ;;  %v3619_v51 = vadd.f32 %v3618_v32, %v3506_v0 }
 0x5c9   : > { %v4240_v58 = vadd.f32 %v4208_v18, %v4176_v10  ;;  %v3884_v54 = vpop.f32.mrf.mxu3 }
 0x5ca   : > { %v4092_v47 = vpop.f32.mrf.mxu1 }
 0x5cb   : > { %4273 = vst [vmem:[%s6976_s21 + $0xa8] sm:$0xff] %v4240_v58  ;;  %v4093_v37 = vadd.f32 %v4092_v47, %v3980_v56  ;;  %v3997_v56 = vpop.f32.mrf.mxu0  ;;  %v7392_v58 = vld [vmem:[#allocation38_spill] sm:$0xff] }
 0x5cc   : > { %v3509_v47 = vadd.f32 %v7393_v33, %v7392_v58  ;;  %v4218_v58 = vld [vmem:[%s4924_s25 + $0xf8] sm:$0xff] }
 0x5cd   : > { %v4144_v40 = vadd.f32 %v4093_v37, %v3607_v31  ;;  %v3995_v31 = vadd.f32 %v3994_v13, %v3881_v59 }
 0x5cf   : > { %v4177_v23 = vadd.f32 %v6966_v11, %v4144_v40  ;;  %v3624_v40 = vpop.f32.mrf.mxu2 }
 0x5d1   : > { %v4241_v12 = vadd.f32 %v4209_v43, %v4177_v23  ;;  %v3622_v23 = vadd.f32 %v3621_v61, %v3509_v47 }
 0x5d2   : > { %v4095_v8 = vpop.f32.mrf.mxu1 }
 0x5d3   : > { %4274 = vst [vmem:[%s6976_s21 + $0xb0] sm:$0xff] %v4241_v12  ;;  %v4096_v60 = vadd.f32 %v4095_v8, %v3983_v42  ;;  %v7395_v12 = vld [vmem:[#allocation44_spill] sm:$0xff]  ;;  %v3998_v8 = vadd.f32 %v3997_v56, %v3884_v54  ;;  %v4000_v38 = vpop.f32.mrf.mxu0 }
 0x5d4   : > { %v3512_v2 = vadd.f32 %v7395_v12, %v7394_v17 }
 0x5d5   : > { %v4145_v14 = vadd.f32 %v4096_v60, %v3610_v46  ;;  %v3887_v46 = vpop.f32.mrf.mxu3 }
 0x5d6   : > { %v4001_v6 = vadd.f32 %v4000_v38, %v3887_v46 }
 0x5d7   : > { %v4178_v16 = vadd.f32 %v6966_v11, %v4145_v14  ;;  %v3627_v62 = vpop.f32.mrf.mxu2 }
 0x5d9   : > { %v4242_v44 = vadd.f32 %v4210_v63, %v4178_v16  ;;  %v3625_v63 = vadd.f32 %v3624_v40, %v3512_v2 }
 0x5da   : > { %v4098_v55 = vpop.f32.mrf.mxu1 }
 0x5db   : > { %4275 = vst [vmem:[%s6976_s21 + $0xb8] sm:$0xff] %v4242_v44  ;;  %v4099_v15 = vadd.f32 %v4098_v55, %v3986_v41  ;;  %v7396_v44 = vld [vmem:[#allocation22_spill] sm:$0xff]  ;;  %v7397_v55 = vld [vmem:[#allocation45_spill] sm:$0xff]  ;;  %v4003_v32 = vpop.f32.mrf.mxu0 }
 0x5dd   : > { %v4146_v45 = vadd.f32 %v4099_v15, %v3613_v52  ;;  %v3515_v52 = vadd.f32 %v7397_v55, %v7396_v44  ;;  %v3890_v20 = vpop.f32.mrf.mxu3 }
 0x5df   : > { %v4179_v1 = vadd.f32 %v6966_v11, %v4146_v45  ;;  %v3630_v50 = vpop.f32.mrf.mxu2 }
 0x5e1   : > { %v4243_v30 = vadd.f32 %v4211_v36, %v4179_v1  ;;  %v3628_v36 = vadd.f32 %v3627_v62, %v3515_v52 }
 0x5e2   : > { %v4101_v7 = vpop.f32.mrf.mxu1 }
 0x5e3   : > { %4276 = vst [vmem:[%s6976_s21 + $0xc0] sm:$0xff] %v4243_v30  ;;  %v4102_v49 = vadd.f32 %v4101_v7, %v3989_v22  ;;  %v4004_v30 = vadd.f32 %v4003_v32, %v3890_v20  ;;  %v7398_v7 = vld [vmem:[#allocation23_spill] sm:$0xff]  ;;  %v4006_v61 = vpop.f32.mrf.mxu0 }
 0x5e5   : > { %v4147_v21 = vadd.f32 %v4102_v49, %v3616_v34  ;;  %v7399_v34 = vld [vmem:[#allocation46_spill] sm:$0xff] }
 0x5e6   : > { %v3518_v49 = vadd.f32 %v7399_v34, %v7398_v7 }
 0x5e7   : > { %v4180_v27 = vadd.f32 %v6966_v11, %v4147_v21 }
 0x5e8   : > { %v3631_v13 = vadd.f32 %v3630_v50, %v3518_v49 }
 0x5e9   : > { %v4244_v26 = vadd.f32 %v4212_v48, %v4180_v27  ;;  %v3893_v27 = vpop.f32.mrf.mxu3 }
 0x5ea   : > { %v4104_v18 = vpop.f32.mrf.mxu1 }
 0x5eb   : > { %4277 = vst [vmem:[%s6976_s21 + $0xc8] sm:$0xff] %v4244_v26  ;;  %v4105_v10 = vadd.f32 %v4104_v18, %v3992_v57  ;;  %v4007_v57 = vadd.f32 %v4006_v61, %v3893_v27  ;;  %v3633_v26 = vpop.f32.mrf.mxu2  ;;  %v7400_v18 = vld [vmem:[#allocation24_spill] sm:$0xff] }
 0x5ed   : > { %v4148_v29 = vadd.f32 %v4105_v10, %v3619_v51  ;;  %v7401_v51 = vld [vmem:[#allocation47_spill] sm:$0xff] }
 0x5ee   : > { %v3521_v10 = vadd.f32 %v7401_v51, %v7400_v18 }
 0x5ef   : > { %v4181_v24 = vadd.f32 %v6966_v11, %v4148_v29 }
 0x5f0   : > { %v3634_v54 = vadd.f32 %v3633_v26, %v3521_v10 }
 0x5f1   : > { %v4245_v37 = vadd.f32 %v4213_v3, %v4181_v24 }
 0x5f2   : > { %v4107_v43 = vpop.f32.mrf.mxu1 }
 0x5f3   : > { %4278 = vst [vmem:[%s6976_s21 + $0xd0] sm:$0xff] %v4245_v37  ;;  %v4108_v28 = vadd.f32 %v4107_v43, %v3995_v31 }
 0x5f5   : > { %v4149_v53 = vadd.f32 %v4108_v28, %v3622_v23 }
 0x5f7   : > { %v4182_v42 = vadd.f32 %v6966_v11, %v4149_v53 }
 0x5f9   : > { %v4246_v60 = vadd.f32 %v4214_v25, %v4182_v42 }
 0x5fa   : > { %v4110_v14 = vpop.f32.mrf.mxu1 }
 0x5fb   : > { %4279 = vst [vmem:[%s6976_s21 + $0xd8] sm:$0xff] %v4246_v60  ;;  %v4111_v16 = vadd.f32 %v4110_v14, %v3998_v8 }
 0x5fd   : > { %v4150_v35 = vadd.f32 %v4111_v16, %v3625_v63 }
 0x5ff   : > { %v4183_v41 = vadd.f32 %v6966_v11, %v4150_v35 }
 0x601   : > { %v4247_v15 = vadd.f32 %v4215_v19, %v4183_v41 }
 0x602   : > { %v4113_v45 = vpop.f32.mrf.mxu1 }
 0x603   : > { %4280 = vst [vmem:[%s6976_s21 + $0xe0] sm:$0xff] %v4247_v15  ;;  %v4114_v1 = vadd.f32 %v4113_v45, %v4001_v6 }
 0x605   : > { %v4151_v9 = vadd.f32 %v4114_v1, %v3628_v36 }
 0x607   : > { %v4184_v22 = vadd.f32 %v6966_v11, %v4151_v9 }
 0x609   : > { %v4248_v59 = vadd.f32 %v4216_v5, %v4184_v22 }
 0x60a   : > { %v4116_v21 = vpop.f32.mrf.mxu1 }
 0x60b   : > { %4281 = vst [vmem:[%s6976_s21 + $0xe8] sm:$0xff] %v4248_v59  ;;  %v4117_v48 = vadd.f32 %v4116_v21, %v4004_v30 }
 0x60d   : > { %v4152_v39 = vadd.f32 %v4117_v48, %v3631_v13 }
 0x60f   : > { %v4185_v0 = vadd.f32 %v6966_v11, %v4152_v39 }
 0x611   : > { %v4249_v29 = vadd.f32 %v4217_v4, %v4185_v0 }
 0x612   : > { %v4119_v3 = vpop.f32.mrf.mxu1 }
 0x613   : > { %4282 = vst [vmem:[%s6976_s21 + $0xf0] sm:$0xff] %v4249_v29  ;;  %v4120_v24 = vadd.f32 %v4119_v3, %v4007_v57 }
 0x615   : > { %v4153_v56 = vadd.f32 %v4120_v24, %v3634_v54 }
 0x617   : > { %v4186_v33 = vadd.f32 %v6966_v11, %v4153_v56 }
 0x619   : > { %v4250_v47 = vadd.f32 %v4218_v58, %v4186_v33 }
 0x61b   : > { %4283 = vst [vmem:[%s6976_s21 + $0xf8] sm:$0xff] %v4250_v47 }
 0x61c   : > { %4718 = shalt.err (!%p4715_p10)
}
 0x61d   : > { %s4773_s30 = smov 128   ;;  %s4774_s24 = smov 8  }
 0x61e   : > { %4474 = dma.vmem_to_hbm [thread:$0]  (%p4888_p3), %s4298_s13, 4096, %s4300_s14, %s4285_s19, %s4773_s30, %s4773_s30, %s4774_s24  }
 0x61f PF: > { %s4314_s25 = sand.u32 1, %s4753_s15   ;;  %p7402_p12 = scmp.ge.s32.totalorder %s4765_s18, 2 }
 0x620   : > { %s4315_s21 = scalar_lea.sflag [#allocation6], %s4314_s25 }
 0x621   : > { %p4491_p13 = pnand %p7402_p12, %p4835_p6 }
 0x623   : > { %p4492_p0 = pneg %p4491_p13 }
 0x625   : > { %4748 = dma.done.wait (%p4492_p0), %s4315_s21, 4096  }
 0x626   : > { %4750 = vsyncadd (%p4492_p0), %s4315_s21, 4294963200  ;;  %p19_p5 = scmp.ge.s32.totalorder %s4873_s23, 4   ;;  %s7403_s15 = smov %s4757_s16 }
 0x627   : > { %s7404_s16 = smov %s4761_s17  ;;  %s7405_s17 = smov %s4884_s27 }
 0x628   : > { %s7406_s18 = smov %s4873_s23  ;;  %21 = sbr.rel (!%p19_p5) target bundleno = 7 (0x7), region = 109 }
 0x62d   :  { %4321 = vsyncpa [#allocation5], 1 }
 0x62e   :  { %4323 = vsyncpa [#allocation5 + $0x1], 1 }
 0x62f   :  { %4324 = vsyncpa [#allocation8], 1 }
 0x630   :  { %4325 = vsyncpa [#allocation11], 1 }
 0x631   :  { %4326 = vsyncpa [#allocation6], 1 }
 0x632   :  { %4328 = vsyncpa [#allocation6 + $0x1], 1 }

</bundles_post_ra>
